<compile_context>
chip_gen: v6e
topology: v6e:2x2x1
jax: 0.10.0
libtpu: 0.0.40
codegen_flags: <defaults>
</compile_context>

<pallas_src>
import jax
import jax.numpy as jnp
from jax import lax
from jax.experimental import pallas as pl
from jax.experimental.pallas import tpu as pltpu


# ----------------------------------------------------------------------------
# Fused whole-model kernel
# ----------------------------------------------------------------------------
def _make_bilstm_kernel(T, B, H, num_layers):
    """Builds the fused kernel.

    Ref order (all whole-array VMEM refs, no grid):
      x_ref                       : (T*B, in_dims)
      per layer l:
        wih_ref_l                 : (Din_l, 8H)  cols [0:4H]=fwd, [4H:8H]=bwd
        whh_ref_l                 : (2, H, 4H)   [dir]
        b_ref_l                   : (1, 8H)      combined b_ih+b_hh, fwd|bwd
      wp_ref                      : (2H, out_dims)
      bp_ref                      : (1, out_dims)
      out_ref                     : (T*B, out_dims)
    PyTorch gate order inside each 4H block: i, f, g, o.
    """
    H4 = 4 * H

    def kernel(*refs):
        x_ref = refs[0]
        lstm_refs = refs[1:1 + 3 * num_layers]
        wp_ref = refs[1 + 3 * num_layers]
        bp_ref = refs[2 + 3 * num_layers]
        out_ref = refs[3 + 3 * num_layers]

        # Hoisted gate-lane mask/scale (g gate -> tanh, others -> sigmoid via
        # the identity sigmoid(x) = 0.5*tanh(x/2) + 0.5).
        lane = lax.broadcasted_iota(jnp.int32, (B, H4), 1)
        is_g = (lane >= 2 * H) & (lane < 3 * H)
        g_scale = jnp.where(is_g, 1.0, 0.5).astype(jnp.float32)

        def run_dir(xg, whh, reverse):
            """One direction's recurrence, fully unrolled with static indices.

            xg  : (T*B, 4H) input projection with bias folded in.
            whh : (H, 4H) recurrent weights.
            Returns (T*B, H) hidden states in original time order.
            """
            h = jnp.zeros((B, H), jnp.float32)
            c = jnp.zeros((B, H), jnp.float32)
            hs = [None] * T
            steps = range(T - 1, -1, -1) if reverse else range(T)
            for t in steps:                      # static python loop (unrolled)
                gates = xg[t * B:(t + 1) * B, :] + jnp.dot(
                    h, whh, preferred_element_type=jnp.float32)
                y = jnp.tanh(gates * g_scale)            # single EUP pass
                act = jnp.where(is_g, y, 0.5 * y + 0.5)  # free VPU ops
                i_g = act[:, 0 * H:1 * H]
                f_g = act[:, 1 * H:2 * H]
                g_g = act[:, 2 * H:3 * H]
                o_g = act[:, 3 * H:4 * H]
                c = f_g * c + i_g * g_g
                h = o_g * jnp.tanh(c)
                hs[t] = h
            return jnp.concatenate(hs, axis=0)   # (T*B, H), time-ordered

        x = x_ref[...].astype(jnp.float32)       # (T*B, Din)
        for layer in range(num_layers):
            wih_ref = lstm_refs[3 * layer + 0]
            whh_ref = lstm_refs[3 * layer + 1]
            b_ref = lstm_refs[3 * layer + 2]

            # Hoisted input projection for BOTH directions: one MXU matmul.
            xg_all = jnp.dot(x, wih_ref[...],
                             preferred_element_type=jnp.float32) + b_ref[...]
            xg_f = xg_all[:, 0 * H4:1 * H4]      # full 128-lane slices
            xg_b = xg_all[:, 1 * H4:2 * H4]

            h_f = run_dir(xg_f, whh_ref[0], reverse=False)
            h_b = run_dir(xg_b, whh_ref[1], reverse=True)
            x = jnp.concatenate([h_f, h_b], axis=-1)     # (T*B, 2H)

        y = jnp.dot(x, wp_ref[...],
                    preferred_element_type=jnp.float32) + bp_ref[...]
        out_ref[...] = y.astype(out_ref.dtype)

    return kernel


# ----------------------------------------------------------------------------
# Wrapper: single pallas_call for the whole model
# ----------------------------------------------------------------------------
def bilstm_forward(feat, params, num_layers, hidden_dims):
    T, B, in_dims = feat.shape
    out_dims = params["proj"]["b"].shape[-1]

    args = [feat.reshape(T * B, in_dims)]        # layout-preserving reshape
    for layer in range(num_layers):
        p = params["lstm"][layer]
        args += [p["w_ih"], p["w_hh"], p["b"]]
    args += [params["proj"]["w"], params["proj"]["b"]]

    kernel = _make_bilstm_kernel(T, B, hidden_dims, num_layers)
    y = pl.pallas_call(
        kernel,
        out_shape=jax.ShapeDtypeStruct((T * B, out_dims), feat.dtype),
        in_specs=[pl.BlockSpec(memory_space=pltpu.MemorySpace.VMEM)] * len(args),
        out_specs=pl.BlockSpec(memory_space=pltpu.MemorySpace.VMEM),
    )(*args)
    return y.reshape(T, B, out_dims)


# ----------------------------------------------------------------------------
# Pure-JAX reference (standard sigmoid/tanh formulation) for correctness check
# ----------------------------------------------------------------------------
def _lstm_dir_ref(x, w_ih, w_hh, b, hidden):
    B = x.shape[1]

    def step(carry, x_t):
        h, c = carry
        gates = x_t @ w_ih + h @ w_hh + b
        i = jax.nn.sigmoid(gates[:, 0 * hidden:1 * hidden])
        f = jax.nn.sigmoid(gates[:, 1 * hidden:2 * hidden])
        g = jnp.tanh(gates[:, 2 * hidden:3 * hidden])
        o = jax.nn.sigmoid(gates[:, 3 * hidden:4 * hidden])
        c = f * c + i * g
        h = o * jnp.tanh(c)
        return (h, c), h

    init = (jnp.zeros((B, hidden), jnp.float32),
            jnp.zeros((B, hidden), jnp.float32))
    _, hs = lax.scan(step, init, x)
    return hs


def bilstm_ref(feat, params, num_layers, hidden_dims):
    H4 = 4 * hidden_dims
    x = feat
    for layer in range(num_layers):
        p = params["lstm"][layer]
        w_ih, w_hh, b = p["w_ih"], p["w_hh"], p["b"]
        h_f = _lstm_dir_ref(x, w_ih[:, :H4], w_hh[0], b[:, :H4], hidden_dims)
        h_b = jnp.flip(
            _lstm_dir_ref(jnp.flip(x, axis=0), w_ih[:, H4:], w_hh[1],
                          b[:, H4:], hidden_dims),
            axis=0)
        x = jnp.concatenate([h_f, h_b], axis=-1)
    T, B, D = x.shape
    return (x.reshape(T * B, D) @ params["proj"]["w"]
            + params["proj"]["b"]).reshape(T, B, -1)


# ----------------------------------------------------------------------------
# Deterministic parameter init (PyTorch-style uniform(-1/sqrt(H), 1/sqrt(H)))
# Storage layout (pre-transposed, both directions fused where profitable):
#   w_ih: (Din, 8H)  cols [0:4H]=forward, [4H:8H]=backward, gate order i,f,g,o
#   w_hh: (2, H, 4H) per direction
#   b   : (1, 8H)    combined b_ih + b_hh, forward | backward
#   proj w: (2H, out)   proj b: (1, out)
# ----------------------------------------------------------------------------
def init_params(key, num_layers, in_dims, hidden_dims, out_dims):
    params = {"lstm": [], "proj": {}}
    k_lstm = 1.0 / jnp.sqrt(hidden_dims)
    H4 = 4 * hidden_dims
    for layer in range(num_layers):
        Din = in_dims if layer == 0 else 2 * hidden_dims
        w_ih, w_hh, b = [], [], []
        for _d in range(2):
            key, k1, k2, k3, k4 = jax.random.split(key, 5)
            w_ih.append(jax.random.uniform(
                k1, (Din, H4), jnp.float32, -k_lstm, k_lstm))
            w_hh.append(jax.random.uniform(
                k2, (hidden_dims, H4), jnp.float32, -k_lstm, k_lstm))
            b_ih = jax.random.uniform(k3, (H4,), jnp.float32, -k_lstm, k_lstm)
            b_hh = jax.random.uniform(k4, (H4,), jnp.float32, -k_lstm, k_lstm)
            b.append(b_ih + b_hh)
        params["lstm"].append({
            "w_ih": jnp.concatenate(w_ih, axis=-1),          # (Din, 8H)
            "w_hh": jnp.stack(w_hh),                          # (2, H, 4H)
            "b": jnp.concatenate(b).reshape(1, 2 * H4),       # (1, 8H)
        })

    key, kw, kb = jax.random.split(key, 3)
    k_proj = 1.0 / jnp.sqrt(2 * hidden_dims)
    params["proj"]["w"] = jax.random.uniform(
        kw, (2 * hidden_dims, out_dims), jnp.float32, -k_proj, k_proj)
    params["proj"]["b"] = jax.random.uniform(
        kb, (1, out_dims), jnp.float32, -k_proj, k_proj)
    return params


# ----------------------------------------------------------------------------
if __name__ == "__main__":
    num_layers, in_dims, hidden_dims, out_dims = 2, 16, 32, 16
    T, B = 8, 2  # seq_len, batch

    key = jax.random.PRNGKey(0)
    key, kf = jax.random.split(key)
    feat = jax.random.normal(kf, (T, B, in_dims), jnp.float32)
    params = init_params(key, num_layers, in_dims, hidden_dims, out_dims)

    fwd = jax.jit(lambda f, p: bilstm_forward(f, p, num_layers, hidden_dims))
    out = jax.block_until_ready(fwd(feat, params))

    ref = bilstm_ref(feat, params, num_layers, hidden_dims)
    assert out.shape == (T, B, out_dims), out.shape
    max_err = float(jnp.max(jnp.abs(out - ref)))
    assert jnp.allclose(out, ref, atol=1e-4, rtol=1e-4), max_err

    print("KERNEL_OK")
</pallas_src>

<mosaic_0001>
module attributes {stable_mosaic.version = 11 : i64} {
  func.func @kernel(%arg0: memref<16x16xf32, #tpu.memory_space<vmem>>, %arg1: memref<16x256xf32, #tpu.memory_space<vmem>>, %arg2: memref<2x32x128xf32, #tpu.memory_space<vmem>>, %arg3: memref<1x256xf32, #tpu.memory_space<vmem>>, %arg4: memref<64x256xf32, #tpu.memory_space<vmem>>, %arg5: memref<2x32x128xf32, #tpu.memory_space<vmem>>, %arg6: memref<1x256xf32, #tpu.memory_space<vmem>>, %arg7: memref<64x16xf32, #tpu.memory_space<vmem>>, %arg8: memref<1x16xf32, #tpu.memory_space<vmem>>, %arg9: memref<16x16xf32, #tpu.memory_space<vmem>>) attributes {dimension_semantics = [], scalar_prefetch = 0 : i64, scratch_operands = 0 : i64, tpu.core_type = #tpu.core_type<tc>} {
    %0 = tpu.iota {dimensions = array<i32: 1>} : vector<2x128xi32>
    %c64_i32 = arith.constant 64 : i32
    %1 = vector.broadcast %c64_i32 : i32 to vector<2x128xi32>
    %2 = arith.cmpi sge, %0, %1 : vector<2x128xi32>
    %c96_i32 = arith.constant 96 : i32
    %3 = vector.broadcast %c96_i32 : i32 to vector<2x128xi32>
    %4 = arith.cmpi slt, %0, %3 : vector<2x128xi32>
    %5 = arith.andi %2, %4 : vector<2x128xi1>
    %cst = arith.constant 1.000000e+00 : f32
    %cst_0 = arith.constant 5.000000e-01 : f32
    %6 = vector.broadcast %cst : f32 to vector<2x128xf32>
    %7 = vector.broadcast %cst_0 : f32 to vector<2x128xf32>
    %8 = arith.select %5, %6, %7 : vector<2x128xi1>, vector<2x128xf32>
    %c0 = arith.constant 0 : index
    %c0_1 = arith.constant 0 : index
    %9 = vector.load %arg0[%c0, %c0_1] : memref<16x16xf32, #tpu.memory_space<vmem>>, vector<16x16xf32>
    %c0_2 = arith.constant 0 : index
    %c0_3 = arith.constant 0 : index
    %10 = vector.load %arg1[%c0_2, %c0_3] : memref<16x256xf32, #tpu.memory_space<vmem>>, vector<16x256xf32>
    %cst_4 = arith.constant dense<0.000000e+00> : vector<16x256xf32>
    %11 = tpu.matmul %9, %10, %cst_4 {dimension_numbers = #tpu.dot_dimension_numbers<[1], [0], [0], [1], [0, 0, 1, 1], [], []>} : vector<16x16xf32>, vector<16x256xf32>, vector<16x256xf32> -> vector<16x256xf32>
    %c0_5 = arith.constant 0 : index
    %c0_6 = arith.constant 0 : index
    %12 = vector.load %arg3[%c0_5, %c0_6] : memref<1x256xf32, #tpu.memory_space<vmem>>, vector<1x256xf32>
    %13 = vector.broadcast %12 : vector<1x256xf32> to vector<16x256xf32>
    %14 = arith.addf %11, %13 : vector<16x256xf32>
    %15 = vector.extract_strided_slice %14 {offsets = [0, 0], sizes = [16, 128], strides = [1, 1]} : vector<16x256xf32> to vector<16x128xf32>
    %16 = vector.extract_strided_slice %14 {offsets = [0, 128], sizes = [16, 128], strides = [1, 1]} : vector<16x256xf32> to vector<16x128xf32>
    %c0_7 = arith.constant 0 : index
    %c0_8 = arith.constant 0 : index
    %c0_9 = arith.constant 0 : index
    %17 = vector.load %arg2[%c0_7, %c0_8, %c0_9] : memref<2x32x128xf32, #tpu.memory_space<vmem>>, vector<1x32x128xf32>
    %18 = vector.shape_cast %17 : vector<1x32x128xf32> to vector<32x128xf32>
    %cst_10 = arith.constant 0.000000e+00 : f32
    %19 = vector.broadcast %cst_10 : f32 to vector<2x32xf32>
    %cst_11 = arith.constant 0.000000e+00 : f32
    %20 = vector.broadcast %cst_11 : f32 to vector<2x32xf32>
    %21 = vector.extract_strided_slice %15 {offsets = [0, 0], sizes = [2, 128], strides = [1, 1]} : vector<16x128xf32> to vector<2x128xf32>
    %cst_12 = arith.constant dense<0.000000e+00> : vector<2x128xf32>
    %22 = tpu.matmul %19, %18, %cst_12 {dimension_numbers = #tpu.dot_dimension_numbers<[1], [0], [0], [1], [0, 0, 1, 1], [], []>} : vector<2x32xf32>, vector<32x128xf32>, vector<2x128xf32> -> vector<2x128xf32>
    %23 = arith.addf %21, %22 : vector<2x128xf32>
    %24 = arith.mulf %23, %8 : vector<2x128xf32>
    %25 = math.tanh %24 : vector<2x128xf32>
    %cst_13 = arith.constant 5.000000e-01 : f32
    %26 = vector.broadcast %cst_13 : f32 to vector<2x128xf32>
    %27 = arith.mulf %26, %25 : vector<2x128xf32>
    %cst_14 = arith.constant 5.000000e-01 : f32
    %28 = vector.broadcast %cst_14 : f32 to vector<2x128xf32>
    %29 = arith.addf %27, %28 : vector<2x128xf32>
    %30 = arith.select %5, %25, %29 : vector<2x128xi1>, vector<2x128xf32>
    %31 = vector.extract_strided_slice %30 {offsets = [0, 0], sizes = [2, 32], strides = [1, 1]} : vector<2x128xf32> to vector<2x32xf32>
    %32 = vector.extract_strided_slice %30 {offsets = [0, 32], sizes = [2, 32], strides = [1, 1]} : vector<2x128xf32> to vector<2x32xf32>
    %33 = vector.extract_strided_slice %30 {offsets = [0, 64], sizes = [2, 32], strides = [1, 1]} : vector<2x128xf32> to vector<2x32xf32>
    %34 = vector.extract_strided_slice %30 {offsets = [0, 96], sizes = [2, 32], strides = [1, 1]} : vector<2x128xf32> to vector<2x32xf32>
    %35 = arith.mulf %32, %20 : vector<2x32xf32>
    %36 = arith.mulf %31, %33 : vector<2x32xf32>
    %37 = arith.addf %35, %36 : vector<2x32xf32>
    %38 = math.tanh %37 : vector<2x32xf32>
    %39 = arith.mulf %34, %38 : vector<2x32xf32>
    %40 = vector.extract_strided_slice %15 {offsets = [2, 0], sizes = [2, 128], strides = [1, 1]} : vector<16x128xf32> to vector<2x128xf32>
    %cst_15 = arith.constant dense<0.000000e+00> : vector<2x128xf32>
    %41 = tpu.matmul %39, %18, %cst_15 {dimension_numbers = #tpu.dot_dimension_numbers<[1], [0], [0], [1], [0, 0, 1, 1], [], []>} : vector<2x32xf32>, vector<32x128xf32>, vector<2x128xf32> -> vector<2x128xf32>
    %42 = arith.addf %40, %41 : vector<2x128xf32>
    %43 = arith.mulf %42, %8 : vector<2x128xf32>
    %44 = math.tanh %43 : vector<2x128xf32>
    %cst_16 = arith.constant 5.000000e-01 : f32
    %45 = vector.broadcast %cst_16 : f32 to vector<2x128xf32>
    %46 = arith.mulf %45, %44 : vector<2x128xf32>
    %cst_17 = arith.constant 5.000000e-01 : f32
    %47 = vector.broadcast %cst_17 : f32 to vector<2x128xf32>
    %48 = arith.addf %46, %47 : vector<2x128xf32>
    %49 = arith.select %5, %44, %48 : vector<2x128xi1>, vector<2x128xf32>
    %50 = vector.extract_strided_slice %49 {offsets = [0, 0], sizes = [2, 32], strides = [1, 1]} : vector<2x128xf32> to vector<2x32xf32>
    %51 = vector.extract_strided_slice %49 {offsets = [0, 32], sizes = [2, 32], strides = [1, 1]} : vector<2x128xf32> to vector<2x32xf32>
    %52 = vector.extract_strided_slice %49 {offsets = [0, 64], sizes = [2, 32], strides = [1, 1]} : vector<2x128xf32> to vector<2x32xf32>
    %53 = vector.extract_strided_slice %49 {offsets = [0, 96], sizes = [2, 32], strides = [1, 1]} : vector<2x128xf32> to vector<2x32xf32>
    %54 = arith.mulf %51, %37 : vector<2x32xf32>
    %55 = arith.mulf %50, %52 : vector<2x32xf32>
    %56 = arith.addf %54, %55 : vector<2x32xf32>
    %57 = math.tanh %56 : vector<2x32xf32>
    %58 = arith.mulf %53, %57 : vector<2x32xf32>
    %59 = vector.extract_strided_slice %15 {offsets = [4, 0], sizes = [2, 128], strides = [1, 1]} : vector<16x128xf32> to vector<2x128xf32>
    %cst_18 = arith.constant dense<0.000000e+00> : vector<2x128xf32>
    %60 = tpu.matmul %58, %18, %cst_18 {dimension_numbers = #tpu.dot_dimension_numbers<[1], [0], [0], [1], [0, 0, 1, 1], [], []>} : vector<2x32xf32>, vector<32x128xf32>, vector<2x128xf32> -> vector<2x128xf32>
    %61 = arith.addf %59, %60 : vector<2x128xf32>
    %62 = arith.mulf %61, %8 : vector<2x128xf32>
    %63 = math.tanh %62 : vector<2x128xf32>
    %cst_19 = arith.constant 5.000000e-01 : f32
    %64 = vector.broadcast %cst_19 : f32 to vector<2x128xf32>
    %65 = arith.mulf %64, %63 : vector<2x128xf32>
    %cst_20 = arith.constant 5.000000e-01 : f32
    %66 = vector.broadcast %cst_20 : f32 to vector<2x128xf32>
    %67 = arith.addf %65, %66 : vector<2x128xf32>
    %68 = arith.select %5, %63, %67 : vector<2x128xi1>, vector<2x128xf32>
    %69 = vector.extract_strided_slice %68 {offsets = [0, 0], sizes = [2, 32], strides = [1, 1]} : vector<2x128xf32> to vector<2x32xf32>
    %70 = vector.extract_strided_slice %68 {offsets = [0, 32], sizes = [2, 32], strides = [1, 1]} : vector<2x128xf32> to vector<2x32xf32>
    %71 = vector.extract_strided_slice %68 {offsets = [0, 64], sizes = [2, 32], strides = [1, 1]} : vector<2x128xf32> to vector<2x32xf32>
    %72 = vector.extract_strided_slice %68 {offsets = [0, 96], sizes = [2, 32], strides = [1, 1]} : vector<2x128xf32> to vector<2x32xf32>
    %73 = arith.mulf %70, %56 : vector<2x32xf32>
    %74 = arith.mulf %69, %71 : vector<2x32xf32>
    %75 = arith.addf %73, %74 : vector<2x32xf32>
    %76 = math.tanh %75 : vector<2x32xf32>
    %77 = arith.mulf %72, %76 : vector<2x32xf32>
    %78 = vector.extract_strided_slice %15 {offsets = [6, 0], sizes = [2, 128], strides = [1, 1]} : vector<16x128xf32> to vector<2x128xf32>
    %cst_21 = arith.constant dense<0.000000e+00> : vector<2x128xf32>
    %79 = tpu.matmul %77, %18, %cst_21 {dimension_numbers = #tpu.dot_dimension_numbers<[1], [0], [0], [1], [0, 0, 1, 1], [], []>} : vector<2x32xf32>, vector<32x128xf32>, vector<2x128xf32> -> vector<2x128xf32>
    %80 = arith.addf %78, %79 : vector<2x128xf32>
    %81 = arith.mulf %80, %8 : vector<2x128xf32>
    %82 = math.tanh %81 : vector<2x128xf32>
    %cst_22 = arith.constant 5.000000e-01 : f32
    %83 = vector.broadcast %cst_22 : f32 to vector<2x128xf32>
    %84 = arith.mulf %83, %82 : vector<2x128xf32>
    %cst_23 = arith.constant 5.000000e-01 : f32
    %85 = vector.broadcast %cst_23 : f32 to vector<2x128xf32>
    %86 = arith.addf %84, %85 : vector<2x128xf32>
    %87 = arith.select %5, %82, %86 : vector<2x128xi1>, vector<2x128xf32>
    %88 = vector.extract_strided_slice %87 {offsets = [0, 0], sizes = [2, 32], strides = [1, 1]} : vector<2x128xf32> to vector<2x32xf32>
    %89 = vector.extract_strided_slice %87 {offsets = [0, 32], sizes = [2, 32], strides = [1, 1]} : vector<2x128xf32> to vector<2x32xf32>
    %90 = vector.extract_strided_slice %87 {offsets = [0, 64], sizes = [2, 32], strides = [1, 1]} : vector<2x128xf32> to vector<2x32xf32>
    %91 = vector.extract_strided_slice %87 {offsets = [0, 96], sizes = [2, 32], strides = [1, 1]} : vector<2x128xf32> to vector<2x32xf32>
    %92 = arith.mulf %89, %75 : vector<2x32xf32>
    %93 = arith.mulf %88, %90 : vector<2x32xf32>
    %94 = arith.addf %92, %93 : vector<2x32xf32>
    %95 = math.tanh %94 : vector<2x32xf32>
    %96 = arith.mulf %91, %95 : vector<2x32xf32>
    %97 = vector.extract_strided_slice %15 {offsets = [8, 0], sizes = [2, 128], strides = [1, 1]} : vector<16x128xf32> to vector<2x128xf32>
    %cst_24 = arith.constant dense<0.000000e+00> : vector<2x128xf32>
    %98 = tpu.matmul %96, %18, %cst_24 {dimension_numbers = #tpu.dot_dimension_numbers<[1], [0], [0], [1], [0, 0, 1, 1], [], []>} : vector<2x32xf32>, vector<32x128xf32>, vector<2x128xf32> -> vector<2x128xf32>
    %99 = arith.addf %97, %98 : vector<2x128xf32>
    %100 = arith.mulf %99, %8 : vector<2x128xf32>
    %101 = math.tanh %100 : vector<2x128xf32>
    %cst_25 = arith.constant 5.000000e-01 : f32
    %102 = vector.broadcast %cst_25 : f32 to vector<2x128xf32>
    %103 = arith.mulf %102, %101 : vector<2x128xf32>
    %cst_26 = arith.constant 5.000000e-01 : f32
    %104 = vector.broadcast %cst_26 : f32 to vector<2x128xf32>
    %105 = arith.addf %103, %104 : vector<2x128xf32>
    %106 = arith.select %5, %101, %105 : vector<2x128xi1>, vector<2x128xf32>
    %107 = vector.extract_strided_slice %106 {offsets = [0, 0], sizes = [2, 32], strides = [1, 1]} : vector<2x128xf32> to vector<2x32xf32>
    %108 = vector.extract_strided_slice %106 {offsets = [0, 32], sizes = [2, 32], strides = [1, 1]} : vector<2x128xf32> to vector<2x32xf32>
    %109 = vector.extract_strided_slice %106 {offsets = [0, 64], sizes = [2, 32], strides = [1, 1]} : vector<2x128xf32> to vector<2x32xf32>
    %110 = vector.extract_strided_slice %106 {offsets = [0, 96], sizes = [2, 32], strides = [1, 1]} : vector<2x128xf32> to vector<2x32xf32>
    %111 = arith.mulf %108, %94 : vector<2x32xf32>
    %112 = arith.mulf %107, %109 : vector<2x32xf32>
    %113 = arith.addf %111, %112 : vector<2x32xf32>
    %114 = math.tanh %113 : vector<2x32xf32>
    %115 = arith.mulf %110, %114 : vector<2x32xf32>
    %116 = vector.extract_strided_slice %15 {offsets = [10, 0], sizes = [2, 128], strides = [1, 1]} : vector<16x128xf32> to vector<2x128xf32>
    %cst_27 = arith.constant dense<0.000000e+00> : vector<2x128xf32>
    %117 = tpu.matmul %115, %18, %cst_27 {dimension_numbers = #tpu.dot_dimension_numbers<[1], [0], [0], [1], [0, 0, 1, 1], [], []>} : vector<2x32xf32>, vector<32x128xf32>, vector<2x128xf32> -> vector<2x128xf32>
    %118 = arith.addf %116, %117 : vector<2x128xf32>
    %119 = arith.mulf %118, %8 : vector<2x128xf32>
    %120 = math.tanh %119 : vector<2x128xf32>
    %cst_28 = arith.constant 5.000000e-01 : f32
    %121 = vector.broadcast %cst_28 : f32 to vector<2x128xf32>
    %122 = arith.mulf %121, %120 : vector<2x128xf32>
    %cst_29 = arith.constant 5.000000e-01 : f32
    %123 = vector.broadcast %cst_29 : f32 to vector<2x128xf32>
    %124 = arith.addf %122, %123 : vector<2x128xf32>
    %125 = arith.select %5, %120, %124 : vector<2x128xi1>, vector<2x128xf32>
    %126 = vector.extract_strided_slice %125 {offsets = [0, 0], sizes = [2, 32], strides = [1, 1]} : vector<2x128xf32> to vector<2x32xf32>
    %127 = vector.extract_strided_slice %125 {offsets = [0, 32], sizes = [2, 32], strides = [1, 1]} : vector<2x128xf32> to vector<2x32xf32>
    %128 = vector.extract_strided_slice %125 {offsets = [0, 64], sizes = [2, 32], strides = [1, 1]} : vector<2x128xf32> to vector<2x32xf32>
    %129 = vector.extract_strided_slice %125 {offsets = [0, 96], sizes = [2, 32], strides = [1, 1]} : vector<2x128xf32> to vector<2x32xf32>
    %130 = arith.mulf %127, %113 : vector<2x32xf32>
    %131 = arith.mulf %126, %128 : vector<2x32xf32>
    %132 = arith.addf %130, %131 : vector<2x32xf32>
    %133 = math.tanh %132 : vector<2x32xf32>
    %134 = arith.mulf %129, %133 : vector<2x32xf32>
    %135 = vector.extract_strided_slice %15 {offsets = [12, 0], sizes = [2, 128], strides = [1, 1]} : vector<16x128xf32> to vector<2x128xf32>
    %cst_30 = arith.constant dense<0.000000e+00> : vector<2x128xf32>
    %136 = tpu.matmul %134, %18, %cst_30 {dimension_numbers = #tpu.dot_dimension_numbers<[1], [0], [0], [1], [0, 0, 1, 1], [], []>} : vector<2x32xf32>, vector<32x128xf32>, vector<2x128xf32> -> vector<2x128xf32>
    %137 = arith.addf %135, %136 : vector<2x128xf32>
    %138 = arith.mulf %137, %8 : vector<2x128xf32>
    %139 = math.tanh %138 : vector<2x128xf32>
    %cst_31 = arith.constant 5.000000e-01 : f32
    %140 = vector.broadcast %cst_31 : f32 to vector<2x128xf32>
    %141 = arith.mulf %140, %139 : vector<2x128xf32>
    %cst_32 = arith.constant 5.000000e-01 : f32
    %142 = vector.broadcast %cst_32 : f32 to vector<2x128xf32>
    %143 = arith.addf %141, %142 : vector<2x128xf32>
    %144 = arith.select %5, %139, %143 : vector<2x128xi1>, vector<2x128xf32>
    %145 = vector.extract_strided_slice %144 {offsets = [0, 0], sizes = [2, 32], strides = [1, 1]} : vector<2x128xf32> to vector<2x32xf32>
    %146 = vector.extract_strided_slice %144 {offsets = [0, 32], sizes = [2, 32], strides = [1, 1]} : vector<2x128xf32> to vector<2x32xf32>
    %147 = vector.extract_strided_slice %144 {offsets = [0, 64], sizes = [2, 32], strides = [1, 1]} : vector<2x128xf32> to vector<2x32xf32>
    %148 = vector.extract_strided_slice %144 {offsets = [0, 96], sizes = [2, 32], strides = [1, 1]} : vector<2x128xf32> to vector<2x32xf32>
    %149 = arith.mulf %146, %132 : vector<2x32xf32>
    %150 = arith.mulf %145, %147 : vector<2x32xf32>
    %151 = arith.addf %149, %150 : vector<2x32xf32>
    %152 = math.tanh %151 : vector<2x32xf32>
    %153 = arith.mulf %148, %152 : vector<2x32xf32>
    %154 = vector.extract_strided_slice %15 {offsets = [14, 0], sizes = [2, 128], strides = [1, 1]} : vector<16x128xf32> to vector<2x128xf32>
    %cst_33 = arith.constant dense<0.000000e+00> : vector<2x128xf32>
    %155 = tpu.matmul %153, %18, %cst_33 {dimension_numbers = #tpu.dot_dimension_numbers<[1], [0], [0], [1], [0, 0, 1, 1], [], []>} : vector<2x32xf32>, vector<32x128xf32>, vector<2x128xf32> -> vector<2x128xf32>
    %156 = arith.addf %154, %155 : vector<2x128xf32>
    %157 = arith.mulf %156, %8 : vector<2x128xf32>
    %158 = math.tanh %157 : vector<2x128xf32>
    %cst_34 = arith.constant 5.000000e-01 : f32
    %159 = vector.broadcast %cst_34 : f32 to vector<2x128xf32>
    %160 = arith.mulf %159, %158 : vector<2x128xf32>
    %cst_35 = arith.constant 5.000000e-01 : f32
    %161 = vector.broadcast %cst_35 : f32 to vector<2x128xf32>
    %162 = arith.addf %160, %161 : vector<2x128xf32>
    %163 = arith.select %5, %158, %162 : vector<2x128xi1>, vector<2x128xf32>
    %164 = vector.extract_strided_slice %163 {offsets = [0, 0], sizes = [2, 32], strides = [1, 1]} : vector<2x128xf32> to vector<2x32xf32>
    %165 = vector.extract_strided_slice %163 {offsets = [0, 32], sizes = [2, 32], strides = [1, 1]} : vector<2x128xf32> to vector<2x32xf32>
    %166 = vector.extract_strided_slice %163 {offsets = [0, 64], sizes = [2, 32], strides = [1, 1]} : vector<2x128xf32> to vector<2x32xf32>
    %167 = vector.extract_strided_slice %163 {offsets = [0, 96], sizes = [2, 32], strides = [1, 1]} : vector<2x128xf32> to vector<2x32xf32>
    %168 = arith.mulf %165, %151 : vector<2x32xf32>
    %169 = arith.mulf %164, %166 : vector<2x32xf32>
    %170 = arith.addf %168, %169 : vector<2x32xf32>
    %171 = math.tanh %170 : vector<2x32xf32>
    %172 = arith.mulf %167, %171 : vector<2x32xf32>
    %173 = tpu.concatenate %39, %58, %77, %96, %115, %134, %153, %172 in 0 : vector<2x32xf32>, vector<2x32xf32>, vector<2x32xf32>, vector<2x32xf32>, vector<2x32xf32>, vector<2x32xf32>, vector<2x32xf32>, vector<2x32xf32> -> vector<16x32xf32>
    %c1 = arith.constant 1 : index
    %c0_36 = arith.constant 0 : index
    %c0_37 = arith.constant 0 : index
    %174 = vector.load %arg2[%c1, %c0_36, %c0_37] : memref<2x32x128xf32, #tpu.memory_space<vmem>>, vector<1x32x128xf32>
    %175 = vector.shape_cast %174 : vector<1x32x128xf32> to vector<32x128xf32>
    %cst_38 = arith.constant 0.000000e+00 : f32
    %176 = vector.broadcast %cst_38 : f32 to vector<2x32xf32>
    %cst_39 = arith.constant 0.000000e+00 : f32
    %177 = vector.broadcast %cst_39 : f32 to vector<2x32xf32>
    %178 = vector.extract_strided_slice %16 {offsets = [14, 0], sizes = [2, 128], strides = [1, 1]} : vector<16x128xf32> to vector<2x128xf32>
    %cst_40 = arith.constant dense<0.000000e+00> : vector<2x128xf32>
    %179 = tpu.matmul %176, %175, %cst_40 {dimension_numbers = #tpu.dot_dimension_numbers<[1], [0], [0], [1], [0, 0, 1, 1], [], []>} : vector<2x32xf32>, vector<32x128xf32>, vector<2x128xf32> -> vector<2x128xf32>
    %180 = arith.addf %178, %179 : vector<2x128xf32>
    %181 = arith.mulf %180, %8 : vector<2x128xf32>
    %182 = math.tanh %181 : vector<2x128xf32>
    %cst_41 = arith.constant 5.000000e-01 : f32
    %183 = vector.broadcast %cst_41 : f32 to vector<2x128xf32>
    %184 = arith.mulf %183, %182 : vector<2x128xf32>
    %cst_42 = arith.constant 5.000000e-01 : f32
    %185 = vector.broadcast %cst_42 : f32 to vector<2x128xf32>
    %186 = arith.addf %184, %185 : vector<2x128xf32>
    %187 = arith.select %5, %182, %186 : vector<2x128xi1>, vector<2x128xf32>
    %188 = vector.extract_strided_slice %187 {offsets = [0, 0], sizes = [2, 32], strides = [1, 1]} : vector<2x128xf32> to vector<2x32xf32>
    %189 = vector.extract_strided_slice %187 {offsets = [0, 32], sizes = [2, 32], strides = [1, 1]} : vector<2x128xf32> to vector<2x32xf32>
    %190 = vector.extract_strided_slice %187 {offsets = [0, 64], sizes = [2, 32], strides = [1, 1]} : vector<2x128xf32> to vector<2x32xf32>
    %191 = vector.extract_strided_slice %187 {offsets = [0, 96], sizes = [2, 32], strides = [1, 1]} : vector<2x128xf32> to vector<2x32xf32>
    %192 = arith.mulf %189, %177 : vector<2x32xf32>
    %193 = arith.mulf %188, %190 : vector<2x32xf32>
    %194 = arith.addf %192, %193 : vector<2x32xf32>
    %195 = math.tanh %194 : vector<2x32xf32>
    %196 = arith.mulf %191, %195 : vector<2x32xf32>
    %197 = vector.extract_strided_slice %16 {offsets = [12, 0], sizes = [2, 128], strides = [1, 1]} : vector<16x128xf32> to vector<2x128xf32>
    %cst_43 = arith.constant dense<0.000000e+00> : vector<2x128xf32>
    %198 = tpu.matmul %196, %175, %cst_43 {dimension_numbers = #tpu.dot_dimension_numbers<[1], [0], [0], [1], [0, 0, 1, 1], [], []>} : vector<2x32xf32>, vector<32x128xf32>, vector<2x128xf32> -> vector<2x128xf32>
    %199 = arith.addf %197, %198 : vector<2x128xf32>
    %200 = arith.mulf %199, %8 : vector<2x128xf32>
    %201 = math.tanh %200 : vector<2x128xf32>
    %cst_44 = arith.constant 5.000000e-01 : f32
    %202 = vector.broadcast %cst_44 : f32 to vector<2x128xf32>
    %203 = arith.mulf %202, %201 : vector<2x128xf32>
    %cst_45 = arith.constant 5.000000e-01 : f32
    %204 = vector.broadcast %cst_45 : f32 to vector<2x128xf32>
    %205 = arith.addf %203, %204 : vector<2x128xf32>
    %206 = arith.select %5, %201, %205 : vector<2x128xi1>, vector<2x128xf32>
    %207 = vector.extract_strided_slice %206 {offsets = [0, 0], sizes = [2, 32], strides = [1, 1]} : vector<2x128xf32> to vector<2x32xf32>
    %208 = vector.extract_strided_slice %206 {offsets = [0, 32], sizes = [2, 32], strides = [1, 1]} : vector<2x128xf32> to vector<2x32xf32>
    %209 = vector.extract_strided_slice %206 {offsets = [0, 64], sizes = [2, 32], strides = [1, 1]} : vector<2x128xf32> to vector<2x32xf32>
    %210 = vector.extract_strided_slice %206 {offsets = [0, 96], sizes = [2, 32], strides = [1, 1]} : vector<2x128xf32> to vector<2x32xf32>
    %211 = arith.mulf %208, %194 : vector<2x32xf32>
    %212 = arith.mulf %207, %209 : vector<2x32xf32>
    %213 = arith.addf %211, %212 : vector<2x32xf32>
    %214 = math.tanh %213 : vector<2x32xf32>
    %215 = arith.mulf %210, %214 : vector<2x32xf32>
    %216 = vector.extract_strided_slice %16 {offsets = [10, 0], sizes = [2, 128], strides = [1, 1]} : vector<16x128xf32> to vector<2x128xf32>
    %cst_46 = arith.constant dense<0.000000e+00> : vector<2x128xf32>
    %217 = tpu.matmul %215, %175, %cst_46 {dimension_numbers = #tpu.dot_dimension_numbers<[1], [0], [0], [1], [0, 0, 1, 1], [], []>} : vector<2x32xf32>, vector<32x128xf32>, vector<2x128xf32> -> vector<2x128xf32>
    %218 = arith.addf %216, %217 : vector<2x128xf32>
    %219 = arith.mulf %218, %8 : vector<2x128xf32>
    %220 = math.tanh %219 : vector<2x128xf32>
    %cst_47 = arith.constant 5.000000e-01 : f32
    %221 = vector.broadcast %cst_47 : f32 to vector<2x128xf32>
    %222 = arith.mulf %221, %220 : vector<2x128xf32>
    %cst_48 = arith.constant 5.000000e-01 : f32
    %223 = vector.broadcast %cst_48 : f32 to vector<2x128xf32>
    %224 = arith.addf %222, %223 : vector<2x128xf32>
    %225 = arith.select %5, %220, %224 : vector<2x128xi1>, vector<2x128xf32>
    %226 = vector.extract_strided_slice %225 {offsets = [0, 0], sizes = [2, 32], strides = [1, 1]} : vector<2x128xf32> to vector<2x32xf32>
    %227 = vector.extract_strided_slice %225 {offsets = [0, 32], sizes = [2, 32], strides = [1, 1]} : vector<2x128xf32> to vector<2x32xf32>
    %228 = vector.extract_strided_slice %225 {offsets = [0, 64], sizes = [2, 32], strides = [1, 1]} : vector<2x128xf32> to vector<2x32xf32>
    %229 = vector.extract_strided_slice %225 {offsets = [0, 96], sizes = [2, 32], strides = [1, 1]} : vector<2x128xf32> to vector<2x32xf32>
    %230 = arith.mulf %227, %213 : vector<2x32xf32>
    %231 = arith.mulf %226, %228 : vector<2x32xf32>
    %232 = arith.addf %230, %231 : vector<2x32xf32>
    %233 = math.tanh %232 : vector<2x32xf32>
    %234 = arith.mulf %229, %233 : vector<2x32xf32>
    %235 = vector.extract_strided_slice %16 {offsets = [8, 0], sizes = [2, 128], strides = [1, 1]} : vector<16x128xf32> to vector<2x128xf32>
    %cst_49 = arith.constant dense<0.000000e+00> : vector<2x128xf32>
    %236 = tpu.matmul %234, %175, %cst_49 {dimension_numbers = #tpu.dot_dimension_numbers<[1], [0], [0], [1], [0, 0, 1, 1], [], []>} : vector<2x32xf32>, vector<32x128xf32>, vector<2x128xf32> -> vector<2x128xf32>
    %237 = arith.addf %235, %236 : vector<2x128xf32>
    %238 = arith.mulf %237, %8 : vector<2x128xf32>
    %239 = math.tanh %238 : vector<2x128xf32>
    %cst_50 = arith.constant 5.000000e-01 : f32
    %240 = vector.broadcast %cst_50 : f32 to vector<2x128xf32>
    %241 = arith.mulf %240, %239 : vector<2x128xf32>
    %cst_51 = arith.constant 5.000000e-01 : f32
    %242 = vector.broadcast %cst_51 : f32 to vector<2x128xf32>
    %243 = arith.addf %241, %242 : vector<2x128xf32>
    %244 = arith.select %5, %239, %243 : vector<2x128xi1>, vector<2x128xf32>
    %245 = vector.extract_strided_slice %244 {offsets = [0, 0], sizes = [2, 32], strides = [1, 1]} : vector<2x128xf32> to vector<2x32xf32>
    %246 = vector.extract_strided_slice %244 {offsets = [0, 32], sizes = [2, 32], strides = [1, 1]} : vector<2x128xf32> to vector<2x32xf32>
    %247 = vector.extract_strided_slice %244 {offsets = [0, 64], sizes = [2, 32], strides = [1, 1]} : vector<2x128xf32> to vector<2x32xf32>
    %248 = vector.extract_strided_slice %244 {offsets = [0, 96], sizes = [2, 32], strides = [1, 1]} : vector<2x128xf32> to vector<2x32xf32>
    %249 = arith.mulf %246, %232 : vector<2x32xf32>
    %250 = arith.mulf %245, %247 : vector<2x32xf32>
    %251 = arith.addf %249, %250 : vector<2x32xf32>
    %252 = math.tanh %251 : vector<2x32xf32>
    %253 = arith.mulf %248, %252 : vector<2x32xf32>
    %254 = vector.extract_strided_slice %16 {offsets = [6, 0], sizes = [2, 128], strides = [1, 1]} : vector<16x128xf32> to vector<2x128xf32>
    %cst_52 = arith.constant dense<0.000000e+00> : vector<2x128xf32>
    %255 = tpu.matmul %253, %175, %cst_52 {dimension_numbers = #tpu.dot_dimension_numbers<[1], [0], [0], [1], [0, 0, 1, 1], [], []>} : vector<2x32xf32>, vector<32x128xf32>, vector<2x128xf32> -> vector<2x128xf32>
    %256 = arith.addf %254, %255 : vector<2x128xf32>
    %257 = arith.mulf %256, %8 : vector<2x128xf32>
    %258 = math.tanh %257 : vector<2x128xf32>
    %cst_53 = arith.constant 5.000000e-01 : f32
    %259 = vector.broadcast %cst_53 : f32 to vector<2x128xf32>
    %260 = arith.mulf %259, %258 : vector<2x128xf32>
    %cst_54 = arith.constant 5.000000e-01 : f32
    %261 = vector.broadcast %cst_54 : f32 to vector<2x128xf32>
    %262 = arith.addf %260, %261 : vector<2x128xf32>
    %263 = arith.select %5, %258, %262 : vector<2x128xi1>, vector<2x128xf32>
    %264 = vector.extract_strided_slice %263 {offsets = [0, 0], sizes = [2, 32], strides = [1, 1]} : vector<2x128xf32> to vector<2x32xf32>
    %265 = vector.extract_strided_slice %263 {offsets = [0, 32], sizes = [2, 32], strides = [1, 1]} : vector<2x128xf32> to vector<2x32xf32>
    %266 = vector.extract_strided_slice %263 {offsets = [0, 64], sizes = [2, 32], strides = [1, 1]} : vector<2x128xf32> to vector<2x32xf32>
    %267 = vector.extract_strided_slice %263 {offsets = [0, 96], sizes = [2, 32], strides = [1, 1]} : vector<2x128xf32> to vector<2x32xf32>
    %268 = arith.mulf %265, %251 : vector<2x32xf32>
    %269 = arith.mulf %264, %266 : vector<2x32xf32>
    %270 = arith.addf %268, %269 : vector<2x32xf32>
    %271 = math.tanh %270 : vector<2x32xf32>
    %272 = arith.mulf %267, %271 : vector<2x32xf32>
    %273 = vector.extract_strided_slice %16 {offsets = [4, 0], sizes = [2, 128], strides = [1, 1]} : vector<16x128xf32> to vector<2x128xf32>
    %cst_55 = arith.constant dense<0.000000e+00> : vector<2x128xf32>
    %274 = tpu.matmul %272, %175, %cst_55 {dimension_numbers = #tpu.dot_dimension_numbers<[1], [0], [0], [1], [0, 0, 1, 1], [], []>} : vector<2x32xf32>, vector<32x128xf32>, vector<2x128xf32> -> vector<2x128xf32>
    %275 = arith.addf %273, %274 : vector<2x128xf32>
    %276 = arith.mulf %275, %8 : vector<2x128xf32>
    %277 = math.tanh %276 : vector<2x128xf32>
    %cst_56 = arith.constant 5.000000e-01 : f32
    %278 = vector.broadcast %cst_56 : f32 to vector<2x128xf32>
    %279 = arith.mulf %278, %277 : vector<2x128xf32>
    %cst_57 = arith.constant 5.000000e-01 : f32
    %280 = vector.broadcast %cst_57 : f32 to vector<2x128xf32>
    %281 = arith.addf %279, %280 : vector<2x128xf32>
    %282 = arith.select %5, %277, %281 : vector<2x128xi1>, vector<2x128xf32>
    %283 = vector.extract_strided_slice %282 {offsets = [0, 0], sizes = [2, 32], strides = [1, 1]} : vector<2x128xf32> to vector<2x32xf32>
    %284 = vector.extract_strided_slice %282 {offsets = [0, 32], sizes = [2, 32], strides = [1, 1]} : vector<2x128xf32> to vector<2x32xf32>
    %285 = vector.extract_strided_slice %282 {offsets = [0, 64], sizes = [2, 32], strides = [1, 1]} : vector<2x128xf32> to vector<2x32xf32>
    %286 = vector.extract_strided_slice %282 {offsets = [0, 96], sizes = [2, 32], strides = [1, 1]} : vector<2x128xf32> to vector<2x32xf32>
    %287 = arith.mulf %284, %270 : vector<2x32xf32>
    %288 = arith.mulf %283, %285 : vector<2x32xf32>
    %289 = arith.addf %287, %288 : vector<2x32xf32>
    %290 = math.tanh %289 : vector<2x32xf32>
    %291 = arith.mulf %286, %290 : vector<2x32xf32>
    %292 = vector.extract_strided_slice %16 {offsets = [2, 0], sizes = [2, 128], strides = [1, 1]} : vector<16x128xf32> to vector<2x128xf32>
    %cst_58 = arith.constant dense<0.000000e+00> : vector<2x128xf32>
    %293 = tpu.matmul %291, %175, %cst_58 {dimension_numbers = #tpu.dot_dimension_numbers<[1], [0], [0], [1], [0, 0, 1, 1], [], []>} : vector<2x32xf32>, vector<32x128xf32>, vector<2x128xf32> -> vector<2x128xf32>
    %294 = arith.addf %292, %293 : vector<2x128xf32>
    %295 = arith.mulf %294, %8 : vector<2x128xf32>
    %296 = math.tanh %295 : vector<2x128xf32>
    %cst_59 = arith.constant 5.000000e-01 : f32
    %297 = vector.broadcast %cst_59 : f32 to vector<2x128xf32>
    %298 = arith.mulf %297, %296 : vector<2x128xf32>
    %cst_60 = arith.constant 5.000000e-01 : f32
    %299 = vector.broadcast %cst_60 : f32 to vector<2x128xf32>
    %300 = arith.addf %298, %299 : vector<2x128xf32>
    %301 = arith.select %5, %296, %300 : vector<2x128xi1>, vector<2x128xf32>
    %302 = vector.extract_strided_slice %301 {offsets = [0, 0], sizes = [2, 32], strides = [1, 1]} : vector<2x128xf32> to vector<2x32xf32>
    %303 = vector.extract_strided_slice %301 {offsets = [0, 32], sizes = [2, 32], strides = [1, 1]} : vector<2x128xf32> to vector<2x32xf32>
    %304 = vector.extract_strided_slice %301 {offsets = [0, 64], sizes = [2, 32], strides = [1, 1]} : vector<2x128xf32> to vector<2x32xf32>
    %305 = vector.extract_strided_slice %301 {offsets = [0, 96], sizes = [2, 32], strides = [1, 1]} : vector<2x128xf32> to vector<2x32xf32>
    %306 = arith.mulf %303, %289 : vector<2x32xf32>
    %307 = arith.mulf %302, %304 : vector<2x32xf32>
    %308 = arith.addf %306, %307 : vector<2x32xf32>
    %309 = math.tanh %308 : vector<2x32xf32>
    %310 = arith.mulf %305, %309 : vector<2x32xf32>
    %311 = vector.extract_strided_slice %16 {offsets = [0, 0], sizes = [2, 128], strides = [1, 1]} : vector<16x128xf32> to vector<2x128xf32>
    %cst_61 = arith.constant dense<0.000000e+00> : vector<2x128xf32>
    %312 = tpu.matmul %310, %175, %cst_61 {dimension_numbers = #tpu.dot_dimension_numbers<[1], [0], [0], [1], [0, 0, 1, 1], [], []>} : vector<2x32xf32>, vector<32x128xf32>, vector<2x128xf32> -> vector<2x128xf32>
    %313 = arith.addf %311, %312 : vector<2x128xf32>
    %314 = arith.mulf %313, %8 : vector<2x128xf32>
    %315 = math.tanh %314 : vector<2x128xf32>
    %cst_62 = arith.constant 5.000000e-01 : f32
    %316 = vector.broadcast %cst_62 : f32 to vector<2x128xf32>
    %317 = arith.mulf %316, %315 : vector<2x128xf32>
    %cst_63 = arith.constant 5.000000e-01 : f32
    %318 = vector.broadcast %cst_63 : f32 to vector<2x128xf32>
    %319 = arith.addf %317, %318 : vector<2x128xf32>
    %320 = arith.select %5, %315, %319 : vector<2x128xi1>, vector<2x128xf32>
    %321 = vector.extract_strided_slice %320 {offsets = [0, 0], sizes = [2, 32], strides = [1, 1]} : vector<2x128xf32> to vector<2x32xf32>
    %322 = vector.extract_strided_slice %320 {offsets = [0, 32], sizes = [2, 32], strides = [1, 1]} : vector<2x128xf32> to vector<2x32xf32>
    %323 = vector.extract_strided_slice %320 {offsets = [0, 64], sizes = [2, 32], strides = [1, 1]} : vector<2x128xf32> to vector<2x32xf32>
    %324 = vector.extract_strided_slice %320 {offsets = [0, 96], sizes = [2, 32], strides = [1, 1]} : vector<2x128xf32> to vector<2x32xf32>
    %325 = arith.mulf %322, %308 : vector<2x32xf32>
    %326 = arith.mulf %321, %323 : vector<2x32xf32>
    %327 = arith.addf %325, %326 : vector<2x32xf32>
    %328 = math.tanh %327 : vector<2x32xf32>
    %329 = arith.mulf %324, %328 : vector<2x32xf32>
    %330 = tpu.concatenate %329, %310, %291, %272, %253, %234, %215, %196 in 0 : vector<2x32xf32>, vector<2x32xf32>, vector<2x32xf32>, vector<2x32xf32>, vector<2x32xf32>, vector<2x32xf32>, vector<2x32xf32>, vector<2x32xf32> -> vector<16x32xf32>
    %331 = tpu.concatenate %173, %330 in 1 : vector<16x32xf32>, vector<16x32xf32> -> vector<16x64xf32>
    %c0_64 = arith.constant 0 : index
    %c0_65 = arith.constant 0 : index
    %332 = vector.load %arg4[%c0_64, %c0_65] : memref<64x256xf32, #tpu.memory_space<vmem>>, vector<64x256xf32>
    %cst_66 = arith.constant dense<0.000000e+00> : vector<16x256xf32>
    %333 = tpu.matmul %331, %332, %cst_66 {dimension_numbers = #tpu.dot_dimension_numbers<[1], [0], [0], [1], [0, 0, 1, 1], [], []>} : vector<16x64xf32>, vector<64x256xf32>, vector<16x256xf32> -> vector<16x256xf32>
    %c0_67 = arith.constant 0 : index
    %c0_68 = arith.constant 0 : index
    %334 = vector.load %arg6[%c0_67, %c0_68] : memref<1x256xf32, #tpu.memory_space<vmem>>, vector<1x256xf32>
    %335 = vector.broadcast %334 : vector<1x256xf32> to vector<16x256xf32>
    %336 = arith.addf %333, %335 : vector<16x256xf32>
    %337 = vector.extract_strided_slice %336 {offsets = [0, 0], sizes = [16, 128], strides = [1, 1]} : vector<16x256xf32> to vector<16x128xf32>
    %338 = vector.extract_strided_slice %336 {offsets = [0, 128], sizes = [16, 128], strides = [1, 1]} : vector<16x256xf32> to vector<16x128xf32>
    %c0_69 = arith.constant 0 : index
    %c0_70 = arith.constant 0 : index
    %c0_71 = arith.constant 0 : index
    %339 = vector.load %arg5[%c0_69, %c0_70, %c0_71] : memref<2x32x128xf32, #tpu.memory_space<vmem>>, vector<1x32x128xf32>
    %340 = vector.shape_cast %339 : vector<1x32x128xf32> to vector<32x128xf32>
    %cst_72 = arith.constant 0.000000e+00 : f32
    %341 = vector.broadcast %cst_72 : f32 to vector<2x32xf32>
    %cst_73 = arith.constant 0.000000e+00 : f32
    %342 = vector.broadcast %cst_73 : f32 to vector<2x32xf32>
    %343 = vector.extract_strided_slice %337 {offsets = [0, 0], sizes = [2, 128], strides = [1, 1]} : vector<16x128xf32> to vector<2x128xf32>
    %cst_74 = arith.constant dense<0.000000e+00> : vector<2x128xf32>
    %344 = tpu.matmul %341, %340, %cst_74 {dimension_numbers = #tpu.dot_dimension_numbers<[1], [0], [0], [1], [0, 0, 1, 1], [], []>} : vector<2x32xf32>, vector<32x128xf32>, vector<2x128xf32> -> vector<2x128xf32>
    %345 = arith.addf %343, %344 : vector<2x128xf32>
    %346 = arith.mulf %345, %8 : vector<2x128xf32>
    %347 = math.tanh %346 : vector<2x128xf32>
    %cst_75 = arith.constant 5.000000e-01 : f32
    %348 = vector.broadcast %cst_75 : f32 to vector<2x128xf32>
    %349 = arith.mulf %348, %347 : vector<2x128xf32>
    %cst_76 = arith.constant 5.000000e-01 : f32
    %350 = vector.broadcast %cst_76 : f32 to vector<2x128xf32>
    %351 = arith.addf %349, %350 : vector<2x128xf32>
    %352 = arith.select %5, %347, %351 : vector<2x128xi1>, vector<2x128xf32>
    %353 = vector.extract_strided_slice %352 {offsets = [0, 0], sizes = [2, 32], strides = [1, 1]} : vector<2x128xf32> to vector<2x32xf32>
    %354 = vector.extract_strided_slice %352 {offsets = [0, 32], sizes = [2, 32], strides = [1, 1]} : vector<2x128xf32> to vector<2x32xf32>
    %355 = vector.extract_strided_slice %352 {offsets = [0, 64], sizes = [2, 32], strides = [1, 1]} : vector<2x128xf32> to vector<2x32xf32>
    %356 = vector.extract_strided_slice %352 {offsets = [0, 96], sizes = [2, 32], strides = [1, 1]} : vector<2x128xf32> to vector<2x32xf32>
    %357 = arith.mulf %354, %342 : vector<2x32xf32>
    %358 = arith.mulf %353, %355 : vector<2x32xf32>
    %359 = arith.addf %357, %358 : vector<2x32xf32>
    %360 = math.tanh %359 : vector<2x32xf32>
    %361 = arith.mulf %356, %360 : vector<2x32xf32>
    %362 = vector.extract_strided_slice %337 {offsets = [2, 0], sizes = [2, 128], strides = [1, 1]} : vector<16x128xf32> to vector<2x128xf32>
    %cst_77 = arith.constant dense<0.000000e+00> : vector<2x128xf32>
    %363 = tpu.matmul %361, %340, %cst_77 {dimension_numbers = #tpu.dot_dimension_numbers<[1], [0], [0], [1], [0, 0, 1, 1], [], []>} : vector<2x32xf32>, vector<32x128xf32>, vector<2x128xf32> -> vector<2x128xf32>
    %364 = arith.addf %362, %363 : vector<2x128xf32>
    %365 = arith.mulf %364, %8 : vector<2x128xf32>
    %366 = math.tanh %365 : vector<2x128xf32>
    %cst_78 = arith.constant 5.000000e-01 : f32
    %367 = vector.broadcast %cst_78 : f32 to vector<2x128xf32>
    %368 = arith.mulf %367, %366 : vector<2x128xf32>
    %cst_79 = arith.constant 5.000000e-01 : f32
    %369 = vector.broadcast %cst_79 : f32 to vector<2x128xf32>
    %370 = arith.addf %368, %369 : vector<2x128xf32>
    %371 = arith.select %5, %366, %370 : vector<2x128xi1>, vector<2x128xf32>
    %372 = vector.extract_strided_slice %371 {offsets = [0, 0], sizes = [2, 32], strides = [1, 1]} : vector<2x128xf32> to vector<2x32xf32>
    %373 = vector.extract_strided_slice %371 {offsets = [0, 32], sizes = [2, 32], strides = [1, 1]} : vector<2x128xf32> to vector<2x32xf32>
    %374 = vector.extract_strided_slice %371 {offsets = [0, 64], sizes = [2, 32], strides = [1, 1]} : vector<2x128xf32> to vector<2x32xf32>
    %375 = vector.extract_strided_slice %371 {offsets = [0, 96], sizes = [2, 32], strides = [1, 1]} : vector<2x128xf32> to vector<2x32xf32>
    %376 = arith.mulf %373, %359 : vector<2x32xf32>
    %377 = arith.mulf %372, %374 : vector<2x32xf32>
    %378 = arith.addf %376, %377 : vector<2x32xf32>
    %379 = math.tanh %378 : vector<2x32xf32>
    %380 = arith.mulf %375, %379 : vector<2x32xf32>
    %381 = vector.extract_strided_slice %337 {offsets = [4, 0], sizes = [2, 128], strides = [1, 1]} : vector<16x128xf32> to vector<2x128xf32>
    %cst_80 = arith.constant dense<0.000000e+00> : vector<2x128xf32>
    %382 = tpu.matmul %380, %340, %cst_80 {dimension_numbers = #tpu.dot_dimension_numbers<[1], [0], [0], [1], [0, 0, 1, 1], [], []>} : vector<2x32xf32>, vector<32x128xf32>, vector<2x128xf32> -> vector<2x128xf32>
    %383 = arith.addf %381, %382 : vector<2x128xf32>
    %384 = arith.mulf %383, %8 : vector<2x128xf32>
    %385 = math.tanh %384 : vector<2x128xf32>
    %cst_81 = arith.constant 5.000000e-01 : f32
    %386 = vector.broadcast %cst_81 : f32 to vector<2x128xf32>
    %387 = arith.mulf %386, %385 : vector<2x128xf32>
    %cst_82 = arith.constant 5.000000e-01 : f32
    %388 = vector.broadcast %cst_82 : f32 to vector<2x128xf32>
    %389 = arith.addf %387, %388 : vector<2x128xf32>
    %390 = arith.select %5, %385, %389 : vector<2x128xi1>, vector<2x128xf32>
    %391 = vector.extract_strided_slice %390 {offsets = [0, 0], sizes = [2, 32], strides = [1, 1]} : vector<2x128xf32> to vector<2x32xf32>
    %392 = vector.extract_strided_slice %390 {offsets = [0, 32], sizes = [2, 32], strides = [1, 1]} : vector<2x128xf32> to vector<2x32xf32>
    %393 = vector.extract_strided_slice %390 {offsets = [0, 64], sizes = [2, 32], strides = [1, 1]} : vector<2x128xf32> to vector<2x32xf32>
    %394 = vector.extract_strided_slice %390 {offsets = [0, 96], sizes = [2, 32], strides = [1, 1]} : vector<2x128xf32> to vector<2x32xf32>
    %395 = arith.mulf %392, %378 : vector<2x32xf32>
    %396 = arith.mulf %391, %393 : vector<2x32xf32>
    %397 = arith.addf %395, %396 : vector<2x32xf32>
    %398 = math.tanh %397 : vector<2x32xf32>
    %399 = arith.mulf %394, %398 : vector<2x32xf32>
    %400 = vector.extract_strided_slice %337 {offsets = [6, 0], sizes = [2, 128], strides = [1, 1]} : vector<16x128xf32> to vector<2x128xf32>
    %cst_83 = arith.constant dense<0.000000e+00> : vector<2x128xf32>
    %401 = tpu.matmul %399, %340, %cst_83 {dimension_numbers = #tpu.dot_dimension_numbers<[1], [0], [0], [1], [0, 0, 1, 1], [], []>} : vector<2x32xf32>, vector<32x128xf32>, vector<2x128xf32> -> vector<2x128xf32>
    %402 = arith.addf %400, %401 : vector<2x128xf32>
    %403 = arith.mulf %402, %8 : vector<2x128xf32>
    %404 = math.tanh %403 : vector<2x128xf32>
    %cst_84 = arith.constant 5.000000e-01 : f32
    %405 = vector.broadcast %cst_84 : f32 to vector<2x128xf32>
    %406 = arith.mulf %405, %404 : vector<2x128xf32>
    %cst_85 = arith.constant 5.000000e-01 : f32
    %407 = vector.broadcast %cst_85 : f32 to vector<2x128xf32>
    %408 = arith.addf %406, %407 : vector<2x128xf32>
    %409 = arith.select %5, %404, %408 : vector<2x128xi1>, vector<2x128xf32>
    %410 = vector.extract_strided_slice %409 {offsets = [0, 0], sizes = [2, 32], strides = [1, 1]} : vector<2x128xf32> to vector<2x32xf32>
    %411 = vector.extract_strided_slice %409 {offsets = [0, 32], sizes = [2, 32], strides = [1, 1]} : vector<2x128xf32> to vector<2x32xf32>
    %412 = vector.extract_strided_slice %409 {offsets = [0, 64], sizes = [2, 32], strides = [1, 1]} : vector<2x128xf32> to vector<2x32xf32>
    %413 = vector.extract_strided_slice %409 {offsets = [0, 96], sizes = [2, 32], strides = [1, 1]} : vector<2x128xf32> to vector<2x32xf32>
    %414 = arith.mulf %411, %397 : vector<2x32xf32>
    %415 = arith.mulf %410, %412 : vector<2x32xf32>
    %416 = arith.addf %414, %415 : vector<2x32xf32>
    %417 = math.tanh %416 : vector<2x32xf32>
    %418 = arith.mulf %413, %417 : vector<2x32xf32>
    %419 = vector.extract_strided_slice %337 {offsets = [8, 0], sizes = [2, 128], strides = [1, 1]} : vector<16x128xf32> to vector<2x128xf32>
    %cst_86 = arith.constant dense<0.000000e+00> : vector<2x128xf32>
    %420 = tpu.matmul %418, %340, %cst_86 {dimension_numbers = #tpu.dot_dimension_numbers<[1], [0], [0], [1], [0, 0, 1, 1], [], []>} : vector<2x32xf32>, vector<32x128xf32>, vector<2x128xf32> -> vector<2x128xf32>
    %421 = arith.addf %419, %420 : vector<2x128xf32>
    %422 = arith.mulf %421, %8 : vector<2x128xf32>
    %423 = math.tanh %422 : vector<2x128xf32>
    %cst_87 = arith.constant 5.000000e-01 : f32
    %424 = vector.broadcast %cst_87 : f32 to vector<2x128xf32>
    %425 = arith.mulf %424, %423 : vector<2x128xf32>
    %cst_88 = arith.constant 5.000000e-01 : f32
    %426 = vector.broadcast %cst_88 : f32 to vector<2x128xf32>
    %427 = arith.addf %425, %426 : vector<2x128xf32>
    %428 = arith.select %5, %423, %427 : vector<2x128xi1>, vector<2x128xf32>
    %429 = vector.extract_strided_slice %428 {offsets = [0, 0], sizes = [2, 32], strides = [1, 1]} : vector<2x128xf32> to vector<2x32xf32>
    %430 = vector.extract_strided_slice %428 {offsets = [0, 32], sizes = [2, 32], strides = [1, 1]} : vector<2x128xf32> to vector<2x32xf32>
    %431 = vector.extract_strided_slice %428 {offsets = [0, 64], sizes = [2, 32], strides = [1, 1]} : vector<2x128xf32> to vector<2x32xf32>
    %432 = vector.extract_strided_slice %428 {offsets = [0, 96], sizes = [2, 32], strides = [1, 1]} : vector<2x128xf32> to vector<2x32xf32>
    %433 = arith.mulf %430, %416 : vector<2x32xf32>
    %434 = arith.mulf %429, %431 : vector<2x32xf32>
    %435 = arith.addf %433, %434 : vector<2x32xf32>
    %436 = math.tanh %435 : vector<2x32xf32>
    %437 = arith.mulf %432, %436 : vector<2x32xf32>
    %438 = vector.extract_strided_slice %337 {offsets = [10, 0], sizes = [2, 128], strides = [1, 1]} : vector<16x128xf32> to vector<2x128xf32>
    %cst_89 = arith.constant dense<0.000000e+00> : vector<2x128xf32>
    %439 = tpu.matmul %437, %340, %cst_89 {dimension_numbers = #tpu.dot_dimension_numbers<[1], [0], [0], [1], [0, 0, 1, 1], [], []>} : vector<2x32xf32>, vector<32x128xf32>, vector<2x128xf32> -> vector<2x128xf32>
    %440 = arith.addf %438, %439 : vector<2x128xf32>
    %441 = arith.mulf %440, %8 : vector<2x128xf32>
    %442 = math.tanh %441 : vector<2x128xf32>
    %cst_90 = arith.constant 5.000000e-01 : f32
    %443 = vector.broadcast %cst_90 : f32 to vector<2x128xf32>
    %444 = arith.mulf %443, %442 : vector<2x128xf32>
    %cst_91 = arith.constant 5.000000e-01 : f32
    %445 = vector.broadcast %cst_91 : f32 to vector<2x128xf32>
    %446 = arith.addf %444, %445 : vector<2x128xf32>
    %447 = arith.select %5, %442, %446 : vector<2x128xi1>, vector<2x128xf32>
    %448 = vector.extract_strided_slice %447 {offsets = [0, 0], sizes = [2, 32], strides = [1, 1]} : vector<2x128xf32> to vector<2x32xf32>
    %449 = vector.extract_strided_slice %447 {offsets = [0, 32], sizes = [2, 32], strides = [1, 1]} : vector<2x128xf32> to vector<2x32xf32>
    %450 = vector.extract_strided_slice %447 {offsets = [0, 64], sizes = [2, 32], strides = [1, 1]} : vector<2x128xf32> to vector<2x32xf32>
    %451 = vector.extract_strided_slice %447 {offsets = [0, 96], sizes = [2, 32], strides = [1, 1]} : vector<2x128xf32> to vector<2x32xf32>
    %452 = arith.mulf %449, %435 : vector<2x32xf32>
    %453 = arith.mulf %448, %450 : vector<2x32xf32>
    %454 = arith.addf %452, %453 : vector<2x32xf32>
    %455 = math.tanh %454 : vector<2x32xf32>
    %456 = arith.mulf %451, %455 : vector<2x32xf32>
    %457 = vector.extract_strided_slice %337 {offsets = [12, 0], sizes = [2, 128], strides = [1, 1]} : vector<16x128xf32> to vector<2x128xf32>
    %cst_92 = arith.constant dense<0.000000e+00> : vector<2x128xf32>
    %458 = tpu.matmul %456, %340, %cst_92 {dimension_numbers = #tpu.dot_dimension_numbers<[1], [0], [0], [1], [0, 0, 1, 1], [], []>} : vector<2x32xf32>, vector<32x128xf32>, vector<2x128xf32> -> vector<2x128xf32>
    %459 = arith.addf %457, %458 : vector<2x128xf32>
    %460 = arith.mulf %459, %8 : vector<2x128xf32>
    %461 = math.tanh %460 : vector<2x128xf32>
    %cst_93 = arith.constant 5.000000e-01 : f32
    %462 = vector.broadcast %cst_93 : f32 to vector<2x128xf32>
    %463 = arith.mulf %462, %461 : vector<2x128xf32>
    %cst_94 = arith.constant 5.000000e-01 : f32
    %464 = vector.broadcast %cst_94 : f32 to vector<2x128xf32>
    %465 = arith.addf %463, %464 : vector<2x128xf32>
    %466 = arith.select %5, %461, %465 : vector<2x128xi1>, vector<2x128xf32>
    %467 = vector.extract_strided_slice %466 {offsets = [0, 0], sizes = [2, 32], strides = [1, 1]} : vector<2x128xf32> to vector<2x32xf32>
    %468 = vector.extract_strided_slice %466 {offsets = [0, 32], sizes = [2, 32], strides = [1, 1]} : vector<2x128xf32> to vector<2x32xf32>
    %469 = vector.extract_strided_slice %466 {offsets = [0, 64], sizes = [2, 32], strides = [1, 1]} : vector<2x128xf32> to vector<2x32xf32>
    %470 = vector.extract_strided_slice %466 {offsets = [0, 96], sizes = [2, 32], strides = [1, 1]} : vector<2x128xf32> to vector<2x32xf32>
    %471 = arith.mulf %468, %454 : vector<2x32xf32>
    %472 = arith.mulf %467, %469 : vector<2x32xf32>
    %473 = arith.addf %471, %472 : vector<2x32xf32>
    %474 = math.tanh %473 : vector<2x32xf32>
    %475 = arith.mulf %470, %474 : vector<2x32xf32>
    %476 = vector.extract_strided_slice %337 {offsets = [14, 0], sizes = [2, 128], strides = [1, 1]} : vector<16x128xf32> to vector<2x128xf32>
    %cst_95 = arith.constant dense<0.000000e+00> : vector<2x128xf32>
    %477 = tpu.matmul %475, %340, %cst_95 {dimension_numbers = #tpu.dot_dimension_numbers<[1], [0], [0], [1], [0, 0, 1, 1], [], []>} : vector<2x32xf32>, vector<32x128xf32>, vector<2x128xf32> -> vector<2x128xf32>
    %478 = arith.addf %476, %477 : vector<2x128xf32>
    %479 = arith.mulf %478, %8 : vector<2x128xf32>
    %480 = math.tanh %479 : vector<2x128xf32>
    %cst_96 = arith.constant 5.000000e-01 : f32
    %481 = vector.broadcast %cst_96 : f32 to vector<2x128xf32>
    %482 = arith.mulf %481, %480 : vector<2x128xf32>
    %cst_97 = arith.constant 5.000000e-01 : f32
    %483 = vector.broadcast %cst_97 : f32 to vector<2x128xf32>
    %484 = arith.addf %482, %483 : vector<2x128xf32>
    %485 = arith.select %5, %480, %484 : vector<2x128xi1>, vector<2x128xf32>
    %486 = vector.extract_strided_slice %485 {offsets = [0, 0], sizes = [2, 32], strides = [1, 1]} : vector<2x128xf32> to vector<2x32xf32>
    %487 = vector.extract_strided_slice %485 {offsets = [0, 32], sizes = [2, 32], strides = [1, 1]} : vector<2x128xf32> to vector<2x32xf32>
    %488 = vector.extract_strided_slice %485 {offsets = [0, 64], sizes = [2, 32], strides = [1, 1]} : vector<2x128xf32> to vector<2x32xf32>
    %489 = vector.extract_strided_slice %485 {offsets = [0, 96], sizes = [2, 32], strides = [1, 1]} : vector<2x128xf32> to vector<2x32xf32>
    %490 = arith.mulf %487, %473 : vector<2x32xf32>
    %491 = arith.mulf %486, %488 : vector<2x32xf32>
    %492 = arith.addf %490, %491 : vector<2x32xf32>
    %493 = math.tanh %492 : vector<2x32xf32>
    %494 = arith.mulf %489, %493 : vector<2x32xf32>
    %495 = tpu.concatenate %361, %380, %399, %418, %437, %456, %475, %494 in 0 : vector<2x32xf32>, vector<2x32xf32>, vector<2x32xf32>, vector<2x32xf32>, vector<2x32xf32>, vector<2x32xf32>, vector<2x32xf32>, vector<2x32xf32> -> vector<16x32xf32>
    %c1_98 = arith.constant 1 : index
    %c0_99 = arith.constant 0 : index
    %c0_100 = arith.constant 0 : index
    %496 = vector.load %arg5[%c1_98, %c0_99, %c0_100] : memref<2x32x128xf32, #tpu.memory_space<vmem>>, vector<1x32x128xf32>
    %497 = vector.shape_cast %496 : vector<1x32x128xf32> to vector<32x128xf32>
    %cst_101 = arith.constant 0.000000e+00 : f32
    %498 = vector.broadcast %cst_101 : f32 to vector<2x32xf32>
    %cst_102 = arith.constant 0.000000e+00 : f32
    %499 = vector.broadcast %cst_102 : f32 to vector<2x32xf32>
    %500 = vector.extract_strided_slice %338 {offsets = [14, 0], sizes = [2, 128], strides = [1, 1]} : vector<16x128xf32> to vector<2x128xf32>
    %cst_103 = arith.constant dense<0.000000e+00> : vector<2x128xf32>
    %501 = tpu.matmul %498, %497, %cst_103 {dimension_numbers = #tpu.dot_dimension_numbers<[1], [0], [0], [1], [0, 0, 1, 1], [], []>} : vector<2x32xf32>, vector<32x128xf32>, vector<2x128xf32> -> vector<2x128xf32>
    %502 = arith.addf %500, %501 : vector<2x128xf32>
    %503 = arith.mulf %502, %8 : vector<2x128xf32>
    %504 = math.tanh %503 : vector<2x128xf32>
    %cst_104 = arith.constant 5.000000e-01 : f32
    %505 = vector.broadcast %cst_104 : f32 to vector<2x128xf32>
    %506 = arith.mulf %505, %504 : vector<2x128xf32>
    %cst_105 = arith.constant 5.000000e-01 : f32
    %507 = vector.broadcast %cst_105 : f32 to vector<2x128xf32>
    %508 = arith.addf %506, %507 : vector<2x128xf32>
    %509 = arith.select %5, %504, %508 : vector<2x128xi1>, vector<2x128xf32>
    %510 = vector.extract_strided_slice %509 {offsets = [0, 0], sizes = [2, 32], strides = [1, 1]} : vector<2x128xf32> to vector<2x32xf32>
    %511 = vector.extract_strided_slice %509 {offsets = [0, 32], sizes = [2, 32], strides = [1, 1]} : vector<2x128xf32> to vector<2x32xf32>
    %512 = vector.extract_strided_slice %509 {offsets = [0, 64], sizes = [2, 32], strides = [1, 1]} : vector<2x128xf32> to vector<2x32xf32>
    %513 = vector.extract_strided_slice %509 {offsets = [0, 96], sizes = [2, 32], strides = [1, 1]} : vector<2x128xf32> to vector<2x32xf32>
    %514 = arith.mulf %511, %499 : vector<2x32xf32>
    %515 = arith.mulf %510, %512 : vector<2x32xf32>
    %516 = arith.addf %514, %515 : vector<2x32xf32>
    %517 = math.tanh %516 : vector<2x32xf32>
    %518 = arith.mulf %513, %517 : vector<2x32xf32>
    %519 = vector.extract_strided_slice %338 {offsets = [12, 0], sizes = [2, 128], strides = [1, 1]} : vector<16x128xf32> to vector<2x128xf32>
    %cst_106 = arith.constant dense<0.000000e+00> : vector<2x128xf32>
    %520 = tpu.matmul %518, %497, %cst_106 {dimension_numbers = #tpu.dot_dimension_numbers<[1], [0], [0], [1], [0, 0, 1, 1], [], []>} : vector<2x32xf32>, vector<32x128xf32>, vector<2x128xf32> -> vector<2x128xf32>
    %521 = arith.addf %519, %520 : vector<2x128xf32>
    %522 = arith.mulf %521, %8 : vector<2x128xf32>
    %523 = math.tanh %522 : vector<2x128xf32>
    %cst_107 = arith.constant 5.000000e-01 : f32
    %524 = vector.broadcast %cst_107 : f32 to vector<2x128xf32>
    %525 = arith.mulf %524, %523 : vector<2x128xf32>
    %cst_108 = arith.constant 5.000000e-01 : f32
    %526 = vector.broadcast %cst_108 : f32 to vector<2x128xf32>
    %527 = arith.addf %525, %526 : vector<2x128xf32>
    %528 = arith.select %5, %523, %527 : vector<2x128xi1>, vector<2x128xf32>
    %529 = vector.extract_strided_slice %528 {offsets = [0, 0], sizes = [2, 32], strides = [1, 1]} : vector<2x128xf32> to vector<2x32xf32>
    %530 = vector.extract_strided_slice %528 {offsets = [0, 32], sizes = [2, 32], strides = [1, 1]} : vector<2x128xf32> to vector<2x32xf32>
    %531 = vector.extract_strided_slice %528 {offsets = [0, 64], sizes = [2, 32], strides = [1, 1]} : vector<2x128xf32> to vector<2x32xf32>
    %532 = vector.extract_strided_slice %528 {offsets = [0, 96], sizes = [2, 32], strides = [1, 1]} : vector<2x128xf32> to vector<2x32xf32>
    %533 = arith.mulf %530, %516 : vector<2x32xf32>
    %534 = arith.mulf %529, %531 : vector<2x32xf32>
    %535 = arith.addf %533, %534 : vector<2x32xf32>
    %536 = math.tanh %535 : vector<2x32xf32>
    %537 = arith.mulf %532, %536 : vector<2x32xf32>
    %538 = vector.extract_strided_slice %338 {offsets = [10, 0], sizes = [2, 128], strides = [1, 1]} : vector<16x128xf32> to vector<2x128xf32>
    %cst_109 = arith.constant dense<0.000000e+00> : vector<2x128xf32>
    %539 = tpu.matmul %537, %497, %cst_109 {dimension_numbers = #tpu.dot_dimension_numbers<[1], [0], [0], [1], [0, 0, 1, 1], [], []>} : vector<2x32xf32>, vector<32x128xf32>, vector<2x128xf32> -> vector<2x128xf32>
    %540 = arith.addf %538, %539 : vector<2x128xf32>
    %541 = arith.mulf %540, %8 : vector<2x128xf32>
    %542 = math.tanh %541 : vector<2x128xf32>
    %cst_110 = arith.constant 5.000000e-01 : f32
    %543 = vector.broadcast %cst_110 : f32 to vector<2x128xf32>
    %544 = arith.mulf %543, %542 : vector<2x128xf32>
    %cst_111 = arith.constant 5.000000e-01 : f32
    %545 = vector.broadcast %cst_111 : f32 to vector<2x128xf32>
    %546 = arith.addf %544, %545 : vector<2x128xf32>
    %547 = arith.select %5, %542, %546 : vector<2x128xi1>, vector<2x128xf32>
    %548 = vector.extract_strided_slice %547 {offsets = [0, 0], sizes = [2, 32], strides = [1, 1]} : vector<2x128xf32> to vector<2x32xf32>
    %549 = vector.extract_strided_slice %547 {offsets = [0, 32], sizes = [2, 32], strides = [1, 1]} : vector<2x128xf32> to vector<2x32xf32>
    %550 = vector.extract_strided_slice %547 {offsets = [0, 64], sizes = [2, 32], strides = [1, 1]} : vector<2x128xf32> to vector<2x32xf32>
    %551 = vector.extract_strided_slice %547 {offsets = [0, 96], sizes = [2, 32], strides = [1, 1]} : vector<2x128xf32> to vector<2x32xf32>
    %552 = arith.mulf %549, %535 : vector<2x32xf32>
    %553 = arith.mulf %548, %550 : vector<2x32xf32>
    %554 = arith.addf %552, %553 : vector<2x32xf32>
    %555 = math.tanh %554 : vector<2x32xf32>
    %556 = arith.mulf %551, %555 : vector<2x32xf32>
    %557 = vector.extract_strided_slice %338 {offsets = [8, 0], sizes = [2, 128], strides = [1, 1]} : vector<16x128xf32> to vector<2x128xf32>
    %cst_112 = arith.constant dense<0.000000e+00> : vector<2x128xf32>
    %558 = tpu.matmul %556, %497, %cst_112 {dimension_numbers = #tpu.dot_dimension_numbers<[1], [0], [0], [1], [0, 0, 1, 1], [], []>} : vector<2x32xf32>, vector<32x128xf32>, vector<2x128xf32> -> vector<2x128xf32>
    %559 = arith.addf %557, %558 : vector<2x128xf32>
    %560 = arith.mulf %559, %8 : vector<2x128xf32>
    %561 = math.tanh %560 : vector<2x128xf32>
    %cst_113 = arith.constant 5.000000e-01 : f32
    %562 = vector.broadcast %cst_113 : f32 to vector<2x128xf32>
    %563 = arith.mulf %562, %561 : vector<2x128xf32>
    %cst_114 = arith.constant 5.000000e-01 : f32
    %564 = vector.broadcast %cst_114 : f32 to vector<2x128xf32>
    %565 = arith.addf %563, %564 : vector<2x128xf32>
    %566 = arith.select %5, %561, %565 : vector<2x128xi1>, vector<2x128xf32>
    %567 = vector.extract_strided_slice %566 {offsets = [0, 0], sizes = [2, 32], strides = [1, 1]} : vector<2x128xf32> to vector<2x32xf32>
    %568 = vector.extract_strided_slice %566 {offsets = [0, 32], sizes = [2, 32], strides = [1, 1]} : vector<2x128xf32> to vector<2x32xf32>
    %569 = vector.extract_strided_slice %566 {offsets = [0, 64], sizes = [2, 32], strides = [1, 1]} : vector<2x128xf32> to vector<2x32xf32>
    %570 = vector.extract_strided_slice %566 {offsets = [0, 96], sizes = [2, 32], strides = [1, 1]} : vector<2x128xf32> to vector<2x32xf32>
    %571 = arith.mulf %568, %554 : vector<2x32xf32>
    %572 = arith.mulf %567, %569 : vector<2x32xf32>
    %573 = arith.addf %571, %572 : vector<2x32xf32>
    %574 = math.tanh %573 : vector<2x32xf32>
    %575 = arith.mulf %570, %574 : vector<2x32xf32>
    %576 = vector.extract_strided_slice %338 {offsets = [6, 0], sizes = [2, 128], strides = [1, 1]} : vector<16x128xf32> to vector<2x128xf32>
    %cst_115 = arith.constant dense<0.000000e+00> : vector<2x128xf32>
    %577 = tpu.matmul %575, %497, %cst_115 {dimension_numbers = #tpu.dot_dimension_numbers<[1], [0], [0], [1], [0, 0, 1, 1], [], []>} : vector<2x32xf32>, vector<32x128xf32>, vector<2x128xf32> -> vector<2x128xf32>
    %578 = arith.addf %576, %577 : vector<2x128xf32>
    %579 = arith.mulf %578, %8 : vector<2x128xf32>
    %580 = math.tanh %579 : vector<2x128xf32>
    %cst_116 = arith.constant 5.000000e-01 : f32
    %581 = vector.broadcast %cst_116 : f32 to vector<2x128xf32>
    %582 = arith.mulf %581, %580 : vector<2x128xf32>
    %cst_117 = arith.constant 5.000000e-01 : f32
    %583 = vector.broadcast %cst_117 : f32 to vector<2x128xf32>
    %584 = arith.addf %582, %583 : vector<2x128xf32>
    %585 = arith.select %5, %580, %584 : vector<2x128xi1>, vector<2x128xf32>
    %586 = vector.extract_strided_slice %585 {offsets = [0, 0], sizes = [2, 32], strides = [1, 1]} : vector<2x128xf32> to vector<2x32xf32>
    %587 = vector.extract_strided_slice %585 {offsets = [0, 32], sizes = [2, 32], strides = [1, 1]} : vector<2x128xf32> to vector<2x32xf32>
    %588 = vector.extract_strided_slice %585 {offsets = [0, 64], sizes = [2, 32], strides = [1, 1]} : vector<2x128xf32> to vector<2x32xf32>
    %589 = vector.extract_strided_slice %585 {offsets = [0, 96], sizes = [2, 32], strides = [1, 1]} : vector<2x128xf32> to vector<2x32xf32>
    %590 = arith.mulf %587, %573 : vector<2x32xf32>
    %591 = arith.mulf %586, %588 : vector<2x32xf32>
    %592 = arith.addf %590, %591 : vector<2x32xf32>
    %593 = math.tanh %592 : vector<2x32xf32>
    %594 = arith.mulf %589, %593 : vector<2x32xf32>
    %595 = vector.extract_strided_slice %338 {offsets = [4, 0], sizes = [2, 128], strides = [1, 1]} : vector<16x128xf32> to vector<2x128xf32>
    %cst_118 = arith.constant dense<0.000000e+00> : vector<2x128xf32>
    %596 = tpu.matmul %594, %497, %cst_118 {dimension_numbers = #tpu.dot_dimension_numbers<[1], [0], [0], [1], [0, 0, 1, 1], [], []>} : vector<2x32xf32>, vector<32x128xf32>, vector<2x128xf32> -> vector<2x128xf32>
    %597 = arith.addf %595, %596 : vector<2x128xf32>
    %598 = arith.mulf %597, %8 : vector<2x128xf32>
    %599 = math.tanh %598 : vector<2x128xf32>
    %cst_119 = arith.constant 5.000000e-01 : f32
    %600 = vector.broadcast %cst_119 : f32 to vector<2x128xf32>
    %601 = arith.mulf %600, %599 : vector<2x128xf32>
    %cst_120 = arith.constant 5.000000e-01 : f32
    %602 = vector.broadcast %cst_120 : f32 to vector<2x128xf32>
    %603 = arith.addf %601, %602 : vector<2x128xf32>
    %604 = arith.select %5, %599, %603 : vector<2x128xi1>, vector<2x128xf32>
    %605 = vector.extract_strided_slice %604 {offsets = [0, 0], sizes = [2, 32], strides = [1, 1]} : vector<2x128xf32> to vector<2x32xf32>
    %606 = vector.extract_strided_slice %604 {offsets = [0, 32], sizes = [2, 32], strides = [1, 1]} : vector<2x128xf32> to vector<2x32xf32>
    %607 = vector.extract_strided_slice %604 {offsets = [0, 64], sizes = [2, 32], strides = [1, 1]} : vector<2x128xf32> to vector<2x32xf32>
    %608 = vector.extract_strided_slice %604 {offsets = [0, 96], sizes = [2, 32], strides = [1, 1]} : vector<2x128xf32> to vector<2x32xf32>
    %609 = arith.mulf %606, %592 : vector<2x32xf32>
    %610 = arith.mulf %605, %607 : vector<2x32xf32>
    %611 = arith.addf %609, %610 : vector<2x32xf32>
    %612 = math.tanh %611 : vector<2x32xf32>
    %613 = arith.mulf %608, %612 : vector<2x32xf32>
    %614 = vector.extract_strided_slice %338 {offsets = [2, 0], sizes = [2, 128], strides = [1, 1]} : vector<16x128xf32> to vector<2x128xf32>
    %cst_121 = arith.constant dense<0.000000e+00> : vector<2x128xf32>
    %615 = tpu.matmul %613, %497, %cst_121 {dimension_numbers = #tpu.dot_dimension_numbers<[1], [0], [0], [1], [0, 0, 1, 1], [], []>} : vector<2x32xf32>, vector<32x128xf32>, vector<2x128xf32> -> vector<2x128xf32>
    %616 = arith.addf %614, %615 : vector<2x128xf32>
    %617 = arith.mulf %616, %8 : vector<2x128xf32>
    %618 = math.tanh %617 : vector<2x128xf32>
    %cst_122 = arith.constant 5.000000e-01 : f32
    %619 = vector.broadcast %cst_122 : f32 to vector<2x128xf32>
    %620 = arith.mulf %619, %618 : vector<2x128xf32>
    %cst_123 = arith.constant 5.000000e-01 : f32
    %621 = vector.broadcast %cst_123 : f32 to vector<2x128xf32>
    %622 = arith.addf %620, %621 : vector<2x128xf32>
    %623 = arith.select %5, %618, %622 : vector<2x128xi1>, vector<2x128xf32>
    %624 = vector.extract_strided_slice %623 {offsets = [0, 0], sizes = [2, 32], strides = [1, 1]} : vector<2x128xf32> to vector<2x32xf32>
    %625 = vector.extract_strided_slice %623 {offsets = [0, 32], sizes = [2, 32], strides = [1, 1]} : vector<2x128xf32> to vector<2x32xf32>
    %626 = vector.extract_strided_slice %623 {offsets = [0, 64], sizes = [2, 32], strides = [1, 1]} : vector<2x128xf32> to vector<2x32xf32>
    %627 = vector.extract_strided_slice %623 {offsets = [0, 96], sizes = [2, 32], strides = [1, 1]} : vector<2x128xf32> to vector<2x32xf32>
    %628 = arith.mulf %625, %611 : vector<2x32xf32>
    %629 = arith.mulf %624, %626 : vector<2x32xf32>
    %630 = arith.addf %628, %629 : vector<2x32xf32>
    %631 = math.tanh %630 : vector<2x32xf32>
    %632 = arith.mulf %627, %631 : vector<2x32xf32>
    %633 = vector.extract_strided_slice %338 {offsets = [0, 0], sizes = [2, 128], strides = [1, 1]} : vector<16x128xf32> to vector<2x128xf32>
    %cst_124 = arith.constant dense<0.000000e+00> : vector<2x128xf32>
    %634 = tpu.matmul %632, %497, %cst_124 {dimension_numbers = #tpu.dot_dimension_numbers<[1], [0], [0], [1], [0, 0, 1, 1], [], []>} : vector<2x32xf32>, vector<32x128xf32>, vector<2x128xf32> -> vector<2x128xf32>
    %635 = arith.addf %633, %634 : vector<2x128xf32>
    %636 = arith.mulf %635, %8 : vector<2x128xf32>
    %637 = math.tanh %636 : vector<2x128xf32>
    %cst_125 = arith.constant 5.000000e-01 : f32
    %638 = vector.broadcast %cst_125 : f32 to vector<2x128xf32>
    %639 = arith.mulf %638, %637 : vector<2x128xf32>
    %cst_126 = arith.constant 5.000000e-01 : f32
    %640 = vector.broadcast %cst_126 : f32 to vector<2x128xf32>
    %641 = arith.addf %639, %640 : vector<2x128xf32>
    %642 = arith.select %5, %637, %641 : vector<2x128xi1>, vector<2x128xf32>
    %643 = vector.extract_strided_slice %642 {offsets = [0, 0], sizes = [2, 32], strides = [1, 1]} : vector<2x128xf32> to vector<2x32xf32>
    %644 = vector.extract_strided_slice %642 {offsets = [0, 32], sizes = [2, 32], strides = [1, 1]} : vector<2x128xf32> to vector<2x32xf32>
    %645 = vector.extract_strided_slice %642 {offsets = [0, 64], sizes = [2, 32], strides = [1, 1]} : vector<2x128xf32> to vector<2x32xf32>
    %646 = vector.extract_strided_slice %642 {offsets = [0, 96], sizes = [2, 32], strides = [1, 1]} : vector<2x128xf32> to vector<2x32xf32>
    %647 = arith.mulf %644, %630 : vector<2x32xf32>
    %648 = arith.mulf %643, %645 : vector<2x32xf32>
    %649 = arith.addf %647, %648 : vector<2x32xf32>
    %650 = math.tanh %649 : vector<2x32xf32>
    %651 = arith.mulf %646, %650 : vector<2x32xf32>
    %652 = tpu.concatenate %651, %632, %613, %594, %575, %556, %537, %518 in 0 : vector<2x32xf32>, vector<2x32xf32>, vector<2x32xf32>, vector<2x32xf32>, vector<2x32xf32>, vector<2x32xf32>, vector<2x32xf32>, vector<2x32xf32> -> vector<16x32xf32>
    %653 = tpu.concatenate %495, %652 in 1 : vector<16x32xf32>, vector<16x32xf32> -> vector<16x64xf32>
    %c0_127 = arith.constant 0 : index
    %c0_128 = arith.constant 0 : index
    %654 = vector.load %arg7[%c0_127, %c0_128] : memref<64x16xf32, #tpu.memory_space<vmem>>, vector<64x16xf32>
    %cst_129 = arith.constant dense<0.000000e+00> : vector<16x16xf32>
    %655 = tpu.matmul %653, %654, %cst_129 {dimension_numbers = #tpu.dot_dimension_numbers<[1], [0], [0], [1], [0, 0, 1, 1], [], []>} : vector<16x64xf32>, vector<64x16xf32>, vector<16x16xf32> -> vector<16x16xf32>
    %c0_130 = arith.constant 0 : index
    %c0_131 = arith.constant 0 : index
    %656 = vector.load %arg8[%c0_130, %c0_131] : memref<1x16xf32, #tpu.memory_space<vmem>>, vector<1x16xf32>
    %657 = vector.broadcast %656 : vector<1x16xf32> to vector<16x16xf32>
    %658 = arith.addf %655, %657 : vector<16x16xf32>
    %c0_132 = arith.constant 0 : index
    %c0_133 = arith.constant 0 : index
    %659 = vector.load %arg9[%c0_132, %c0_133] : memref<16x16xf32, #tpu.memory_space<vmem>>, vector<16x16xf32>
    tpu.vector_store %arg9[%c0_132, %c0_133], %658 {strides = array<i32>} : memref<16x16xf32, #tpu.memory_space<vmem>>, vector<16x16xf32>,
    return
  }
}

</mosaic_0001>

<bundles_post_ra>
// kernel: _lambda_.1
= control target key start
LH: loop header
LB: loop body
LE: loop exit
PB: predicated region body
PF: predicated region fallthrough
CT: control target
= control target key end

     0   :  { %14 = vsyncpa [#allocation3], 0  ;;  %s5715_s0 = inlined_call_operand.vmem [shape: f32[16,16], index: 0, kind: input, shape index: {}]   ;;  %s5716_s1 = inlined_call_operand.hbm [shape: f32[16,256], index: 1, kind: input, shape index: {}]   ;;  %s5717_s2 = inlined_call_operand.vmem [shape: f32[2,32,128], index: 2, kind: input, shape index: {}]   ;;  %s5718_s3 = inlined_call_operand.hbm [shape: f32[1,256], index: 3, kind: input, shape index: {}]   ;;  %s5719_s4 = inlined_call_operand.hbm [shape: f32[64,256], index: 4, kind: input, shape index: {}]   ;;  %s5720_s5 = inlined_call_operand.hbm [shape: f32[2,32,128], index: 5, kind: input, shape index: {}]   ;;  %s5721_s6 = inlined_call_operand.hbm [shape: f32[1,256], index: 6, kind: input, shape index: {}]   ;;  %s5722_s7 = inlined_call_operand.vmem [shape: f32[64,16], index: 7, kind: input, shape index: {}]   ;;  %s5723_s8 = inlined_call_operand.hbm [shape: f32[1,16], index: 8, kind: input, shape index: {}]   ;;  %s5724_s9 = inlined_call_operand.hbm [shape: f32[16,16], index: 9, kind: output, shape index: {}]  }
   0x1   :  { %15 = vsyncpa [#allocation6], 0 }
   0x2   :  { %16 = vsyncpa [#allocation9], 0 }
   0x3   :  { %17 = vsyncpa [#allocation12], 0 }
   0x4   :  { %18 = vsyncpa [#allocation4], 0  ;;  %s4700_s30 = smov [#allocation5]   ;;  %s4701_s11 = smov [#allocation8]  }
   0x5   :  { %s41_s10 = sshll.u32 %s4700_s30, 4  ;;  %s62_s12 = sshll.u32 %s4701_s11, 4  ;;  %s42_s10 = int_to_ptr.vmem [resolvable:$true] %s41_s10  ;;  %s63_s12 = int_to_ptr.vmem [resolvable:$true] %s62_s12 }
   0x6   :  { %s4558_s13 = scalar_lea.vmem %s42_s10, 32  ;;  %p4563_p1 = scmp.lt.s32.totalorder %s42_s10, %s42_s10 }
   0x7   :  { %p4559_p0 = scmp.ne.s32.totalorder %s42_s10, %s4558_s13  ;;  %p4564_p2 = scmp.lt.s32.totalorder %s4558_s13, %s4558_s13 }
   0x9   :  { %p4565_p3 = por %p4564_p2, %p4563_p1 }
   0xb   :  { %p4566_p4 = pnand %p4565_p3, %p4559_p0 }
   0xd   :  { %4569 = shalt.err (!%p4566_p4)
}
   0xe   :  { %44 = dma.hbm_to_vmem [thread:$0]  %s5718_s3, 32, %s42_s10, [#allocation6]  }
   0xf   :  { %s4578_s16 = scalar_lea.vmem %s63_s12, 1024  ;;  %p4583_p6 = scmp.lt.s32.totalorder %s63_s12, %s63_s12 }
  0x10   :  { %p4579_p5 = scmp.ne.s32.totalorder %s63_s12, %s4578_s16  ;;  %p4584_p7 = scmp.lt.s32.totalorder %s4578_s16, %s4578_s16 }
  0x12   :  { %p4585_p8 = por %p4584_p7, %p4583_p6 }
  0x14   :  { %p4586_p9 = pnand %p4585_p8, %p4579_p5 }
  0x16   :  { %4589 = shalt.err (!%p4586_p9)
}
  0x17   :  { %s4702_s17 = smov 128   ;;  %s4703_s18 = smov 8  }
  0x18   :  { %68 = dma.hbm_to_vmem [thread:$0]  %s5720_s5, 1024, %s63_s12, [#allocation9], %s4702_s17, %s4702_s17, %s4703_s18  }
  0x19   :  { %s4704_s21 = smov [#allocation2]  }
  0x1a   :  { %s26_s22 = sshll.u32 %s4704_s21, 4  ;;  %s27_s22 = int_to_ptr.vmem [resolvable:$true] %s26_s22 }
  0x1b   :  { %s4598_s3 = scalar_lea.vmem %s27_s22, 512  ;;  %p4603_p11 = scmp.lt.s32.totalorder %s27_s22, %s27_s22 }
  0x1c   :  { %p4599_p10 = scmp.ne.s32.totalorder %s27_s22, %s4598_s3  ;;  %p4604_p12 = scmp.lt.s32.totalorder %s4598_s3, %s4598_s3 }
  0x1e   :  { %p4605_p13 = por %p4604_p12, %p4603_p11 }
  0x20   :  { %p4606_p0 = pnand %p4605_p13, %p4599_p10 }
  0x22   :  { %4609 = shalt.err (!%p4606_p0)
}
  0x23   :  { %s4705_s23 = smov 256   ;;  %s4706_s24 = smov 16  }
  0x24   :  { %32 = dma.hbm_to_vmem [thread:$0]  %s5716_s1, 512, %s27_s22, [#allocation3], %s4705_s23, %s4705_s23, %s4706_s24  }
  0x25   :  { %s4707_s27 = smov [#allocation7]   ;;  %s4708_s5 = smov [#allocation10]  }
  0x26   :  { %s50_s28 = sshll.u32 %s4707_s27, 4  ;;  %s75_s29 = sshll.u32 %s4708_s5, 4  ;;  %s51_s28 = int_to_ptr.vmem [resolvable:$true] %s50_s28  ;;  %s76_s29 = int_to_ptr.vmem [resolvable:$true] %s75_s29 }
  0x27   :  { %s4618_s30 = scalar_lea.vmem %s51_s28, 2048  ;;  %p4623_p2 = scmp.lt.s32.totalorder %s51_s28, %s51_s28 }
  0x28   :  { %p4619_p1 = scmp.ne.s32.totalorder %s51_s28, %s4618_s30  ;;  %p4624_p3 = scmp.lt.s32.totalorder %s4618_s30, %s4618_s30 }
  0x2a   :  { %p4625_p4 = por %p4624_p3, %p4623_p2 }
  0x2c   :  { %p4626_p5 = pnand %p4625_p4, %p4619_p1 }
  0x2e   :  { %4629 = shalt.err (!%p4626_p5)
}
  0x2f   :  { %56 = dma.hbm_to_vmem [thread:$0]  %s5719_s4, 2048, %s51_s28, [#allocation6], %s4705_s23, %s4705_s23, %s4706_s24  }
  0x30   :  { %s4638_s12 = scalar_lea.vmem %s76_s29, 32  ;;  %p4643_p7 = scmp.lt.s32.totalorder %s76_s29, %s76_s29 }
  0x31   :  { %p4639_p6 = scmp.ne.s32.totalorder %s76_s29, %s4638_s12  ;;  %p4644_p8 = scmp.lt.s32.totalorder %s4638_s12, %s4638_s12 }
  0x33   :  { %p4645_p9 = por %p4644_p8, %p4643_p7 }
  0x35   :  { %p4646_p10 = pnand %p4645_p9, %p4639_p6 }
  0x37   :  { %4649 = shalt.err (!%p4646_p10)
}
  0x38   :  { %78 = dma.hbm_to_vmem [thread:$0]  %s5721_s6, 32, %s76_s29, [#allocation9]  }
  0x39   :  { %s4709_s14 = smov [#allocation11]  }
  0x3a   :  { %s87_s15 = sshll.u32 %s4709_s14, 4  ;;  %s88_s15 = int_to_ptr.vmem [resolvable:$true] %s87_s15 }
  0x3b   :  { %s4658_s16 = scalar_lea.vmem %s88_s15, 16  ;;  %s4662_s19 = scalar_lea.vmem %s88_s15, 32 }
  0x3c   :  { %p4659_p11 = scmp.ne.s32.totalorder %s88_s15, %s4658_s16  ;;  %p4663_p12 = scmp.lt.s32.totalorder %s88_s15, %s88_s15 }
  0x3d   :  { %p4664_p13 = scmp.lt.s32.totalorder %s4662_s19, %s4658_s16 }
  0x3f   :  { %p4665_p0 = por %p4664_p13, %p4663_p12 }
  0x41   :  { %p4666_p1 = pnand %p4665_p0, %p4659_p11 }
  0x43   :  { %4669 = shalt.err (!%p4666_p1)
}
  0x44   :  { %90 = dma.hbm_to_vmem [thread:$0]  %s5723_s8, 16, %s88_s15, [#allocation12]  }
  0x45   :  { %4690 = dma.done.wait [#allocation3], 512  }
  0x46   :  { %4691 = vsyncadd [#allocation3], 4294966784 }
  0x47   :  { %4692 = dma.done.wait [#allocation6], 2080  }
  0x48   :  { %4693 = vsyncadd [#allocation6], 4294965216 }
  0x49   :  { %4694 = dma.done.wait [#allocation9], 1056  }
  0x4a   :  { %4695 = vsyncadd [#allocation9], 4294966240 }
  0x4b   :  { %4696 = dma.done.wait [#allocation12], 16  }
  0x4c   :  { %4697 = vsyncadd [#allocation12], 4294967280  ;;  %v4710_v0 = vmov 0.0   ;;  %vm4711_vm0 = vmmov 0   ;;  %v120_v1 = vld [vmem:[#allocation2 + $0x18] sm:$0xff]  ;;  %v119_v2 = vld [vmem:[#allocation2 + $0x10] sm:$0xff]  ;;  %v109_v11 = vlaneseq }
  0x4d   :  { %204 = vmatprep.mubr.f32.mxu0 %v4710_v0  ;;  %4057 = vmatprep.subr.mxu1 %v4710_v0  ;;  %v118_v3 = vld [vmem:[#allocation2 + $0x8] sm:$0xff]  ;;  %v117_v4 = vld [vmem:[#allocation2] sm:$0xff]  ;;  %v4794_v5 = vld [vmem:[%s5717_s2 + $0x18] sm:$0xff]  ;;  %vm133_vm1 = vcmask 130048   ;;  %v4712_v27 = vmov 0.5   ;;  %s4714_s29 = smov 32  }
  0x4e   :  { %4065 = vmatprep.mubr.msk.f32.mxu1 %vm4711_vm0, %v4710_v0  ;;  %168 = vmatprep.subr.mxu0 %v120_v1  ;;  %v115_v6 = vld [vmem:[%s5715_s0] sm:$0xff]  ;;  %v4803_v7 = vld [vmem:[%s5717_s2 + $0x10] sm:$0xff]  ;;  %v116_v8 = vld [vmem:[%s5715_s0 + $0x8] sm:$0xff]  ;;  %v4850_v12 = vshrl.u32 %v109_v11, 7  ;;  %v110_v14 = vand.u32 127, %v109_v11  ;;  %s4713_s0 = smov 64  }
  0x4f   :  { %169 = vmatpush1.msra.mxu0 %v119_v2  ;;  %4058 = vmatpush3.msra.mxu1 %v4794_v5  ;;  %v4818_v9 = vld [vmem:[%s5717_s2 + $0x8] sm:$0xff]  ;;  %v4828_v10 = vld [vmem:[%s5717_s2] sm:$0xff]  ;;  %vm221_vm5 = vcmask 261120   ;;  %vm1048_vm6 = vcmask 1041408   ;;  %vm1050_vm7 = vcmask 1043456   ;;  %vm1052_vm8 = vcmask 1045504  }
  0x50   :  { %170 = vmatprep.subr.mxu0 %v118_v3  ;;  %4059 = vmatprep.subr.mxu1 %v4710_v0  ;;  %v129_v13 = vsub.s32 1, %v4850_v12  ;;  %v121_v15 = vld [vmem:[#allocation5] sm:$0x3]  ;;  %v125_v16 = vsub.s32 0, %v4850_v12  ;;  %vm111_vm2 = vcmp.ge.s32.totalorder %v110_v14, 64  ;;  %vm112_vm3 = vcmp.lt.s32.totalorder %v110_v14, 96 }
  0x51   :  { %171 = vmatpush1.msra.mxu0 %v117_v4  ;;  %4060 = vmatpush3.msra.mxu1 %v4803_v7  ;;  %vm4863_vm4 = vmand %vm111_vm2, %vm112_vm3  ;;  %vm1938_vm9 = vcmask 523264   ;;  %v3714_v23 = vld [vmem:[%s5722_s7 + $0x30] sm:$0xff] }
  0x52   :  { %3826 = vmatmul.mubr.msk.f32.vlgmr.msra.gmra.mxu0 %vm133_vm1, %v115_v6  ;;  %4035 = vmatprep.subr.mxu0 %v4710_v0  ;;  %v4856_v17 = vrot.slane %v121_v15, %v129_v13  ;;  %v126_v20 = vrot.slane %v121_v15, %v125_v16  ;;  %v4875_v28 = vsel %vm4863_vm4, 1.0, %v4712_v27 }
  0x53   :  { %4036 = vmatpush3.msra.mxu0 %v4794_v5  ;;  %210 = vmatprep.mubr.f32.mxu0 %v4710_v0 }
  0x54   :  { %4037 = vmatprep.subr.mxu0 %v4710_v0  ;;  %4061 = vmatprep.subr.mxu1 %v4710_v0 }
  0x55   :  { %4038 = vmatpush3.msra.mxu0 %v4803_v7  ;;  %4062 = vmatpush3.msra.mxu1 %v4818_v9 }
  0x56   :  { %3827 = vmatmul.mubr.msk.f32.gmra.mxu0 %vm133_vm1, %v116_v8  ;;  %4039 = vmatprep.subr.mxu0 %v4710_v0 }
  0x57   :  { %4040 = vmatpush3.msra.mxu0 %v4818_v9  ;;  %4043 = vmatprep.mubr.msk.f32.mxu0 %vm4711_vm0, %v4710_v0 }
  0x58   :  { %4041 = vmatprep.subr.mxu0 %v4710_v0  ;;  %4063 = vmatprep.subr.mxu1 %v4710_v0 }
  0x59   :  { %4042 = vmatpush3.msra.mxu0 %v4828_v10  ;;  %4064 = vmatpush3.msra.mxu1 %v4828_v10 }
  0x5a   :  { %4044 = vmatmul.mubr.f32.vlgmr.msra.gmra.mxu0 %v4710_v0  ;;  %4046 = vmatprep.subr.mxu0 %v4710_v0 }
  0x5b   :  { %4047 = vmatpush3.msra.mxu0 %v4794_v5  ;;  %4054 = vmatprep.mubr.msk.f32.mxu0 %vm4711_vm0, %v4710_v0 }
  0x5c   :  { %4048 = vmatprep.subr.mxu0 %v4710_v0  ;;  %4079 = vmatprep.subr.mxu1 %v4710_v0 }
  0x5d   :  { %4049 = vmatpush3.msra.mxu0 %v4803_v7 }
  0x5e   :  { %4050 = vmatprep.subr.mxu0 %v4710_v0 }
  0x5f   :  { %4051 = vmatpush3.msra.mxu0 %v4818_v9 }
  0x60   :  { %4052 = vmatprep.subr.mxu0 %v4710_v0 }
  0x61   :  { %4053 = vmatpush3.msra.mxu0 %v4828_v10 }
  0x62   :  { %4068 = vmatprep.subr.mxu0 %v4710_v0 }
 0x112   :  { %v206_v18 = vpop.f32.mrf.mxu0 }
 0x113   :  { %v4871_v26 = vadd.f32 %v206_v18, %v126_v20 }
 0x114   :  { %v208_v19 = vpop.f32.mrf.mxu0 }
 0x115   :  { %v4861_v21 = vadd.f32 %v208_v19, %v4856_v17 }
 0x116   :  { %v212_v22 = vpop.f32.mrf.mxu0 }
 0x117   :  { %v4867_v24 = vadd.f32 %v212_v22, %v126_v20 }
 0x118   :  { %v4869_v25 = vpop.f32.mrf.mxu0 }
 0x11a   :  { %v291_v29 = vpop.f32.mrf.mxu0 }
 0x11b   :  { %v295_v30 = vadd.f32 %v291_v29, %v4871_v26 }
 0x11c   :  { %v4045_v31 = vpop.f32.mrf.mxu0 }
 0x11d   :  { %v296_v32 = vmul.f32 %v295_v30, %v4875_v28 }
 0x11f   :  { %4422 = vtanh.f32 %v296_v32 }
 0x12c   :  { %v4423_v33 = vpop.eup %4422 }
 0x12d   :  { %v298_v34 = vmul.f32 0.5, %v4423_v33 }
 0x12f   :  { %v299_v35 = vadd.f32 0.5, %v298_v34 }
 0x131   :  { %v300_v36 = vsel %vm4863_vm4, %v4423_v33, %v299_v35 }
 0x132   :  { %303 = vrot.lane.b32.xlu0 %v300_v36, %s4713_s0  ;;  %v301_v39 = vmul.f32 0.0, %v300_v36 }
 0x1a4   :  { %v304_v37 = vpop.permute.xlu0 %303 }
 0x1a5   :  { %v306_v38 = vmul.f32 %v304_v37, %v300_v36 }
 0x1a7   :  { %308 = vrot.lane.b32.xlu0 %v306_v38, %s4714_s29 }
 0x219   :  { %v309_v40 = vpop.permute.xlu0 %308 }
 0x21a   :  { %v311_v41 = vadd.f32 %v309_v40, %v301_v39 }
 0x21c   :  { %4424 = vtanh.f32 %v311_v41  ;;  %v403_v57 = vrot.slane %v311_v41, 6 }
 0x229   :  { %v4425_v42 = vpop.eup %4424 }
 0x22a   :  { %314 = vrot.lane.b32.xlu1 %v4425_v42, %s4713_s0 }
 0x29c   :  { %v315_v43 = vpop.permute.xlu1 %314 }
 0x29d   :  { %v4884_v44 = vmul.f32 %v315_v43, %v300_v36 }
 0x29f   :  { %319 = vrot.lane.b32.xlu1 %v4884_v44, %s4714_s29 }
 0x311   :  { %v320_v45 = vpop.permute.xlu1 %319 }
 0x312   :  { %4055 = vmatmul.mubr.msk.f32.vlgmr.msra.gmra.mxu0 %vm221_vm5, %v320_v45 }
 0x313   :  { %4069 = vmatpush3.msra.mxu0 %v4794_v5  ;;  %4076 = vmatprep.mubr.msk.f32.mxu0 %vm4711_vm0, %v4710_v0 }
 0x314   :  { %4070 = vmatprep.subr.mxu0 %v4710_v0 }
 0x315   :  { %4071 = vmatpush3.msra.mxu0 %v4803_v7 }
 0x316   :  { %4072 = vmatprep.subr.mxu0 %v4710_v0 }
 0x317   :  { %4073 = vmatpush3.msra.mxu0 %v4818_v9 }
 0x318   :  { %4074 = vmatprep.subr.mxu0 %v4710_v0 }
 0x319   :  { %4075 = vmatpush3.msra.mxu0 %v4828_v10 }
 0x31a   :  { %4090 = vmatprep.subr.mxu0 %v4710_v0 }
 0x3d2   :  { %v389_v46 = vpop.f32.mrf.mxu0 }
 0x3d3   :  { %v394_v47 = vrot.slane %v389_v46, 6 }
 0x3d4   :  { %v4056_v48 = vpop.f32.mrf.mxu0 }
 0x3d5   :  { %v396_v49 = vadd.f32 %v394_v47, %v4871_v26 }
 0x3d7   :  { %v397_v50 = vmul.f32 %v396_v49, %v4875_v28 }
 0x3d9   :  { %4426 = vtanh.f32 %v397_v50 }
 0x3e6   :  { %v4427_v51 = vpop.eup %4426 }
 0x3e7   :  { %v399_v52 = vmul.f32 0.5, %v4427_v51 }
 0x3e9   :  { %v400_v53 = vadd.f32 0.5, %v399_v52 }
 0x3eb   :  { %v401_v54 = vsel %vm4863_vm4, %v4427_v51, %v400_v53 }
 0x3ec   :  { %407 = vrot.lane.b32.xlu0 %v401_v54, %s4713_s0  ;;  %v405_v58 = vmul.f32 %v403_v57, %v401_v54 }
 0x45e   :  { %v408_v55 = vpop.permute.xlu0 %407 }
 0x45f   :  { %v410_v56 = vmul.f32 %v408_v55, %v401_v54 }
 0x461   :  { %412 = vrot.lane.b32.xlu1 %v410_v56, %s4714_s29 }
 0x4d3   :  { %v413_v59 = vpop.permute.xlu1 %412 }
 0x4d4   :  { %v415_v60 = vadd.f32 %v413_v59, %v405_v58 }
 0x4d6   :  { %4428 = vtanh.f32 %v415_v60  ;;  %v508_v27 = vrot.slane %v415_v60, 6 }
 0x4e3   :  { %v4429_v61 = vpop.eup %4428 }
 0x4e4   :  { %418 = vrot.lane.b32.xlu0 %v4429_v61, %s4713_s0 }
 0x556   :  { %v419_v62 = vpop.permute.xlu0 %418 }
 0x557   :  { %v421_v63 = vmul.f32 %v419_v62, %v401_v54 }
 0x559   :  { %v423_v1 = vrot.slane %v421_v63, 2  ;;  %v1049_v35 = vsel %vm1048_vm6, %v4884_v44, %v421_v63 }
 0x55b   :  { %424 = vrot.lane.b32.xlu1 %v423_v1, %s4714_s29 }
 0x5cd   :  { %v425_v2 = vpop.permute.xlu1 %424 }
 0x5ce   :  { %4066 = vmatmul.mubr.msk.f32.vlgmr.msra.gmra.mxu1 %vm221_vm5, %v425_v2 }
 0x5cf   :  { %4080 = vmatpush3.msra.mxu1 %v4794_v5  ;;  %4087 = vmatprep.mubr.msk.f32.mxu1 %vm4711_vm0, %v4710_v0 }
 0x5d0   :  { %4081 = vmatprep.subr.mxu1 %v4710_v0 }
 0x5d1   :  { %4082 = vmatpush3.msra.mxu1 %v4803_v7 }
 0x5d2   :  { %4083 = vmatprep.subr.mxu1 %v4710_v0 }
 0x5d3   :  { %4084 = vmatpush3.msra.mxu1 %v4818_v9 }
 0x5d4   :  { %4085 = vmatprep.subr.mxu1 %v4710_v0 }
 0x5d5   :  { %4086 = vmatpush3.msra.mxu1 %v4828_v10 }
 0x5d6   :  { %4101 = vmatprep.subr.mxu1 %v4710_v0 }
 0x68e   :  { %v494_v3 = vpop.f32.mrf.mxu1 }
 0x68f   :  { %v499_v4 = vrot.slane %v494_v3, 4 }
 0x690   :  { %v4067_v6 = vpop.f32.mrf.mxu1 }
 0x691   :  { %v501_v8 = vadd.f32 %v499_v4, %v4871_v26 }
 0x693   :  { %v502_v11 = vmul.f32 %v501_v8, %v4875_v28 }
 0x695   :  { %4430 = vtanh.f32 %v502_v11 }
 0x6a2   :  { %v4431_v14 = vpop.eup %4430 }
 0x6a3   :  { %v504_v15 = vmul.f32 0.5, %v4431_v14 }
 0x6a5   :  { %v505_v18 = vadd.f32 0.5, %v504_v15 }
 0x6a7   :  { %v506_v19 = vsel %vm4863_vm4, %v4431_v14, %v505_v18 }
 0x6a8   :  { %512 = vrot.lane.b32.xlu0 %v506_v19, %s4713_s0  ;;  %v510_v29 = vmul.f32 %v508_v27, %v506_v19 }
 0x71a   :  { %v513_v20 = vpop.permute.xlu0 %512 }
 0x71b   :  { %v515_v22 = vmul.f32 %v513_v20, %v506_v19 }
 0x71d   :  { %517 = vrot.lane.b32.xlu1 %v515_v22, %s4714_s29 }
 0x78f   :  { %v518_v30 = vpop.permute.xlu1 %517 }
 0x790   :  { %v520_v31 = vadd.f32 %v518_v30, %v510_v29 }
 0x792   :  { %4432 = vtanh.f32 %v520_v31  ;;  %v613_v50 = vrot.slane %v520_v31, 6 }
 0x79f   :  { %v4433_v32 = vpop.eup %4432 }
 0x7a0   :  { %523 = vrot.lane.b32.xlu0 %v4433_v32, %s4713_s0 }
 0x812   :  { %v524_v33 = vpop.permute.xlu0 %523 }
 0x813   :  { %v526_v34 = vmul.f32 %v524_v33, %v506_v19 }
 0x815   :  { %v528_v36 = vrot.slane %v526_v34, 4  ;;  %v1051_v37 = vsel %vm1050_vm7, %v1049_v35, %v526_v34 }
 0x817   :  { %529 = vrot.lane.b32.xlu1 %v528_v36, %s4714_s29 }
 0x889   :  { %v530_v38 = vpop.permute.xlu1 %529 }
 0x88a   :  { %4077 = vmatmul.mubr.msk.f32.vlgmr.msra.gmra.mxu0 %vm221_vm5, %v530_v38 }
 0x88b   :  { %4091 = vmatpush3.msra.mxu0 %v4794_v5  ;;  %4098 = vmatprep.mubr.msk.f32.mxu0 %vm4711_vm0, %v4710_v0 }
 0x88c   :  { %4092 = vmatprep.subr.mxu0 %v4710_v0 }
 0x88d   :  { %4093 = vmatpush3.msra.mxu0 %v4803_v7 }
 0x88e   :  { %4094 = vmatprep.subr.mxu0 %v4710_v0 }
 0x88f   :  { %4095 = vmatpush3.msra.mxu0 %v4818_v9 }
 0x890   :  { %4096 = vmatprep.subr.mxu0 %v4710_v0 }
 0x891   :  { %4097 = vmatpush3.msra.mxu0 %v4828_v10 }
 0x892   :  { %4112 = vmatprep.subr.mxu0 %v4710_v0 }
 0x94a   :  { %v599_v39 = vpop.f32.mrf.mxu0 }
 0x94b   :  { %v604_v40 = vrot.slane %v599_v39, 2 }
 0x94c   :  { %v4078_v41 = vpop.f32.mrf.mxu0 }
 0x94d   :  { %v606_v42 = vadd.f32 %v604_v40, %v4871_v26 }
 0x94f   :  { %v607_v43 = vmul.f32 %v606_v42, %v4875_v28 }
 0x951   :  { %4434 = vtanh.f32 %v607_v43  ;;  %v5001_v43 = vld [vmem:[%s5717_s2 + $0x38] sm:$0xff] }
 0x95e   :  { %v4435_v44 = vpop.eup %4434 }
 0x95f   :  { %v609_v45 = vmul.f32 0.5, %v4435_v44 }
 0x961   :  { %v610_v46 = vadd.f32 0.5, %v609_v45  ;;  %v5007_v45 = vld [vmem:[%s5717_s2 + $0x30] sm:$0xff] }
 0x963   :  { %v611_v47 = vsel %vm4863_vm4, %v4435_v44, %v610_v46  ;;  %v5016_v46 = vld [vmem:[%s5717_s2 + $0x28] sm:$0xff] }
 0x964   :  { %617 = vrot.lane.b32.xlu0 %v611_v47, %s4713_s0  ;;  %v615_v51 = vmul.f32 %v613_v50, %v611_v47 }
 0x9d6   :  { %v618_v48 = vpop.permute.xlu0 %617 }
 0x9d7   :  { %v620_v49 = vmul.f32 %v618_v48, %v611_v47 }
 0x9d9   :  { %622 = vrot.lane.b32.xlu1 %v620_v49, %s4714_s29 }
 0xa4b   :  { %v623_v52 = vpop.permute.xlu1 %622 }
 0xa4c   :  { %v625_v53 = vadd.f32 %v623_v52, %v615_v51 }
 0xa4e   :  { %4436 = vtanh.f32 %v625_v53  ;;  %v715_v8 = vrot.slane %v625_v53, 6 }
 0xa5b   :  { %v4437_v26 = vpop.eup %4436 }
 0xa5c   :  { %628 = vrot.lane.b32.xlu0 %v4437_v26, %s4713_s0  ;;  %v5044_v26 = vadd.f32 %v4869_v25, %v4856_v17 }
 0xace   :  { %v629_v54 = vpop.permute.xlu0 %628 }
 0xacf   :  { %v631_v55 = vmul.f32 %v629_v54, %v611_v47  ;;  %v5023_v47 = vld [vmem:[%s5717_s2 + $0x20] sm:$0xff] }
 0xad1   :  { %v633_v56 = vrot.slane %v631_v55, 6  ;;  %v4948_v57 = vsel %vm1052_vm8, %v1051_v37, %v631_v55 }
 0xad3   :  { %634 = vrot.lane.b32.xlu1 %v633_v56, %s4714_s29 }
 0xb45   :  { %v635_v58 = vpop.permute.xlu1 %634 }
 0xb46   :  { %4088 = vmatmul.mubr.msk.f32.vlgmr.msra.gmra.mxu1 %vm221_vm5, %v635_v58 }
 0xb47   :  { %4102 = vmatpush3.msra.mxu1 %v4794_v5  ;;  %4109 = vmatprep.mubr.msk.f32.mxu1 %vm4711_vm0, %v4710_v0 }
 0xb48   :  { %4103 = vmatprep.subr.mxu1 %v4710_v0 }
 0xb49   :  { %4104 = vmatpush3.msra.mxu1 %v4803_v7 }
 0xb4a   :  { %4105 = vmatprep.subr.mxu1 %v4710_v0 }
 0xb4b   :  { %4106 = vmatpush3.msra.mxu1 %v4818_v9 }
 0xb4c   :  { %4107 = vmatprep.subr.mxu1 %v4710_v0 }
 0xb4d   :  { %4108 = vmatpush3.msra.mxu1 %v4828_v10 }
 0xb4e   :  { %4123 = vmatprep.subr.mxu1 %v4710_v0 }
 0xc06   :  { %v704_v59 = vpop.f32.mrf.mxu1 }
 0xc07   :  { %v708_v60 = vadd.f32 %v704_v59, %v4867_v24 }
 0xc08   :  { %v4089_v61 = vpop.f32.mrf.mxu1 }
 0xc09   :  { %v709_v62 = vmul.f32 %v708_v60, %v4875_v28 }
 0xc0b   :  { %4438 = vtanh.f32 %v709_v62 }
 0xc18   :  { %v4439_v63 = vpop.eup %4438 }
 0xc19   :  { %v711_v1 = vmul.f32 0.5, %v4439_v63 }
 0xc1b   :  { %v712_v2 = vadd.f32 0.5, %v711_v1 }
 0xc1d   :  { %v713_v3 = vsel %vm4863_vm4, %v4439_v63, %v712_v2 }
 0xc1e   :  { %719 = vrot.lane.b32.xlu0 %v713_v3, %s4713_s0  ;;  %v717_v11 = vmul.f32 %v715_v8, %v713_v3 }
 0xc90   :  { %v720_v4 = vpop.permute.xlu0 %719 }
 0xc91   :  { %v722_v6 = vmul.f32 %v720_v4, %v713_v3 }
 0xc93   :  { %724 = vrot.lane.b32.xlu1 %v722_v6, %s4714_s29 }
 0xd05   :  { %v725_v14 = vpop.permute.xlu1 %724 }
 0xd06   :  { %v727_v15 = vadd.f32 %v725_v14, %v717_v11 }
 0xd08   :  { %4440 = vtanh.f32 %v727_v15  ;;  %v819_v35 = vrot.slane %v727_v15, 6 }
 0xd15   :  { %v4441_v18 = vpop.eup %4440 }
 0xd16   :  { %730 = vrot.lane.b32.xlu0 %v4441_v18, %s4713_s0 }
 0xd88   :  { %v731_v19 = vpop.permute.xlu0 %730 }
 0xd89   :  { %v4969_v20 = vmul.f32 %v731_v19, %v713_v3 }
 0xd8b   :  { %735 = vrot.lane.b32.xlu1 %v4969_v20, %s4714_s29 }
 0xdfd   :  { %v736_v22 = vpop.permute.xlu1 %735 }
 0xdfe   :  { %4099 = vmatmul.mubr.msk.f32.vlgmr.msra.gmra.mxu0 %vm221_vm5, %v736_v22 }
 0xdff   :  { %4113 = vmatpush3.msra.mxu0 %v4794_v5  ;;  %4120 = vmatprep.mubr.msk.f32.mxu0 %vm4711_vm0, %v4710_v0 }
 0xe00   :  { %4114 = vmatprep.subr.mxu0 %v4710_v0 }
 0xe01   :  { %4115 = vmatpush3.msra.mxu0 %v4803_v7 }
 0xe02   :  { %4116 = vmatprep.subr.mxu0 %v4710_v0 }
 0xe03   :  { %4117 = vmatpush3.msra.mxu0 %v4818_v9 }
 0xe04   :  { %4118 = vmatprep.subr.mxu0 %v4710_v0 }
 0xe05   :  { %4119 = vmatpush3.msra.mxu0 %v4828_v10 }
 0xe06   :  { %4134 = vmatprep.subr.mxu0 %v4710_v0 }
 0xebe   :  { %v805_v27 = vpop.f32.mrf.mxu0 }
 0xebf   :  { %v810_v29 = vrot.slane %v805_v27, 6 }
 0xec0   :  { %v4100_v5 = vpop.f32.mrf.mxu0 }
 0xec1   :  { %v812_v30 = vadd.f32 %v810_v29, %v4867_v24 }
 0xec3   :  { %v813_v31 = vmul.f32 %v812_v30, %v4875_v28 }
 0xec5   :  { %4442 = vtanh.f32 %v813_v31 }
 0xed2   :  { %v4443_v32 = vpop.eup %4442 }
 0xed3   :  { %v815_v7 = vmul.f32 0.5, %v4443_v32 }
 0xed5   :  { %v816_v33 = vadd.f32 0.5, %v815_v7 }
 0xed7   :  { %v817_v9 = vsel %vm4863_vm4, %v4443_v32, %v816_v33 }
 0xed8   :  { %823 = vrot.lane.b32.xlu0 %v817_v9, %s4713_s0  ;;  %v821_v36 = vmul.f32 %v819_v35, %v817_v9 }
 0xf4a   :  { %v824_v34 = vpop.permute.xlu0 %823 }
 0xf4b   :  { %v826_v10 = vmul.f32 %v824_v34, %v817_v9 }
 0xf4d   :  { %828 = vrot.lane.b32.xlu1 %v826_v10, %s4714_s29 }
 0xfbf   :  { %v829_v37 = vpop.permute.xlu1 %828 }
 0xfc0   :  { %v4990_v38 = vadd.f32 %v829_v37, %v821_v36 }
 0xfc2   :  { %4444 = vtanh.f32 %v4990_v38  ;;  %v924_v8 = vrot.slane %v4990_v38, 6 }
 0xfcf   :  { %v4445_v39 = vpop.eup %4444 }
 0xfd0   :  { %834 = vrot.lane.b32.xlu0 %v4445_v39, %s4713_s0 }
0x1042   :  { %v835_v40 = vpop.permute.xlu0 %834 }
0x1043   :  { %v4994_v41 = vmul.f32 %v835_v40, %v817_v9 }
0x1045   :  { %v839_v42 = vrot.slane %v4994_v41, 2  ;;  %v1054_v31 = vsel %vm1048_vm6, %v4969_v20, %v4994_v41 }
0x1047   :  { %840 = vrot.lane.b32.xlu1 %v839_v42, %s4714_s29 }
0x10b9   :  { %v841_v44 = vpop.permute.xlu1 %840 }
0x10ba   :  { %4110 = vmatmul.mubr.msk.f32.vlgmr.msra.gmra.mxu1 %vm221_vm5, %v841_v44 }
0x10bb   :  { %4124 = vmatpush3.msra.mxu1 %v5001_v43  ;;  %4131 = vmatprep.mubr.msk.f32.mxu1 %vm4711_vm0, %v4710_v0 }
0x10bc   :  { %4125 = vmatprep.subr.mxu1 %v4710_v0 }
0x10bd   :  { %4126 = vmatpush3.msra.mxu1 %v5007_v45 }
0x10be   :  { %4127 = vmatprep.subr.mxu1 %v4710_v0 }
0x10bf   :  { %4128 = vmatpush3.msra.mxu1 %v5016_v46 }
0x10c0   :  { %4129 = vmatprep.subr.mxu1 %v4710_v0 }
0x10c1   :  { %4130 = vmatpush3.msra.mxu1 %v5023_v47 }
0x10c2   :  { %4132 = vmatmul.mubr.f32.vlgmr.msra.gmra.mxu1 %v4710_v0  ;;  %4145 = vmatprep.subr.mxu1 %v4710_v0 }
0x10c3   :  { %4146 = vmatpush3.msra.mxu1 %v5001_v43  ;;  %4153 = vmatprep.mubr.msk.f32.mxu1 %vm4711_vm0, %v4710_v0 }
0x10c4   :  { %4147 = vmatprep.subr.mxu1 %v4710_v0 }
0x10c5   :  { %4148 = vmatpush3.msra.mxu1 %v5007_v45 }
0x10c6   :  { %4149 = vmatprep.subr.mxu1 %v4710_v0 }
0x10c7   :  { %4150 = vmatpush3.msra.mxu1 %v5016_v46 }
0x10c8   :  { %4151 = vmatprep.subr.mxu1 %v4710_v0 }
0x10c9   :  { %4152 = vmatpush3.msra.mxu1 %v5023_v47 }
0x10ca   :  { %4167 = vmatprep.subr.mxu1 %v4710_v0 }
0x117a   :  { %v910_v48 = vpop.f32.mrf.mxu1 }
0x117b   :  { %v915_v49 = vrot.slane %v910_v48, 4 }
0x117c   :  { %v4111_v50 = vpop.f32.mrf.mxu1 }
0x117d   :  { %v917_v51 = vadd.f32 %v915_v49, %v4867_v24 }
0x117f   :  { %v918_v52 = vmul.f32 %v917_v51, %v4875_v28 }
0x1181   :  { %4446 = vtanh.f32 %v918_v52 }
0x1182   :  { %v1128_v53 = vpop.f32.mrf.mxu1 }
0x1183   :  { %v1133_v54 = vrot.slane %v1128_v53, 2 }
0x1184   :  { %v4133_v55 = vpop.f32.mrf.mxu1 }
0x1185   :  { %v1135_v56 = vadd.f32 %v1133_v54, %v5044_v26 }
0x1187   :  { %v1136_v58 = vmul.f32 %v1135_v56, %v4875_v28 }
0x1189   :  { %4448 = vtanh.f32 %v1136_v58 }
0x118e   :  { %v4447_v59 = vpop.eup %4446 }
0x118f   :  { %v920_v60 = vmul.f32 0.5, %v4447_v59 }
0x1191   :  { %v921_v61 = vadd.f32 0.5, %v920_v60 }
0x1193   :  { %v922_v62 = vsel %vm4863_vm4, %v4447_v59, %v921_v61 }
0x1194   :  { %928 = vrot.lane.b32.xlu0 %v922_v62, %s4713_s0  ;;  %v926_v11 = vmul.f32 %v924_v8, %v922_v62 }
0x1196   :  { %v4449_v63 = vpop.eup %4448 }
0x1197   :  { %v1138_v1 = vmul.f32 0.5, %v4449_v63 }
0x1199   :  { %v1139_v2 = vadd.f32 0.5, %v1138_v1 }
0x119b   :  { %v1140_v17 = vsel %vm4863_vm4, %v4449_v63, %v1139_v2 }
0x119c   :  { %1143 = vrot.lane.b32.xlu1 %v1140_v17, %s4713_s0  ;;  %v1141_v18 = vmul.f32 0.0, %v1140_v17 }
0x1206   :  { %v929_v25 = vpop.permute.xlu0 %928 }
0x1207   :  { %v931_v3 = vmul.f32 %v929_v25, %v922_v62 }
0x1209   :  { %933 = vrot.lane.b32.xlu0 %v931_v3, %s4714_s29 }
0x120e   :  { %v1144_v4 = vpop.permute.xlu1 %1143 }
0x120f   :  { %v1146_v6 = vmul.f32 %v1144_v4, %v1140_v17 }
0x1211   :  { %1148 = vrot.lane.b32.xlu1 %v1146_v6, %s4714_s29 }
0x127b   :  { %v934_v14 = vpop.permute.xlu0 %933 }
0x127c   :  { %v5057_v15 = vadd.f32 %v934_v14, %v926_v11 }
0x127e   :  { %4450 = vtanh.f32 %v5057_v15 }
0x1283   :  { %v1149_v19 = vpop.permute.xlu1 %1148 }
0x1284   :  { %v1151_v22 = vadd.f32 %v1149_v19, %v1141_v18 }
0x1286   :  { %4452 = vtanh.f32 %v1151_v22  ;;  %v1244_v52 = vrot.slane %v1151_v22, 2 }
0x128b   :  { %v4451_v27 = vpop.eup %4450 }
0x128c   :  { %939 = vrot.lane.b32.xlu0 %v4451_v27, %s4713_s0 }
0x1293   :  { %v4453_v29 = vpop.eup %4452 }
0x1294   :  { %1154 = vrot.lane.b32.xlu1 %v4453_v29, %s4713_s0 }
0x12fe   :  { %v940_v5 = vpop.permute.xlu0 %939 }
0x12ff   :  { %v942_v30 = vmul.f32 %v940_v5, %v922_v62 }
0x1301   :  { %v944_v32 = vrot.slane %v942_v30, 4  ;;  %v5066_v7 = vsel %vm1050_vm7, %v1054_v31, %v942_v30 }
0x1303   :  { %945 = vrot.lane.b32.xlu0 %v944_v32, %s4714_s29 }
0x1306   :  { %v1155_v33 = vpop.permute.xlu1 %1154 }
0x1307   :  { %v5069_v9 = vmul.f32 %v1155_v33, %v1140_v17 }
0x1309   :  { %v1159_v34 = vrot.slane %v5069_v9, 6 }
0x130b   :  { %1160 = vrot.lane.b32.xlu1 %v1159_v34, %s4714_s29 }
0x1375   :  { %v946_v10 = vpop.permute.xlu0 %945 }
0x1376   :  { %4121 = vmatmul.mubr.msk.f32.vlgmr.msra.gmra.mxu0 %vm221_vm5, %v946_v10 }
0x1377   :  { %4135 = vmatpush3.msra.mxu0 %v5001_v43  ;;  %4142 = vmatprep.mubr.msk.f32.mxu0 %vm4711_vm0, %v4710_v0 }
0x1378   :  { %4136 = vmatprep.subr.mxu0 %v4710_v0 }
0x1379   :  { %4137 = vmatpush3.msra.mxu0 %v5007_v45 }
0x137a   :  { %4138 = vmatprep.subr.mxu0 %v4710_v0 }
0x137b   :  { %4139 = vmatpush3.msra.mxu0 %v5016_v46 }
0x137c   :  { %4140 = vmatprep.subr.mxu0 %v4710_v0 }
0x137d   :  { %4141 = vmatpush3.msra.mxu0 %v5023_v47  ;;  %v1161_v20 = vpop.permute.xlu1 %1160 }
0x137e   :  { %4143 = vmatmul.mubr.msk.f32.vlgmr.msra.gmra.mxu0 %vm221_vm5, %v1161_v20  ;;  %4156 = vmatprep.subr.mxu0 %v4710_v0 }
0x137f   :  { %4157 = vmatpush3.msra.mxu0 %v5001_v43  ;;  %4164 = vmatprep.mubr.msk.f32.mxu0 %vm4711_vm0, %v4710_v0 }
0x1380   :  { %4158 = vmatprep.subr.mxu0 %v4710_v0 }
0x1381   :  { %4159 = vmatpush3.msra.mxu0 %v5007_v45 }
0x1382   :  { %4160 = vmatprep.subr.mxu0 %v4710_v0 }
0x1383   :  { %4161 = vmatpush3.msra.mxu0 %v5016_v46 }
0x1384   :  { %4162 = vmatprep.subr.mxu0 %v4710_v0 }
0x1385   :  { %4163 = vmatpush3.msra.mxu0 %v5023_v47 }
0x1386   :  { %4178 = vmatprep.subr.mxu0 %v4710_v0 }
0x1436   :  { %v5095_v35 = vpop.f32.mrf.mxu0 }
0x1438   :  { %v4122_v36 = vpop.f32.mrf.mxu0 }
0x143e   :  { %v1230_v37 = vpop.f32.mrf.mxu0 }
0x143f   :  { %v1235_v38 = vrot.slane %v1230_v37, 4 }
0x1440   :  { %v4144_v39 = vpop.f32.mrf.mxu0 }
0x1441   :  { %v1237_v40 = vadd.f32 %v1235_v38, %v5044_v26 }
0x1443   :  { %v1238_v41 = vmul.f32 %v1237_v40, %v4875_v28 }
0x1445   :  { %4454 = vtanh.f32 %v1238_v41 }
0x1452   :  { %v4455_v42 = vpop.eup %4454 }
0x1453   :  { %v1240_v44 = vmul.f32 0.5, %v4455_v42 }
0x1455   :  { %v1241_v48 = vadd.f32 0.5, %v1240_v44 }
0x1457   :  { %v1242_v49 = vsel %vm4863_vm4, %v4455_v42, %v1241_v48 }
0x1458   :  { %1248 = vrot.lane.b32.xlu0 %v1242_v49, %s4713_s0  ;;  %v1246_v53 = vmul.f32 %v1244_v52, %v1242_v49 }
0x14ca   :  { %v1249_v50 = vpop.permute.xlu0 %1248 }
0x14cb   :  { %v1251_v51 = vmul.f32 %v1249_v50, %v1242_v49 }
0x14cd   :  { %1253 = vrot.lane.b32.xlu1 %v1251_v51, %s4714_s29 }
0x153f   :  { %v1254_v54 = vpop.permute.xlu1 %1253 }
0x1540   :  { %v1256_v55 = vadd.f32 %v1254_v54, %v1246_v53 }
0x1542   :  { %4456 = vtanh.f32 %v1256_v55  ;;  %v1349_v14 = vrot.slane %v1256_v55, 2 }
0x154f   :  { %v4457_v56 = vpop.eup %4456 }
0x1550   :  { %1259 = vrot.lane.b32.xlu0 %v4457_v56, %s4713_s0 }
0x15c2   :  { %v1260_v58 = vpop.permute.xlu0 %1259 }
0x15c3   :  { %v5104_v59 = vmul.f32 %v1260_v58, %v1242_v49 }
0x15c5   :  { %v1264_v60 = vrot.slane %v5104_v59, 4 }
0x15c7   :  { %1265 = vrot.lane.b32.xlu1 %v1264_v60, %s4714_s29 }
0x1639   :  { %v1266_v61 = vpop.permute.xlu1 %1265 }
0x163a   :  { %4154 = vmatmul.mubr.msk.f32.vlgmr.msra.gmra.mxu1 %vm221_vm5, %v1266_v61 }
0x163b   :  { %4168 = vmatpush3.msra.mxu1 %v5001_v43  ;;  %4175 = vmatprep.mubr.msk.f32.mxu1 %vm4711_vm0, %v4710_v0 }
0x163c   :  { %4169 = vmatprep.subr.mxu1 %v4710_v0 }
0x163d   :  { %4170 = vmatpush3.msra.mxu1 %v5007_v45 }
0x163e   :  { %4171 = vmatprep.subr.mxu1 %v4710_v0 }
0x163f   :  { %4172 = vmatpush3.msra.mxu1 %v5016_v46 }
0x1640   :  { %4173 = vmatprep.subr.mxu1 %v4710_v0 }
0x1641   :  { %4174 = vmatpush3.msra.mxu1 %v5023_v47 }
0x1642   :  { %4189 = vmatprep.subr.mxu1 %v4710_v0 }
0x16fa   :  { %v1335_v62 = vpop.f32.mrf.mxu1 }
0x16fb   :  { %v1340_v63 = vrot.slane %v1335_v62, 6 }
0x16fc   :  { %v4155_v1 = vpop.f32.mrf.mxu1 }
0x16fd   :  { %v1342_v2 = vadd.f32 %v1340_v63, %v5044_v26 }
0x16ff   :  { %v1343_v17 = vmul.f32 %v1342_v2, %v4875_v28 }
0x1701   :  { %4458 = vtanh.f32 %v1343_v17 }
0x170e   :  { %v4459_v25 = vpop.eup %4458 }
0x170f   :  { %v1345_v3 = vmul.f32 0.5, %v4459_v25 }
0x1711   :  { %v1346_v4 = vadd.f32 0.5, %v1345_v3 }
0x1713   :  { %v1347_v6 = vsel %vm4863_vm4, %v4459_v25, %v1346_v4 }
0x1714   :  { %1353 = vrot.lane.b32.xlu0 %v1347_v6, %s4713_s0  ;;  %v1351_v18 = vmul.f32 %v1349_v14, %v1347_v6 }
0x1786   :  { %v1354_v8 = vpop.permute.xlu0 %1353 }
0x1787   :  { %v1356_v11 = vmul.f32 %v1354_v8, %v1347_v6 }
0x1789   :  { %1358 = vrot.lane.b32.xlu1 %v1356_v11, %s4714_s29 }
0x17fb   :  { %v1359_v19 = vpop.permute.xlu1 %1358 }
0x17fc   :  { %v1361_v22 = vadd.f32 %v1359_v19, %v1351_v18 }
0x17fe   :  { %4460 = vtanh.f32 %v1361_v22  ;;  %v1451_v41 = vrot.slane %v1361_v22, 2 }
0x180b   :  { %v4461_v27 = vpop.eup %4460 }
0x180c   :  { %1364 = vrot.lane.b32.xlu0 %v4461_v27, %s4713_s0 }
0x187e   :  { %v1365_v29 = vpop.permute.xlu0 %1364 }
0x187f   :  { %v5126_v5 = vmul.f32 %v1365_v29, %v1347_v6 }
0x1881   :  { %v1369_v30 = vrot.slane %v5126_v5, 2 }
0x1883   :  { %1370 = vrot.lane.b32.xlu1 %v1369_v30, %s4714_s29 }
0x18f5   :  { %v1371_v31 = vpop.permute.xlu1 %1370 }
0x18f6   :  { %4165 = vmatmul.mubr.msk.f32.vlgmr.msra.gmra.mxu0 %vm221_vm5, %v1371_v31 }
0x18f7   :  { %4179 = vmatpush3.msra.mxu0 %v5001_v43  ;;  %4186 = vmatprep.mubr.msk.f32.mxu0 %vm4711_vm0, %v4710_v0 }
0x18f8   :  { %4180 = vmatprep.subr.mxu0 %v4710_v0 }
0x18f9   :  { %4181 = vmatpush3.msra.mxu0 %v5007_v45 }
0x18fa   :  { %4182 = vmatprep.subr.mxu0 %v4710_v0 }
0x18fb   :  { %4183 = vmatpush3.msra.mxu0 %v5016_v46 }
0x18fc   :  { %4184 = vmatprep.subr.mxu0 %v4710_v0 }
0x18fd   :  { %4185 = vmatpush3.msra.mxu0 %v5023_v47 }
0x18fe   :  { %4200 = vmatprep.subr.mxu0 %v4710_v0 }
0x19b6   :  { %v1440_v32 = vpop.f32.mrf.mxu0 }
0x19b7   :  { %v1444_v33 = vadd.f32 %v1440_v32, %v5044_v26 }
0x19b8   :  { %v4166_v34 = vpop.f32.mrf.mxu0 }
0x19b9   :  { %v1445_v10 = vmul.f32 %v1444_v33, %v4875_v28 }
0x19bb   :  { %4462 = vtanh.f32 %v1445_v10 }
0x19c8   :  { %v4463_v20 = vpop.eup %4462 }
0x19c9   :  { %v1447_v36 = vmul.f32 0.5, %v4463_v20 }
0x19cb   :  { %v1448_v37 = vadd.f32 0.5, %v1447_v36 }
0x19cd   :  { %v1449_v38 = vsel %vm4863_vm4, %v4463_v20, %v1448_v37 }
0x19ce   :  { %1455 = vrot.lane.b32.xlu0 %v1449_v38, %s4713_s0  ;;  %v1453_v42 = vmul.f32 %v1451_v41, %v1449_v38 }
0x1a40   :  { %v1456_v39 = vpop.permute.xlu0 %1455 }
0x1a41   :  { %v1458_v40 = vmul.f32 %v1456_v39, %v1449_v38 }
0x1a43   :  { %1460 = vrot.lane.b32.xlu1 %v1458_v40, %s4714_s29 }
0x1ab5   :  { %v1461_v44 = vpop.permute.xlu1 %1460 }
0x1ab6   :  { %v1463_v26 = vadd.f32 %v1461_v44, %v1453_v42 }
0x1ab8   :  { %4464 = vtanh.f32 %v1463_v26  ;;  %v1555_v2 = vrot.slane %v1463_v26, 2 }
0x1ac5   :  { %v4465_v48 = vpop.eup %4464 }
0x1ac6   :  { %1466 = vrot.lane.b32.xlu0 %v4465_v48, %s4713_s0 }
0x1b38   :  { %v1467_v49 = vpop.permute.xlu0 %1466 }
0x1b39   :  { %v5148_v50 = vmul.f32 %v1467_v49, %v1449_v38 }
0x1b3b   :  { %1471 = vrot.lane.b32.xlu1 %v5148_v50, %s4714_s29 }
0x1bad   :  { %v1472_v51 = vpop.permute.xlu1 %1471 }
0x1bae   :  { %4176 = vmatmul.mubr.msk.f32.vlgmr.msra.gmra.mxu1 %vm221_vm5, %v1472_v51 }
0x1baf   :  { %4190 = vmatpush3.msra.mxu1 %v5001_v43  ;;  %4197 = vmatprep.mubr.msk.f32.mxu1 %vm4711_vm0, %v4710_v0 }
0x1bb0   :  { %4191 = vmatprep.subr.mxu1 %v4710_v0 }
0x1bb1   :  { %4192 = vmatpush3.msra.mxu1 %v5007_v45 }
0x1bb2   :  { %4193 = vmatprep.subr.mxu1 %v4710_v0 }
0x1bb3   :  { %4194 = vmatpush3.msra.mxu1 %v5016_v46 }
0x1bb4   :  { %4195 = vmatprep.subr.mxu1 %v4710_v0 }
0x1bb5   :  { %4196 = vmatpush3.msra.mxu1 %v5023_v47 }
0x1c6e   :  { %v1541_v52 = vpop.f32.mrf.mxu1 }
0x1c6f   :  { %v1546_v53 = vrot.slane %v1541_v52, 2 }
0x1c70   :  { %v4177_v54 = vpop.f32.mrf.mxu1 }
0x1c71   :  { %v1548_v55 = vadd.f32 %v1546_v53, %v4861_v21 }
0x1c73   :  { %v1549_v56 = vmul.f32 %v1548_v55, %v4875_v28 }
0x1c75   :  { %4466 = vtanh.f32 %v1549_v56 }
0x1c82   :  { %v4467_v58 = vpop.eup %4466 }
0x1c83   :  { %v1551_v60 = vmul.f32 0.5, %v4467_v58 }
0x1c85   :  { %v1552_v61 = vadd.f32 0.5, %v1551_v60 }
0x1c87   :  { %v1553_v62 = vsel %vm4863_vm4, %v4467_v58, %v1552_v61 }
0x1c88   :  { %1559 = vrot.lane.b32.xlu0 %v1553_v62, %s4713_s0  ;;  %v1557_v17 = vmul.f32 %v1555_v2, %v1553_v62 }
0x1cfa   :  { %v1560_v63 = vpop.permute.xlu0 %1559 }
0x1cfb   :  { %v1562_v1 = vmul.f32 %v1560_v63, %v1553_v62 }
0x1cfd   :  { %1564 = vrot.lane.b32.xlu1 %v1562_v1, %s4714_s29 }
0x1d6f   :  { %v1565_v25 = vpop.permute.xlu1 %1564 }
0x1d70   :  { %v1567_v3 = vadd.f32 %v1565_v25, %v1557_v17 }
0x1d72   :  { %4468 = vtanh.f32 %v1567_v3  ;;  %v1660_v32 = vrot.slane %v1567_v3, 2 }
0x1d7f   :  { %v4469_v4 = vpop.eup %4468 }
0x1d80   :  { %1570 = vrot.lane.b32.xlu0 %v4469_v4, %s4713_s0 }
0x1df2   :  { %v1571_v6 = vpop.permute.xlu0 %1570 }
0x1df3   :  { %v5169_v8 = vmul.f32 %v1571_v6, %v1553_v62 }
0x1df5   :  { %v1575_v11 = vrot.slane %v5169_v8, 6 }
0x1df7   :  { %1576 = vrot.lane.b32.xlu1 %v1575_v11, %s4714_s29 }
0x1e69   :  { %v1577_v14 = vpop.permute.xlu1 %1576 }
0x1e6a   :  { %4187 = vmatmul.mubr.msk.f32.vlgmr.msra.gmra.mxu0 %vm221_vm5, %v1577_v14 }
0x1e6b   :  { %4201 = vmatpush3.msra.mxu0 %v5001_v43  ;;  %4208 = vmatprep.mubr.msk.f32.mxu0 %vm4711_vm0, %v4710_v0 }
0x1e6c   :  { %4202 = vmatprep.subr.mxu0 %v4710_v0 }
0x1e6d   :  { %4203 = vmatpush3.msra.mxu0 %v5007_v45 }
0x1e6e   :  { %4204 = vmatprep.subr.mxu0 %v4710_v0 }
0x1e6f   :  { %4205 = vmatpush3.msra.mxu0 %v5016_v46 }
0x1e70   :  { %4206 = vmatprep.subr.mxu0 %v4710_v0 }
0x1e71   :  { %4207 = vmatpush3.msra.mxu0 %v5023_v47 }
0x1e72   :  { %4211 = vmatprep.subr.mxu0 %v4710_v0 }
0x1f2a   :  { %v1646_v18 = vpop.f32.mrf.mxu0 }
0x1f2b   :  { %v1651_v19 = vrot.slane %v1646_v18, 4 }
0x1f2c   :  { %v4188_v43 = vpop.f32.mrf.mxu0 }
0x1f2d   :  { %v1653_v22 = vadd.f32 %v1651_v19, %v4861_v21 }
0x1f2f   :  { %v1654_v27 = vmul.f32 %v1653_v22, %v4875_v28 }
0x1f31   :  { %4470 = vtanh.f32 %v1654_v27 }
0x1f3e   :  { %v4471_v29 = vpop.eup %4470 }
0x1f3f   :  { %v1656_v45 = vmul.f32 0.5, %v4471_v29 }
0x1f41   :  { %v1657_v30 = vadd.f32 0.5, %v1656_v45  ;;  %v1925_v45 = vld [vmem:[#allocation7 + $0x78] sm:$0xff] }
0x1f42   :  { %1961 = vmatprep.subr.mxu1 %v1925_v45 }
0x1f43   :  { %v1658_v46 = vsel %vm4863_vm4, %v4471_v29, %v1657_v30  ;;  %v1924_v30 = vld [vmem:[#allocation7 + $0x70] sm:$0xff] }
0x1f44   :  { %1664 = vrot.lane.b32.xlu0 %v1658_v46, %s4713_s0  ;;  %v1662_v33 = vmul.f32 %v1660_v32, %v1658_v46  ;;  %v1920_v32 = vld [vmem:[#allocation7 + $0x50] sm:$0xff] }
0x1fb6   :  { %v1665_v31 = vpop.permute.xlu0 %1664 }
0x1fb7   :  { %v1667_v47 = vmul.f32 %v1665_v31, %v1658_v46  ;;  %v1922_v31 = vld [vmem:[#allocation7 + $0x60] sm:$0xff] }
0x1fb9   :  { %1669 = vrot.lane.b32.xlu1 %v1667_v47, %s4714_s29  ;;  %v1921_v47 = vld [vmem:[#allocation7 + $0x58] sm:$0xff] }
0x202b   :  { %v1670_v34 = vpop.permute.xlu1 %1669 }
0x202c   :  { %v1672_v10 = vadd.f32 %v1670_v34, %v1662_v33  ;;  %v5224_v33 = vld [vmem:[#allocation8 + $0x18] sm:$0xff]  ;;  %v1919_v34 = vld [vmem:[#allocation7 + $0x48] sm:$0xff] }
0x202e   :  { %4472 = vtanh.f32 %v1672_v10  ;;  %v1765_v55 = vrot.slane %v1672_v10, 2  ;;  %v1918_v10 = vld [vmem:[#allocation7 + $0x40] sm:$0xff] }
0x203b   :  { %v4473_v20 = vpop.eup %4472 }
0x203c   :  { %1675 = vrot.lane.b32.xlu0 %v4473_v20, %s4713_s0  ;;  %v1917_v20 = vld [vmem:[#allocation7 + $0x38] sm:$0xff] }
0x20ae   :  { %v1676_v36 = vpop.permute.xlu0 %1675 }
0x20af   :  { %v5191_v37 = vmul.f32 %v1676_v36, %v1658_v46  ;;  %v1923_v46 = vld [vmem:[#allocation7 + $0x68] sm:$0xff] }
0x20b0   :  { %v5231_v36 = vld [vmem:[#allocation8 + $0x8] sm:$0xff] }
0x20b1   :  { %v1680_v38 = vrot.slane %v5191_v37, 4 }
0x20b3   :  { %1681 = vrot.lane.b32.xlu1 %v1680_v38, %s4714_s29 }
0x2125   :  { %v1682_v39 = vpop.permute.xlu1 %1681 }
0x2126   :  { %4198 = vmatmul.mubr.msk.f32.vlgmr.msra.gmra.mxu1 %vm221_vm5, %v1682_v39  ;;  %v1916_v39 = vld [vmem:[#allocation7 + $0x30] sm:$0xff] }
0x2127   :  { %2009 = vmatprep.mubr.f32.mxu1 %v4710_v0  ;;  %1962 = vmatpush1.msra.mxu1 %v1924_v30 }
0x2128   :  { %1963 = vmatprep.subr.mxu1 %v1923_v46 }
0x2129   :  { %1964 = vmatpush1.msra.mxu1 %v1922_v31 }
0x212a   :  { %1965 = vmatprep.subr.mxu1 %v1921_v47 }
0x212b   :  { %1966 = vmatpush1.msra.mxu1 %v1920_v32 }
0x212c   :  { %1967 = vmatprep.subr.mxu1 %v1919_v34  ;;  %v1029_v34 = vrot.slane %v5057_v15, 6 }
0x212d   :  { %1968 = vmatpush1.msra.mxu1 %v1918_v10 }
0x212e   :  { %1969 = vmatprep.subr.mxu1 %v1917_v20 }
0x212f   :  { %1970 = vmatpush1.msra.mxu1 %v1916_v39 }
0x21e6   :  { %v1751_v40 = vpop.f32.mrf.mxu1 }
0x21e7   :  { %v1756_v41 = vrot.slane %v1751_v40, 6  ;;  %v1915_v40 = vld [vmem:[#allocation7 + $0x28] sm:$0xff] }
0x21e8   :  { %v4199_v42 = vpop.f32.mrf.mxu1  ;;  %1971 = vmatprep.subr.mxu1 %v1915_v40 }
0x21e9   :  { %v1758_v44 = vadd.f32 %v1756_v41, %v4861_v21  ;;  %v1914_v41 = vld [vmem:[#allocation7 + $0x20] sm:$0xff]  ;;  %v1913_v42 = vld [vmem:[#allocation7 + $0x18] sm:$0xff] }
0x21ea   :  { %1972 = vmatpush1.msra.mxu1 %v1914_v41 }
0x21eb   :  { %v1759_v26 = vmul.f32 %v1758_v44, %v4875_v28  ;;  %v1912_v44 = vld [vmem:[#allocation7 + $0x10] sm:$0xff]  ;;  %1973 = vmatprep.subr.mxu1 %v1913_v42 }
0x21ec   :  { %1974 = vmatpush1.msra.mxu1 %v1912_v44 }
0x21ed   :  { %4474 = vtanh.f32 %v1759_v26  ;;  %v1911_v26 = vld [vmem:[#allocation7 + $0x8] sm:$0xff] }
0x21ee   :  { %1975 = vmatprep.subr.mxu1 %v1911_v26 }
0x21fa   :  { %v4475_v48 = vpop.eup %4474 }
0x21fb   :  { %v1761_v49 = vmul.f32 0.5, %v4475_v48 }
0x21fd   :  { %v1762_v51 = vadd.f32 0.5, %v1761_v49  ;;  %v5237_v49 = vld [vmem:[#allocation8] sm:$0xff] }
0x21ff   :  { %v1763_v52 = vsel %vm4863_vm4, %v4475_v48, %v1762_v51  ;;  %v1910_v48 = vld [vmem:[#allocation7] sm:$0xff] }
0x2200   :  { %1769 = vrot.lane.b32.xlu0 %v1763_v52, %s4713_s0  ;;  %v1767_v56 = vmul.f32 %v1765_v55, %v1763_v52  ;;  %1976 = vmatpush1.msra.mxu1 %v1910_v48 }
0x2201   :  { %4233 = vmatprep.subr.mxu1 %v4710_v0 }
0x2272   :  { %v1770_v53 = vpop.permute.xlu0 %1769 }
0x2273   :  { %v1772_v54 = vmul.f32 %v1770_v53, %v1763_v52 }
0x2275   :  { %1774 = vrot.lane.b32.xlu1 %v1772_v54, %s4714_s29 }
0x22e7   :  { %v1775_v58 = vpop.permute.xlu1 %1774 }
0x22e8   :  { %v1777_v60 = vadd.f32 %v1775_v58, %v1767_v56 }
0x22ea   :  { %4476 = vtanh.f32 %v1777_v60 }
0x22f7   :  { %v4477_v61 = vpop.eup %4476 }
0x22f8   :  { %1780 = vrot.lane.b32.xlu0 %v4477_v61, %s4713_s0  ;;  %v5272_v61 = vld [vmem:[#allocation10] sm:$0x3] }
0x236a   :  { %v1781_v62 = vpop.permute.xlu0 %1780 }
0x236b   :  { %v5204_v63 = vmul.f32 %v1781_v62, %v1763_v52  ;;  %v5277_v62 = vrot.slane %v5272_v61, %v125_v16 }
0x236d   :  { %v1785_v1 = vrot.slane %v5204_v63, 2 }
0x236f   :  { %1786 = vrot.lane.b32.xlu1 %v1785_v1, %s4714_s29 }
0x23e1   :  { %v1787_v2 = vpop.permute.xlu1 %1786 }
0x23e2   :  { %4209 = vmatmul.mubr.msk.f32.vlgmr.msra.gmra.mxu0 %vm221_vm5, %v1787_v2 }
0x23e3   :  { %4219 = vmatprep.mubr.msk.f32.mxu0 %vm4711_vm0, %v4710_v0  ;;  %4212 = vmatpush3.msra.mxu0 %v5224_v33 }
0x23e4   :  { %4213 = vmatprep.subr.mxu0 %v4710_v0 }
0x24a2   :  { %v1856_v17 = vpop.f32.mrf.mxu0 }
0x24a3   :  { %v1860_v25 = vadd.f32 %v1856_v17, %v4861_v21  ;;  %v1867_v21 = vrot.slane %v1777_v60, 2 }
0x24a4   :  { %v4210_v3 = vpop.f32.mrf.mxu0 }
0x24a5   :  { %v1861_v4 = vmul.f32 %v1860_v25, %v4875_v28 }
0x24a7   :  { %4478 = vtanh.f32 %v1861_v4 }
0x24b4   :  { %v4479_v6 = vpop.eup %4478 }
0x24b5   :  { %v1863_v11 = vmul.f32 0.5, %v4479_v6 }
0x24b7   :  { %v1864_v14 = vadd.f32 0.5, %v1863_v11 }
0x24b9   :  { %v5215_v18 = vsel %vm4863_vm4, %v4479_v6, %v1864_v14  ;;  %v1020_v14 = vrot.slane %v5095_v35, 2 }
0x24ba   :  { %1871 = vrot.lane.b32.xlu0 %v5215_v18, %s4713_s0  ;;  %v1869_v22 = vmul.f32 %v1867_v21, %v5215_v18 }
0x252c   :  { %v1872_v19 = vpop.permute.xlu0 %1871 }
0x252d   :  { %v1874_v43 = vmul.f32 %v1872_v19, %v5215_v18 }
0x252f   :  { %1876 = vrot.lane.b32.xlu1 %v1874_v43, %s4714_s29 }
0x2533   :  { %1894 = vrot.lane.b32.xlu1 %v4948_v57, %s4714_s29  ;;  %v5227_v57 = vld [vmem:[#allocation8 + $0x10] sm:$0xff] }
0x2534   :  { %4214 = vmatpush3.msra.mxu0 %v5227_v57 }
0x2535   :  { %4215 = vmatprep.subr.mxu0 %v4710_v0 }
0x2536   :  { %4216 = vmatpush3.msra.mxu0 %v5231_v36 }
0x2537   :  { %4217 = vmatprep.subr.mxu0 %v4710_v0 }
0x2538   :  { %4218 = vmatpush3.msra.mxu0 %v5237_v49 }
0x2539   :  { %4220 = vmatmul.mubr.f32.vlgmr.msra.gmra.mxu0 %v4710_v0  ;;  %4222 = vmatprep.subr.mxu0 %v4710_v0 }
0x253a   :  { %4223 = vmatpush3.msra.mxu0 %v5224_v33  ;;  %4230 = vmatprep.mubr.msk.f32.mxu0 %vm4711_vm0, %v4710_v0 }
0x253b   :  { %4224 = vmatprep.subr.mxu0 %v4710_v0 }
0x253c   :  { %4225 = vmatpush3.msra.mxu0 %v5227_v57 }
0x253d   :  { %4226 = vmatprep.subr.mxu0 %v4710_v0 }
0x253e   :  { %4227 = vmatpush3.msra.mxu0 %v5231_v36 }
0x253f   :  { %4228 = vmatprep.subr.mxu0 %v4710_v0 }
0x2540   :  { %4229 = vmatpush3.msra.mxu0 %v5237_v49 }
0x2541   :  { %4244 = vmatprep.subr.mxu0 %v4710_v0 }
0x25a1   :  { %v1877_v27 = vpop.permute.xlu1 %1876 }
0x25a2   :  { %v1879_v29 = vadd.f32 %v1877_v27, %v1869_v22 }
0x25a4   :  { %4480 = vtanh.f32 %v1879_v29 }
0x25a5   :  { %v1895_v56 = vpop.permute.xlu1 %1894 }
0x25b1   :  { %v4481_v38 = vpop.eup %4480 }
0x25b2   :  { %1882 = vrot.lane.b32.xlu0 %v4481_v38, %s4713_s0 }
0x2624   :  { %v1883_v51 = vpop.permute.xlu0 %1882 }
0x2625   :  { %v1885_v52 = vmul.f32 %v1883_v51, %v5215_v18  ;;  %v1022_v18 = vadd.f32 %v1020_v14, %v4867_v24 }
0x2627   :  { %v1886_v53 = vsel %vm1048_vm6, %v1885_v52, %v5204_v63  ;;  %v1023_v19 = vmul.f32 %v1022_v18, %v4875_v28 }
0x2628   :  { %v1887_v54 = vsel %vm1050_vm7, %v1886_v53, %v5191_v37 }
0x2629   :  { %v1888_v55 = vsel %vm1052_vm8, %v1887_v54, %v5169_v8  ;;  %v2092_v8 = vpop.f32.mrf.mxu0 }
0x262a   :  { %1902 = vrot.lane.b32.xlu0 %v1888_v55, %s4713_s0 }
0x262b   :  { %v4221_v37 = vpop.f32.mrf.mxu0 }
0x269c   :  { %v1903_v58 = vpop.permute.xlu0 %1902 }
0x269d   :  { %v1908_v60 = vsel %vm221_vm5, %v1895_v56, %v1903_v58 }
0x269e   :  { %3846 = vmatmul.mubr.msk.f32.vlgmr.msra.gmra.mxu1 %vm1938_vm9, %v1908_v60 }
0x269f   :  { %2015 = vmatprep.mubr.f32.mxu1 %v4710_v0  ;;  %4234 = vmatpush3.msra.mxu1 %v5224_v33 }
0x26a0   :  { %4235 = vmatprep.subr.mxu1 %v4710_v0 }
0x26a1   :  { %4236 = vmatpush3.msra.mxu1 %v5227_v57 }
0x26a2   :  { %4237 = vmatprep.subr.mxu1 %v4710_v0 }
0x26a3   :  { %4238 = vmatpush3.msra.mxu1 %v5231_v36 }
0x26a4   :  { %4239 = vmatprep.subr.mxu1 %v4710_v0 }
0x26a5   :  { %4240 = vmatpush3.msra.mxu1 %v5237_v49 }
0x26a6   :  { %4255 = vmatprep.subr.mxu1 %v4710_v0 }
0x275e   :  { %v2011_v63 = vpop.f32.mrf.mxu1 }
0x275f   :  { %v5280_v1 = vadd.f32 %v2011_v63, %v5277_v62  ;;  %v1889_v63 = vsel %vm1048_vm6, %v5148_v50, %v5126_v5 }
0x2761   :  { %v2096_v2 = vadd.f32 %v2092_v8, %v5280_v1 }
0x2763   :  { %v2097_v17 = vmul.f32 %v2096_v2, %v4875_v28 }
0x2765   :  { %4482 = vtanh.f32 %v2097_v17  ;;  %v1890_v17 = vsel %vm1050_vm7, %v1889_v63, %v5104_v59 }
0x2766   :  { %4484 = vtanh.f32 %v1023_v19 }
0x2772   :  { %v4483_v25 = vpop.eup %4482 }
0x2773   :  { %v2099_v3 = vmul.f32 0.5, %v4483_v25  ;;  %v4485_v27 = vpop.eup %4484 }
0x2774   :  { %v1025_v29 = vmul.f32 0.5, %v4485_v27 }
0x2775   :  { %v2100_v4 = vadd.f32 0.5, %v2099_v3 }
0x2776   :  { %v1026_v30 = vadd.f32 0.5, %v1025_v29 }
0x2777   :  { %v2101_v6 = vsel %vm4863_vm4, %v4483_v25, %v2100_v4  ;;  %v1891_v25 = vsel %vm1052_vm8, %v1890_v17, %v5069_v9  ;;  %v5347_v9 = vpop.f32.mrf.mxu1 }
0x2778   :  { %2104 = vrot.lane.b32.xlu1 %v2101_v6, %s4713_s0  ;;  %v2102_v43 = vmul.f32 0.0, %v2101_v6  ;;  %v1027_v46 = vsel %vm4863_vm4, %v4485_v27, %v1026_v30 }
0x2779   :  { %v1031_v10 = vmul.f32 %v1029_v34, %v1027_v46 }
0x27ea   :  { %v2105_v11 = vpop.permute.xlu1 %2104 }
0x27eb   :  { %v2107_v16 = vmul.f32 %v2105_v11, %v2101_v6 }
0x27ed   :  { %2109 = vrot.lane.b32.xlu0 %v2107_v16, %s4714_s29 }
0x285f   :  { %v2110_v21 = vpop.permute.xlu0 %2109 }
0x2860   :  { %v2112_v22 = vadd.f32 %v2110_v21, %v2102_v43 }
0x2862   :  { %4486 = vtanh.f32 %v2112_v22  ;;  %v2204_v58 = vrot.slane %v2112_v22, 6 }
0x286f   :  { %v4487_v45 = vpop.eup %4486 }
0x2870   :  { %2115 = vrot.lane.b32.xlu1 %v4487_v45, %s4713_s0 }
0x2874   :  { %1033 = vrot.lane.b32.xlu1 %v1027_v46, %s4713_s0 }
0x28e2   :  { %v2116_v35 = vpop.permute.xlu1 %2115 }
0x28e3   :  { %v5295_v24 = vmul.f32 %v2116_v35, %v2101_v6 }
0x28e5   :  { %2120 = vrot.lane.b32.xlu0 %v5295_v24, %s4714_s29 }
0x28e6   :  { %v1034_v31 = vpop.permute.xlu1 %1033 }
0x28e7   :  { %v1036_v47 = vmul.f32 %v1034_v31, %v1027_v46 }
0x28e9   :  { %1038 = vrot.lane.b32.xlu1 %v1036_v47, %s4714_s29 }
0x2957   :  { %v2121_v32 = vpop.permute.xlu0 %2120 }
0x2958   :  { %4231 = vmatmul.mubr.msk.f32.vlgmr.msra.gmra.mxu0 %vm221_vm5, %v2121_v32 }
0x2959   :  { %4245 = vmatpush3.msra.mxu0 %v5224_v33  ;;  %4252 = vmatprep.mubr.msk.f32.mxu0 %vm4711_vm0, %v4710_v0 }
0x295a   :  { %4246 = vmatprep.subr.mxu0 %v4710_v0 }
0x295b   :  { %v1039_v20 = vpop.permute.xlu1 %1038  ;;  %4247 = vmatpush3.msra.mxu0 %v5227_v57 }
0x295c   :  { %v1041_v38 = vadd.f32 %v1039_v20, %v1031_v10  ;;  %4248 = vmatprep.subr.mxu0 %v4710_v0 }
0x295d   :  { %4249 = vmatpush3.msra.mxu0 %v5231_v36 }
0x295e   :  { %4488 = vtanh.f32 %v1041_v38  ;;  %4250 = vmatprep.subr.mxu0 %v4710_v0 }
0x295f   :  { %4251 = vmatpush3.msra.mxu0 %v5237_v49 }
0x2960   :  { %4266 = vmatprep.subr.mxu0 %v4710_v0 }
0x296b   :  { %v4489_v15 = vpop.eup %4488 }
0x296c   :  { %1044 = vrot.lane.b32.xlu1 %v4489_v15, %s4713_s0 }
0x29de   :  { %v1045_v39 = vpop.permute.xlu1 %1044 }
0x29df   :  { %v1047_v40 = vmul.f32 %v1045_v39, %v1027_v46 }
0x29e1   :  { %v1056_v41 = vsel %vm1052_vm8, %v5066_v7, %v1047_v40 }
0x29e2   :  { %1896 = vrot.lane.b32.xlu1 %v1056_v41, %s4714_s29 }
0x2a18   :  { %v2190_v42 = vpop.f32.mrf.mxu0 }
0x2a19   :  { %v2195_v44 = vrot.slane %v2190_v42, 6 }
0x2a1a   :  { %v4232_v26 = vpop.f32.mrf.mxu0 }
0x2a1b   :  { %v2197_v48 = vadd.f32 %v2195_v44, %v5280_v1 }
0x2a1d   :  { %v2198_v51 = vmul.f32 %v2197_v48, %v4875_v28 }
0x2a1f   :  { %4490 = vtanh.f32 %v2198_v51 }
0x2a2c   :  { %v4491_v52 = vpop.eup %4490 }
0x2a2d   :  { %v2200_v53 = vmul.f32 0.5, %v4491_v52 }
0x2a2f   :  { %v2201_v54 = vadd.f32 0.5, %v2200_v53 }
0x2a31   :  { %v2202_v55 = vsel %vm4863_vm4, %v4491_v52, %v2201_v54 }
0x2a32   :  { %2208 = vrot.lane.b32.xlu0 %v2202_v55, %s4713_s0  ;;  %v2206_v60 = vmul.f32 %v2204_v58, %v2202_v55 }
0x2a54   :  { %v1897_v11 = vpop.permute.xlu1 %1896 }
0x2aa4   :  { %v2209_v56 = vpop.permute.xlu0 %2208 }
0x2aa5   :  { %v2211_v7 = vmul.f32 %v2209_v56, %v2202_v55 }
0x2aa7   :  { %2213 = vrot.lane.b32.xlu0 %v2211_v7, %s4714_s29 }
0x2b19   :  { %v2214_v8 = vpop.permute.xlu0 %2213 }
0x2b1a   :  { %v2216_v37 = vadd.f32 %v2214_v8, %v2206_v60 }
0x2b1c   :  { %4492 = vtanh.f32 %v2216_v37  ;;  %v2309_v31 = vrot.slane %v2216_v37, 6 }
0x2b29   :  { %v4493_v2 = vpop.eup %4492 }
0x2b2a   :  { %2219 = vrot.lane.b32.xlu0 %v4493_v2, %s4713_s0 }
0x2b2e   :  { %1904 = vrot.lane.b32.xlu0 %v1891_v25, %s4713_s0 }
0x2b9c   :  { %v2220_v3 = vpop.permute.xlu0 %2219 }
0x2b9d   :  { %v2222_v4 = vmul.f32 %v2220_v3, %v2202_v55 }
0x2b9f   :  { %v2224_v6 = vrot.slane %v2222_v4, 2  ;;  %v2849_v15 = vsel %vm1048_vm6, %v5295_v24, %v2222_v4 }
0x2ba0   :  { %v1905_v16 = vpop.permute.xlu0 %1904 }
0x2ba1   :  { %v1909_v14 = vsel %vm221_vm5, %v1897_v11, %v1905_v16  ;;  %2225 = vrot.lane.b32.xlu1 %v2224_v6, %s4714_s29 }
0x2ba2   :  { %3847 = vmatmul.mubr.msk.f32.gmra.mxu1 %vm1938_vm9, %v1909_v14 }
0x2ba3   :  { %4241 = vmatprep.mubr.msk.f32.mxu1 %vm4711_vm0, %v4710_v0 }
0x2c13   :  { %v2226_v59 = vpop.permute.xlu1 %2225 }
0x2c14   :  { %4242 = vmatmul.mubr.msk.f32.vlgmr.msra.gmra.mxu1 %vm221_vm5, %v2226_v59 }
0x2c15   :  { %4256 = vmatpush3.msra.mxu1 %v5224_v33  ;;  %4263 = vmatprep.mubr.msk.f32.mxu1 %vm4711_vm0, %v4710_v0 }
0x2c16   :  { %4257 = vmatprep.subr.mxu1 %v4710_v0 }
0x2c17   :  { %4258 = vmatpush3.msra.mxu1 %v5227_v57 }
0x2c18   :  { %4259 = vmatprep.subr.mxu1 %v4710_v0 }
0x2c19   :  { %4260 = vmatpush3.msra.mxu1 %v5231_v36 }
0x2c1a   :  { %4261 = vmatprep.subr.mxu1 %v4710_v0 }
0x2c1b   :  { %4262 = vmatpush3.msra.mxu1 %v5237_v49 }
0x2c1c   :  { %4277 = vmatprep.subr.mxu1 %v4710_v0 }
0x2c62   :  { %v5349_v5 = vpop.f32.mrf.mxu1 }
0x2c63   :  { %v5399_v3 = vadd.f32 %v5349_v5, %v5277_v62 }
0x2c64   :  { %v5351_v50 = vpop.f32.mrf.mxu1 }
0x2cd4   :  { %v2295_v18 = vpop.f32.mrf.mxu1 }
0x2cd5   :  { %v2300_v19 = vrot.slane %v2295_v18, 4 }
0x2cd6   :  { %v4243_v43 = vpop.f32.mrf.mxu1 }
0x2cd7   :  { %v2302_v21 = vadd.f32 %v2300_v19, %v5280_v1 }
0x2cd9   :  { %v2303_v22 = vmul.f32 %v2302_v21, %v4875_v28 }
0x2cdb   :  { %4494 = vtanh.f32 %v2303_v22 }
0x2ce8   :  { %v4495_v27 = vpop.eup %4494 }
0x2ce9   :  { %v2305_v29 = vmul.f32 0.5, %v4495_v27 }
0x2ceb   :  { %v2306_v45 = vadd.f32 0.5, %v2305_v29 }
0x2ced   :  { %v2307_v30 = vsel %vm4863_vm4, %v4495_v27, %v2306_v45 }
0x2cee   :  { %2313 = vrot.lane.b32.xlu0 %v2307_v30, %s4713_s0  ;;  %v2311_v47 = vmul.f32 %v2309_v31, %v2307_v30 }
0x2d60   :  { %v2314_v46 = vpop.permute.xlu0 %2313 }
0x2d61   :  { %v2316_v35 = vmul.f32 %v2314_v46, %v2307_v30 }
0x2d63   :  { %2318 = vrot.lane.b32.xlu1 %v2316_v35, %s4714_s29 }
0x2dd5   :  { %v2319_v32 = vpop.permute.xlu1 %2318 }
0x2dd6   :  { %v2321_v34 = vadd.f32 %v2319_v32, %v2311_v47 }
0x2dd8   :  { %4496 = vtanh.f32 %v2321_v34  ;;  %v2414_v7 = vrot.slane %v2321_v34, 6 }
0x2de5   :  { %v4497_v10 = vpop.eup %4496 }
0x2de6   :  { %2324 = vrot.lane.b32.xlu0 %v4497_v10, %s4713_s0 }
0x2e58   :  { %v2325_v20 = vpop.permute.xlu0 %2324 }
0x2e59   :  { %v2327_v38 = vmul.f32 %v2325_v20, %v2307_v30 }
0x2e5b   :  { %v2329_v39 = vrot.slane %v2327_v38, 4  ;;  %v2850_v40 = vsel %vm1050_vm7, %v2849_v15, %v2327_v38 }
0x2e5d   :  { %2330 = vrot.lane.b32.xlu1 %v2329_v39, %s4714_s29 }
0x2ecf   :  { %v2331_v41 = vpop.permute.xlu1 %2330 }
0x2ed0   :  { %4253 = vmatmul.mubr.msk.f32.vlgmr.msra.gmra.mxu0 %vm221_vm5, %v2331_v41 }
0x2ed1   :  { %4267 = vmatpush3.msra.mxu0 %v5224_v33  ;;  %4274 = vmatprep.mubr.msk.f32.mxu0 %vm4711_vm0, %v4710_v0 }
0x2ed2   :  { %4268 = vmatprep.subr.mxu0 %v4710_v0 }
0x2ed3   :  { %4269 = vmatpush3.msra.mxu0 %v5227_v57 }
0x2ed4   :  { %4270 = vmatprep.subr.mxu0 %v4710_v0 }
0x2ed5   :  { %4271 = vmatpush3.msra.mxu0 %v5231_v36 }
0x2ed6   :  { %4272 = vmatprep.subr.mxu0 %v4710_v0 }
0x2ed7   :  { %4273 = vmatpush3.msra.mxu0 %v5237_v49 }
0x2ed8   :  { %4288 = vmatprep.subr.mxu0 %v4710_v0 }
0x2f90   :  { %v2400_v24 = vpop.f32.mrf.mxu0 }
0x2f91   :  { %v2405_v42 = vrot.slane %v2400_v24, 2 }
0x2f92   :  { %v4254_v44 = vpop.f32.mrf.mxu0 }
0x2f93   :  { %v2407_v26 = vadd.f32 %v2405_v42, %v5280_v1 }
0x2f95   :  { %v2408_v48 = vmul.f32 %v2407_v26, %v4875_v28  ;;  %v5437_v26 = vld [vmem:[#allocation8 + $0x38] sm:$0xff] }
0x2f97   :  { %4498 = vtanh.f32 %v2408_v48 }
0x2fa4   :  { %v4499_v51 = vpop.eup %4498 }
0x2fa5   :  { %v2410_v52 = vmul.f32 0.5, %v4499_v51 }
0x2fa7   :  { %v2411_v53 = vadd.f32 0.5, %v2410_v52  ;;  %v5446_v52 = vld [vmem:[#allocation8 + $0x28] sm:$0xff] }
0x2fa9   :  { %v2412_v54 = vsel %vm4863_vm4, %v4499_v51, %v2411_v53  ;;  %v5440_v51 = vld [vmem:[#allocation8 + $0x30] sm:$0xff]  ;;  %v5450_v53 = vld [vmem:[#allocation8 + $0x20] sm:$0xff] }
0x2faa   :  { %2418 = vrot.lane.b32.xlu0 %v2412_v54, %s4713_s0  ;;  %v2416_v58 = vmul.f32 %v2414_v7, %v2412_v54 }
0x301c   :  { %v2419_v55 = vpop.permute.xlu0 %2418 }
0x301d   :  { %v2421_v56 = vmul.f32 %v2419_v55, %v2412_v54 }
0x301f   :  { %2423 = vrot.lane.b32.xlu1 %v2421_v56, %s4714_s29 }
0x3091   :  { %v2424_v60 = vpop.permute.xlu1 %2423 }
0x3092   :  { %v2426_v8 = vadd.f32 %v2424_v60, %v2416_v58  ;;  %v5472_v60 = vrot.slane %v5272_v61, %v129_v13 }
0x3094   :  { %4500 = vtanh.f32 %v2426_v8  ;;  %v2516_v62 = vrot.slane %v2426_v8, 6 }
0x30a1   :  { %v4501_v1 = vpop.eup %4500 }
0x30a2   :  { %2429 = vrot.lane.b32.xlu0 %v4501_v1, %s4713_s0  ;;  %v5476_v1 = vadd.f32 %v5351_v50, %v5472_v60 }
0x3114   :  { %v2430_v37 = vpop.permute.xlu0 %2429 }
0x3115   :  { %v2432_v63 = vmul.f32 %v2430_v37, %v2412_v54 }
0x3117   :  { %v2434_v2 = vrot.slane %v2432_v63, 6  ;;  %v5383_v17 = vsel %vm1052_vm8, %v2850_v40, %v2432_v63 }
0x3119   :  { %2435 = vrot.lane.b32.xlu1 %v2434_v2, %s4714_s29 }
0x318b   :  { %v2436_v25 = vpop.permute.xlu1 %2435 }
0x318c   :  { %4264 = vmatmul.mubr.msk.f32.vlgmr.msra.gmra.mxu1 %vm221_vm5, %v2436_v25 }
0x318d   :  { %4278 = vmatpush3.msra.mxu1 %v5224_v33  ;;  %4285 = vmatprep.mubr.msk.f32.mxu1 %vm4711_vm0, %v4710_v0 }
0x318e   :  { %4279 = vmatprep.subr.mxu1 %v4710_v0 }
0x318f   :  { %4280 = vmatpush3.msra.mxu1 %v5227_v57 }
0x3190   :  { %4281 = vmatprep.subr.mxu1 %v4710_v0 }
0x3191   :  { %4282 = vmatpush3.msra.mxu1 %v5231_v36 }
0x3192   :  { %4283 = vmatprep.subr.mxu1 %v4710_v0 }
0x3193   :  { %4284 = vmatpush3.msra.mxu1 %v5237_v49 }
0x3194   :  { %4299 = vmatprep.subr.mxu1 %v4710_v0 }
0x324c   :  { %v2505_v4 = vpop.f32.mrf.mxu1 }
0x324d   :  { %v2509_v6 = vadd.f32 %v2505_v4, %v5399_v3 }
0x324e   :  { %v4265_v11 = vpop.f32.mrf.mxu1 }
0x324f   :  { %v2510_v16 = vmul.f32 %v2509_v6, %v4875_v28 }
0x3251   :  { %4502 = vtanh.f32 %v2510_v16 }
0x325e   :  { %v4503_v14 = vpop.eup %4502 }
0x325f   :  { %v2512_v59 = vmul.f32 0.5, %v4503_v14 }
0x3261   :  { %v2513_v18 = vadd.f32 0.5, %v2512_v59 }
0x3263   :  { %v2514_v19 = vsel %vm4863_vm4, %v4503_v14, %v2513_v18 }
0x3264   :  { %2520 = vrot.lane.b32.xlu0 %v2514_v19, %s4713_s0  ;;  %v2518_v5 = vmul.f32 %v2516_v62, %v2514_v19 }
0x32d6   :  { %v2521_v43 = vpop.permute.xlu0 %2520 }
0x32d7   :  { %v2523_v21 = vmul.f32 %v2521_v43, %v2514_v19 }
0x32d9   :  { %2525 = vrot.lane.b32.xlu1 %v2523_v21, %s4714_s29 }
0x334b   :  { %v2526_v22 = vpop.permute.xlu1 %2525 }
0x334c   :  { %v2528_v27 = vadd.f32 %v2526_v22, %v2518_v5 }
0x334e   :  { %4504 = vtanh.f32 %v2528_v27  ;;  %v2620_v38 = vrot.slane %v2528_v27, 6 }
0x335b   :  { %v4505_v29 = vpop.eup %4504 }
0x335c   :  { %2531 = vrot.lane.b32.xlu0 %v4505_v29, %s4713_s0 }
0x33ce   :  { %v2532_v45 = vpop.permute.xlu0 %2531 }
0x33cf   :  { %v5408_v30 = vmul.f32 %v2532_v45, %v2514_v19 }
0x33d1   :  { %2536 = vrot.lane.b32.xlu1 %v5408_v30, %s4714_s29 }
0x3443   :  { %v2537_v46 = vpop.permute.xlu1 %2536 }
0x3444   :  { %4275 = vmatmul.mubr.msk.f32.vlgmr.msra.gmra.mxu0 %vm221_vm5, %v2537_v46 }
0x3445   :  { %4289 = vmatpush3.msra.mxu0 %v5224_v33  ;;  %4296 = vmatprep.mubr.msk.f32.mxu0 %vm4711_vm0, %v4710_v0 }
0x3446   :  { %4290 = vmatprep.subr.mxu0 %v4710_v0 }
0x3447   :  { %4291 = vmatpush3.msra.mxu0 %v5227_v57 }
0x3448   :  { %4292 = vmatprep.subr.mxu0 %v4710_v0 }
0x3449   :  { %4293 = vmatpush3.msra.mxu0 %v5231_v36 }
0x344a   :  { %4294 = vmatprep.subr.mxu0 %v4710_v0 }
0x344b   :  { %4295 = vmatpush3.msra.mxu0 %v5237_v49 }
0x344c   :  { %4310 = vmatprep.subr.mxu0 %v4710_v0 }
0x3504   :  { %v2606_v35 = vpop.f32.mrf.mxu0 }
0x3505   :  { %v2611_v31 = vrot.slane %v2606_v35, 6 }
0x3506   :  { %v4276_v33 = vpop.f32.mrf.mxu0 }
0x3507   :  { %v2613_v47 = vadd.f32 %v2611_v31, %v5399_v3 }
0x3509   :  { %v2614_v32 = vmul.f32 %v2613_v47, %v4875_v28 }
0x350b   :  { %4506 = vtanh.f32 %v2614_v32 }
0x3518   :  { %v4507_v34 = vpop.eup %4506 }
0x3519   :  { %v2616_v57 = vmul.f32 0.5, %v4507_v34 }
0x351b   :  { %v2617_v10 = vadd.f32 0.5, %v2616_v57 }
0x351d   :  { %v2618_v36 = vsel %vm4863_vm4, %v4507_v34, %v2617_v10 }
0x351e   :  { %2624 = vrot.lane.b32.xlu0 %v2618_v36, %s4713_s0  ;;  %v2622_v15 = vmul.f32 %v2620_v38, %v2618_v36 }
0x3590   :  { %v2625_v20 = vpop.permute.xlu0 %2624 }
0x3591   :  { %v2627_v49 = vmul.f32 %v2625_v20, %v2618_v36 }
0x3593   :  { %2629 = vrot.lane.b32.xlu1 %v2627_v49, %s4714_s29 }
0x3605   :  { %v2630_v39 = vpop.permute.xlu1 %2629 }
0x3606   :  { %v5429_v40 = vadd.f32 %v2630_v39, %v2622_v15 }
0x3608   :  { %4508 = vtanh.f32 %v5429_v40  ;;  %v2725_v43 = vrot.slane %v5429_v40, 6 }
0x3615   :  { %v4509_v41 = vpop.eup %4508 }
0x3616   :  { %2635 = vrot.lane.b32.xlu0 %v4509_v41, %s4713_s0 }
0x3688   :  { %v2636_v24 = vpop.permute.xlu0 %2635 }
0x3689   :  { %v5433_v42 = vmul.f32 %v2636_v24, %v2618_v36 }
0x368b   :  { %v2640_v44 = vrot.slane %v5433_v42, 2  ;;  %v2852_v33 = vsel %vm1048_vm6, %v5408_v30, %v5433_v42 }
0x368d   :  { %2641 = vrot.lane.b32.xlu1 %v2640_v44, %s4714_s29 }
0x36ff   :  { %v2642_v48 = vpop.permute.xlu1 %2641 }
0x3700   :  { %4286 = vmatmul.mubr.msk.f32.vlgmr.msra.gmra.mxu1 %vm221_vm5, %v2642_v48 }
0x3701   :  { %4300 = vmatpush3.msra.mxu1 %v5437_v26  ;;  %4307 = vmatprep.mubr.msk.f32.mxu1 %vm4711_vm0, %v4710_v0 }
0x3702   :  { %4301 = vmatprep.subr.mxu1 %v4710_v0 }
0x3703   :  { %4302 = vmatpush3.msra.mxu1 %v5440_v51 }
0x3704   :  { %4303 = vmatprep.subr.mxu1 %v4710_v0 }
0x3705   :  { %4304 = vmatpush3.msra.mxu1 %v5446_v52 }
0x3706   :  { %4305 = vmatprep.subr.mxu1 %v4710_v0 }
0x3707   :  { %4306 = vmatpush3.msra.mxu1 %v5450_v53 }
0x3708   :  { %4308 = vmatmul.mubr.f32.vlgmr.msra.gmra.mxu1 %v4710_v0  ;;  %4321 = vmatprep.subr.mxu1 %v4710_v0 }
0x3709   :  { %4322 = vmatpush3.msra.mxu1 %v5437_v26  ;;  %4329 = vmatprep.mubr.msk.f32.mxu1 %vm4711_vm0, %v4710_v0 }
0x370a   :  { %4323 = vmatprep.subr.mxu1 %v4710_v0 }
0x370b   :  { %4324 = vmatpush3.msra.mxu1 %v5440_v51 }
0x370c   :  { %4325 = vmatprep.subr.mxu1 %v4710_v0 }
0x370d   :  { %4326 = vmatpush3.msra.mxu1 %v5446_v52 }
0x370e   :  { %4327 = vmatprep.subr.mxu1 %v4710_v0 }
0x370f   :  { %4328 = vmatpush3.msra.mxu1 %v5450_v53 }
0x3710   :  { %4343 = vmatprep.subr.mxu1 %v4710_v0 }
0x37c0   :  { %v2711_v54 = vpop.f32.mrf.mxu1 }
0x37c1   :  { %v2716_v55 = vrot.slane %v2711_v54, 4 }
0x37c2   :  { %v4287_v56 = vpop.f32.mrf.mxu1 }
0x37c3   :  { %v2718_v7 = vadd.f32 %v2716_v55, %v5399_v3 }
0x37c5   :  { %v2719_v58 = vmul.f32 %v2718_v7, %v4875_v28 }
0x37c7   :  { %4510 = vtanh.f32 %v2719_v58 }
0x37c8   :  { %v2926_v8 = vpop.f32.mrf.mxu1 }
0x37c9   :  { %v2931_v37 = vrot.slane %v2926_v8, 2 }
0x37ca   :  { %v4309_v63 = vpop.f32.mrf.mxu1 }
0x37cb   :  { %v2933_v2 = vadd.f32 %v2931_v37, %v5476_v1 }
0x37cd   :  { %v2934_v25 = vmul.f32 %v2933_v2, %v4875_v28 }
0x37cf   :  { %4512 = vtanh.f32 %v2934_v25 }
0x37d4   :  { %v4511_v4 = vpop.eup %4510 }
0x37d5   :  { %v2721_v6 = vmul.f32 0.5, %v4511_v4 }
0x37d7   :  { %v2722_v11 = vadd.f32 0.5, %v2721_v6 }
0x37d9   :  { %v2723_v12 = vsel %vm4863_vm4, %v4511_v4, %v2722_v11 }
0x37da   :  { %2729 = vrot.lane.b32.xlu0 %v2723_v12, %s4713_s0  ;;  %v2727_v21 = vmul.f32 %v2725_v43, %v2723_v12 }
0x37dc   :  { %v4513_v13 = vpop.eup %4512 }
0x37dd   :  { %v2936_v61 = vmul.f32 0.5, %v4513_v13 }
0x37df   :  { %v2937_v16 = vadd.f32 0.5, %v2936_v61 }
0x37e1   :  { %v2938_v50 = vsel %vm4863_vm4, %v4513_v13, %v2937_v16 }
0x37e2   :  { %2941 = vrot.lane.b32.xlu1 %v2938_v50, %s4713_s0  ;;  %v2939_v22 = vmul.f32 0.0, %v2938_v50 }
0x384c   :  { %v2730_v14 = vpop.permute.xlu0 %2729 }
0x384d   :  { %v2732_v59 = vmul.f32 %v2730_v14, %v2723_v12 }
0x384f   :  { %2734 = vrot.lane.b32.xlu0 %v2732_v59, %s4714_s29 }
0x3854   :  { %v2942_v18 = vpop.permute.xlu1 %2941 }
0x3855   :  { %v2944_v19 = vmul.f32 %v2942_v18, %v2938_v50 }
0x3857   :  { %2946 = vrot.lane.b32.xlu1 %v2944_v19, %s4714_s29 }
0x38c1   :  { %v2735_v62 = vpop.permute.xlu0 %2734 }
0x38c2   :  { %v5489_v5 = vadd.f32 %v2735_v62, %v2727_v21 }
0x38c4   :  { %4514 = vtanh.f32 %v5489_v5 }
0x38c9   :  { %v2947_v27 = vpop.permute.xlu1 %2946 }
0x38ca   :  { %v2949_v29 = vadd.f32 %v2947_v27, %v2939_v22 }
0x38cc   :  { %4516 = vtanh.f32 %v2949_v29  ;;  %v3042_v56 = vrot.slane %v2949_v29, 2 }
0x38d1   :  { %v4515_v45 = vpop.eup %4514 }
0x38d2   :  { %2740 = vrot.lane.b32.xlu0 %v4515_v45, %s4713_s0 }
0x38d9   :  { %v4517_v46 = vpop.eup %4516 }
0x38da   :  { %2952 = vrot.lane.b32.xlu1 %v4517_v46, %s4713_s0 }
0x3944   :  { %v2741_v35 = vpop.permute.xlu0 %2740 }
0x3945   :  { %v2743_v31 = vmul.f32 %v2741_v35, %v2723_v12 }
0x3947   :  { %v2745_v47 = vrot.slane %v2743_v31, 4  ;;  %v5498_v32 = vsel %vm1050_vm7, %v2852_v33, %v2743_v31 }
0x3949   :  { %2746 = vrot.lane.b32.xlu0 %v2745_v47, %s4714_s29 }
0x394c   :  { %v2953_v34 = vpop.permute.xlu1 %2952 }
0x394d   :  { %v5501_v57 = vmul.f32 %v2953_v34, %v2938_v50 }
0x394f   :  { %v2957_v10 = vrot.slane %v5501_v57, 6 }
0x3951   :  { %2958 = vrot.lane.b32.xlu1 %v2957_v10, %s4714_s29 }
0x39bb   :  { %v2747_v36 = vpop.permute.xlu0 %2746 }
0x39bc   :  { %4297 = vmatmul.mubr.msk.f32.vlgmr.msra.gmra.mxu0 %vm221_vm5, %v2747_v36 }
0x39bd   :  { %4311 = vmatpush3.msra.mxu0 %v5437_v26  ;;  %4318 = vmatprep.mubr.msk.f32.mxu0 %vm4711_vm0, %v4710_v0 }
0x39be   :  { %4312 = vmatprep.subr.mxu0 %v4710_v0 }
0x39bf   :  { %4313 = vmatpush3.msra.mxu0 %v5440_v51 }
0x39c0   :  { %4314 = vmatprep.subr.mxu0 %v4710_v0 }
0x39c1   :  { %4315 = vmatpush3.msra.mxu0 %v5446_v52 }
0x39c2   :  { %4316 = vmatprep.subr.mxu0 %v4710_v0 }
0x39c3   :  { %4317 = vmatpush3.msra.mxu0 %v5450_v53  ;;  %v2959_v30 = vpop.permute.xlu1 %2958 }
0x39c4   :  { %4319 = vmatmul.mubr.msk.f32.vlgmr.msra.gmra.mxu0 %vm221_vm5, %v2959_v30  ;;  %4332 = vmatprep.subr.mxu0 %v4710_v0 }
0x39c5   :  { %4333 = vmatpush3.msra.mxu0 %v5437_v26  ;;  %4340 = vmatprep.mubr.msk.f32.mxu0 %vm4711_vm0, %v4710_v0 }
0x39c6   :  { %4334 = vmatprep.subr.mxu0 %v4710_v0 }
0x39c7   :  { %4335 = vmatpush3.msra.mxu0 %v5440_v51 }
0x39c8   :  { %4336 = vmatprep.subr.mxu0 %v4710_v0 }
0x39c9   :  { %4337 = vmatpush3.msra.mxu0 %v5446_v52 }
0x39ca   :  { %4338 = vmatprep.subr.mxu0 %v4710_v0 }
0x39cb   :  { %4339 = vmatpush3.msra.mxu0 %v5450_v53 }
0x39cc   :  { %4354 = vmatprep.subr.mxu0 %v4710_v0 }
0x3a7c   :  { %v5527_v20 = vpop.f32.mrf.mxu0 }
0x3a7e   :  { %v4298_v49 = vpop.f32.mrf.mxu0 }
0x3a84   :  { %v3028_v38 = vpop.f32.mrf.mxu0 }
0x3a85   :  { %v3033_v15 = vrot.slane %v3028_v38, 4 }
0x3a86   :  { %v4320_v39 = vpop.f32.mrf.mxu0 }
0x3a87   :  { %v3035_v40 = vadd.f32 %v3033_v15, %v5476_v1 }
0x3a89   :  { %v3036_v41 = vmul.f32 %v3035_v40, %v4875_v28 }
0x3a8b   :  { %4518 = vtanh.f32 %v3036_v41 }
0x3a98   :  { %v4519_v24 = vpop.eup %4518 }
0x3a99   :  { %v3038_v42 = vmul.f32 0.5, %v4519_v24 }
0x3a9b   :  { %v3039_v44 = vadd.f32 0.5, %v3038_v42 }
0x3a9d   :  { %v3040_v48 = vsel %vm4863_vm4, %v4519_v24, %v3039_v44 }
0x3a9e   :  { %3046 = vrot.lane.b32.xlu0 %v3040_v48, %s4713_s0  ;;  %v3044_v7 = vmul.f32 %v3042_v56, %v3040_v48 }
0x3b10   :  { %v3047_v54 = vpop.permute.xlu0 %3046 }
0x3b11   :  { %v3049_v55 = vmul.f32 %v3047_v54, %v3040_v48 }
0x3b13   :  { %3051 = vrot.lane.b32.xlu1 %v3049_v55, %s4714_s29  ;;  %v5596_v55 = vadd.f32 %v5347_v9, %v5472_v60 }
0x3b85   :  { %v3052_v58 = vpop.permute.xlu1 %3051 }
0x3b86   :  { %v3054_v8 = vadd.f32 %v3052_v58, %v3044_v7 }
0x3b88   :  { %4520 = vtanh.f32 %v3054_v8  ;;  %v3147_v43 = vrot.slane %v3054_v8, 2 }
0x3b95   :  { %v4521_v37 = vpop.eup %4520 }
0x3b96   :  { %3057 = vrot.lane.b32.xlu0 %v4521_v37, %s4713_s0 }
0x3c08   :  { %v3058_v63 = vpop.permute.xlu0 %3057 }
0x3c09   :  { %v5536_v2 = vmul.f32 %v3058_v63, %v3040_v48 }
0x3c0b   :  { %v3062_v25 = vrot.slane %v5536_v2, 4 }
0x3c0d   :  { %3063 = vrot.lane.b32.xlu1 %v3062_v25, %s4714_s29 }
0x3c7f   :  { %v3064_v4 = vpop.permute.xlu1 %3063 }
0x3c80   :  { %4330 = vmatmul.mubr.msk.f32.vlgmr.msra.gmra.mxu1 %vm221_vm5, %v3064_v4 }
0x3c81   :  { %4344 = vmatpush3.msra.mxu1 %v5437_v26  ;;  %4351 = vmatprep.mubr.msk.f32.mxu1 %vm4711_vm0, %v4710_v0 }
0x3c82   :  { %4345 = vmatprep.subr.mxu1 %v4710_v0 }
0x3c83   :  { %4346 = vmatpush3.msra.mxu1 %v5440_v51 }
0x3c84   :  { %4347 = vmatprep.subr.mxu1 %v4710_v0 }
0x3c85   :  { %4348 = vmatpush3.msra.mxu1 %v5446_v52 }
0x3c86   :  { %4349 = vmatprep.subr.mxu1 %v4710_v0 }
0x3c87   :  { %4350 = vmatpush3.msra.mxu1 %v5450_v53 }
0x3c88   :  { %4365 = vmatprep.subr.mxu1 %v4710_v0 }
0x3d40   :  { %v3133_v6 = vpop.f32.mrf.mxu1 }
0x3d41   :  { %v3138_v11 = vrot.slane %v3133_v6, 6 }
0x3d42   :  { %v4331_v12 = vpop.f32.mrf.mxu1 }
0x3d43   :  { %v3140_v13 = vadd.f32 %v3138_v11, %v5476_v1 }
0x3d45   :  { %v3141_v61 = vmul.f32 %v3140_v13, %v4875_v28 }
0x3d47   :  { %4522 = vtanh.f32 %v3141_v61 }
0x3d54   :  { %v4523_v16 = vpop.eup %4522 }
0x3d55   :  { %v3143_v50 = vmul.f32 0.5, %v4523_v16 }
0x3d57   :  { %v3144_v14 = vadd.f32 0.5, %v3143_v50 }
0x3d59   :  { %v3145_v59 = vsel %vm4863_vm4, %v4523_v16, %v3144_v14 }
0x3d5a   :  { %3151 = vrot.lane.b32.xlu0 %v3145_v59, %s4713_s0  ;;  %v3149_v21 = vmul.f32 %v3147_v43, %v3145_v59 }
0x3dcc   :  { %v3152_v18 = vpop.permute.xlu0 %3151 }
0x3dcd   :  { %v3154_v19 = vmul.f32 %v3152_v18, %v3145_v59 }
0x3dcf   :  { %3156 = vrot.lane.b32.xlu1 %v3154_v19, %s4714_s29 }
0x3e41   :  { %v3157_v62 = vpop.permute.xlu1 %3156 }
0x3e42   :  { %v3159_v22 = vadd.f32 %v3157_v62, %v3149_v21 }
0x3e44   :  { %4524 = vtanh.f32 %v3159_v22  ;;  %v3249_v39 = vrot.slane %v3159_v22, 2 }
0x3e51   :  { %v4525_v27 = vpop.eup %4524 }
0x3e52   :  { %3162 = vrot.lane.b32.xlu0 %v4525_v27, %s4713_s0 }
0x3ec4   :  { %v3163_v29 = vpop.permute.xlu0 %3162 }
0x3ec5   :  { %v5558_v45 = vmul.f32 %v3163_v29, %v3145_v59 }
0x3ec7   :  { %v3167_v46 = vrot.slane %v5558_v45, 2 }
0x3ec9   :  { %3168 = vrot.lane.b32.xlu1 %v3167_v46, %s4714_s29 }
0x3f3b   :  { %v3169_v35 = vpop.permute.xlu1 %3168 }
0x3f3c   :  { %4341 = vmatmul.mubr.msk.f32.vlgmr.msra.gmra.mxu0 %vm221_vm5, %v3169_v35 }
0x3f3d   :  { %4355 = vmatpush3.msra.mxu0 %v5437_v26  ;;  %4362 = vmatprep.mubr.msk.f32.mxu0 %vm4711_vm0, %v4710_v0 }
0x3f3e   :  { %4356 = vmatprep.subr.mxu0 %v4710_v0 }
0x3f3f   :  { %4357 = vmatpush3.msra.mxu0 %v5440_v51 }
0x3f40   :  { %4358 = vmatprep.subr.mxu0 %v4710_v0 }
0x3f41   :  { %4359 = vmatpush3.msra.mxu0 %v5446_v52 }
0x3f42   :  { %4360 = vmatprep.subr.mxu0 %v4710_v0 }
0x3f43   :  { %4361 = vmatpush3.msra.mxu0 %v5450_v53 }
0x3f44   :  { %4376 = vmatprep.subr.mxu0 %v4710_v0 }
0x3ffc   :  { %v3238_v31 = vpop.f32.mrf.mxu0 }
0x3ffd   :  { %v3242_v33 = vadd.f32 %v3238_v31, %v5476_v1 }
0x3ffe   :  { %v4342_v47 = vpop.f32.mrf.mxu0 }
0x3fff   :  { %v3243_v34 = vmul.f32 %v3242_v33, %v4875_v28 }
0x4001   :  { %4526 = vtanh.f32 %v3243_v34 }
0x400e   :  { %v4527_v10 = vpop.eup %4526 }
0x400f   :  { %v3245_v36 = vmul.f32 0.5, %v4527_v10 }
0x4011   :  { %v3246_v30 = vadd.f32 0.5, %v3245_v36 }
0x4013   :  { %v3247_v49 = vsel %vm4863_vm4, %v4527_v10, %v3246_v30 }
0x4014   :  { %3253 = vrot.lane.b32.xlu0 %v3247_v49, %s4713_s0  ;;  %v3251_v40 = vmul.f32 %v3249_v39, %v3247_v49 }
0x4086   :  { %v3254_v38 = vpop.permute.xlu0 %3253 }
0x4087   :  { %v3256_v15 = vmul.f32 %v3254_v38, %v3247_v49 }
0x4089   :  { %3258 = vrot.lane.b32.xlu1 %v3256_v15, %s4714_s29 }
0x40fb   :  { %v3259_v41 = vpop.permute.xlu1 %3258 }
0x40fc   :  { %v3261_v1 = vadd.f32 %v3259_v41, %v3251_v40 }
0x40fe   :  { %4528 = vtanh.f32 %v3261_v1  ;;  %v3353_v9 = vrot.slane %v3261_v1, 2 }
0x410b   :  { %v4529_v24 = vpop.eup %4528 }
0x410c   :  { %3264 = vrot.lane.b32.xlu0 %v4529_v24, %s4713_s0 }
0x417e   :  { %v3265_v42 = vpop.permute.xlu0 %3264 }
0x417f   :  { %v5580_v44 = vmul.f32 %v3265_v42, %v3247_v49 }
0x4181   :  { %3269 = vrot.lane.b32.xlu1 %v5580_v44, %s4714_s29 }
0x41f3   :  { %v3270_v48 = vpop.permute.xlu1 %3269 }
0x41f4   :  { %4352 = vmatmul.mubr.msk.f32.vlgmr.msra.gmra.mxu1 %vm221_vm5, %v3270_v48 }
0x41f5   :  { %4366 = vmatpush3.msra.mxu1 %v5437_v26  ;;  %4373 = vmatprep.mubr.msk.f32.mxu1 %vm4711_vm0, %v4710_v0 }
0x41f6   :  { %4367 = vmatprep.subr.mxu1 %v4710_v0 }
0x41f7   :  { %4368 = vmatpush3.msra.mxu1 %v5440_v51 }
0x41f8   :  { %4369 = vmatprep.subr.mxu1 %v4710_v0 }
0x41f9   :  { %4370 = vmatpush3.msra.mxu1 %v5446_v52 }
0x41fa   :  { %4371 = vmatprep.subr.mxu1 %v4710_v0 }
0x41fb   :  { %4372 = vmatpush3.msra.mxu1 %v5450_v53 }
0x42b4   :  { %v3339_v54 = vpop.f32.mrf.mxu1 }
0x42b5   :  { %v3344_v56 = vrot.slane %v3339_v54, 2 }
0x42b6   :  { %v4353_v7 = vpop.f32.mrf.mxu1 }
0x42b7   :  { %v3346_v58 = vadd.f32 %v3344_v56, %v5596_v55 }
0x42b9   :  { %v3347_v8 = vmul.f32 %v3346_v58, %v4875_v28 }
0x42bb   :  { %4530 = vtanh.f32 %v3347_v8  ;;  %v2821_v8 = vrot.slane %v5527_v20, 2 }
0x42c8   :  { %v4531_v37 = vpop.eup %4530 }
0x42c9   :  { %v3349_v63 = vmul.f32 0.5, %v4531_v37 }
0x42cb   :  { %v3350_v25 = vadd.f32 0.5, %v3349_v63 }
0x42cd   :  { %v3351_v4 = vsel %vm4863_vm4, %v4531_v37, %v3350_v25  ;;  %v2823_v37 = vadd.f32 %v2821_v8, %v5399_v3 }
0x42ce   :  { %3357 = vrot.lane.b32.xlu0 %v3351_v4, %s4713_s0  ;;  %v3355_v60 = vmul.f32 %v3353_v9, %v3351_v4 }
0x42cf   :  { %v2824_v63 = vmul.f32 %v2823_v37, %v4875_v28 }
0x4340   :  { %v3358_v6 = vpop.permute.xlu0 %3357 }
0x4341   :  { %v3360_v11 = vmul.f32 %v3358_v6, %v3351_v4 }
0x4343   :  { %3362 = vrot.lane.b32.xlu1 %v3360_v11, %s4714_s29 }
0x43b5   :  { %v3363_v12 = vpop.permute.xlu1 %3362 }
0x43b6   :  { %v3365_v13 = vadd.f32 %v3363_v12, %v3355_v60 }
0x43b8   :  { %4532 = vtanh.f32 %v3365_v13 }
0x43c5   :  { %v4533_v61 = vpop.eup %4532 }
0x43c6   :  { %3368 = vrot.lane.b32.xlu0 %v4533_v61, %s4713_s0  ;;  %v2830_v61 = vrot.slane %v5489_v5, 6 }
0x4438   :  { %v3369_v16 = vpop.permute.xlu0 %3368 }
0x4439   :  { %v5605_v50 = vmul.f32 %v3369_v16, %v3351_v4 }
0x443b   :  { %v3373_v14 = vrot.slane %v5605_v50, 6 }
0x443d   :  { %3374 = vrot.lane.b32.xlu1 %v3373_v14, %s4714_s29 }
0x44af   :  { %v3375_v59 = vpop.permute.xlu1 %3374 }
0x44b0   :  { %4363 = vmatmul.mubr.msk.f32.vlgmr.msra.gmra.mxu0 %vm221_vm5, %v3375_v59 }
0x44b1   :  { %4377 = vmatpush3.msra.mxu0 %v5437_v26  ;;  %4384 = vmatprep.mubr.msk.f32.mxu0 %vm4711_vm0, %v4710_v0 }
0x44b2   :  { %4378 = vmatprep.subr.mxu0 %v4710_v0 }
0x44b3   :  { %4379 = vmatpush3.msra.mxu0 %v5440_v51 }
0x44b4   :  { %4380 = vmatprep.subr.mxu0 %v4710_v0 }
0x44b5   :  { %4381 = vmatpush3.msra.mxu0 %v5446_v52 }
0x44b6   :  { %4382 = vmatprep.subr.mxu0 %v4710_v0 }
0x44b7   :  { %4383 = vmatpush3.msra.mxu0 %v5450_v53  ;;  %v3458_v53 = vrot.slane %v3365_v13, 2 }
0x4570   :  { %v3444_v18 = vpop.f32.mrf.mxu0 }
0x4571   :  { %v3449_v19 = vrot.slane %v3444_v18, 4 }
0x4572   :  { %v4364_v43 = vpop.f32.mrf.mxu0 }
0x4573   :  { %v3451_v26 = vadd.f32 %v3449_v19, %v5596_v55 }
0x4575   :  { %v3452_v21 = vmul.f32 %v3451_v26, %v4875_v28 }
0x4577   :  { %4534 = vtanh.f32 %v3452_v21 }
0x4584   :  { %v4535_v62 = vpop.eup %4534 }
0x4585   :  { %v3454_v22 = vmul.f32 0.5, %v4535_v62 }
0x4587   :  { %v3455_v27 = vadd.f32 0.5, %v3454_v22 }
0x4589   :  { %v3456_v51 = vsel %vm4863_vm4, %v4535_v62, %v3455_v27 }
0x458a   :  { %3462 = vrot.lane.b32.xlu0 %v3456_v51, %s4713_s0  ;;  %v3460_v29 = vmul.f32 %v3458_v53, %v3456_v51 }
0x45fc   :  { %v3463_v52 = vpop.permute.xlu0 %3462 }
0x45fd   :  { %v3465_v0 = vmul.f32 %v3463_v52, %v3456_v51 }
0x45ff   :  { %3467 = vrot.lane.b32.xlu1 %v3465_v0, %s4714_s29 }
0x4671   :  { %v3468_v46 = vpop.permute.xlu1 %3467 }
0x4672   :  { %v3470_v35 = vadd.f32 %v3468_v46, %v3460_v29  ;;  %v3713_v46 = vld [vmem:[%s5722_s7 + $0x28] sm:$0xff] }
0x4674   :  { %4536 = vtanh.f32 %v3470_v35  ;;  %v3563_v48 = vrot.slane %v3470_v35, 2 }
0x4681   :  { %v4537_v31 = vpop.eup %4536 }
0x4682   :  { %3473 = vrot.lane.b32.xlu0 %v4537_v31, %s4713_s0 }
0x46f4   :  { %v3474_v33 = vpop.permute.xlu0 %3473 }
0x46f5   :  { %v5626_v47 = vmul.f32 %v3474_v33, %v3456_v51  ;;  %v3712_v33 = vld [vmem:[%s5722_s7 + $0x20] sm:$0xff] }
0x46f7   :  { %v3478_v34 = vrot.slane %v5626_v47, 4 }
0x46f9   :  { %3479 = vrot.lane.b32.xlu1 %v3478_v34, %s4714_s29  ;;  %v3711_v34 = vld [vmem:[%s5722_s7 + $0x18] sm:$0xff] }
0x476b   :  { %v3480_v10 = vpop.permute.xlu1 %3479 }
0x476c   :  { %4374 = vmatmul.mubr.msk.f32.vlgmr.msra.gmra.mxu1 %vm221_vm5, %v3480_v10 }
0x482c   :  { %v3549_v36 = vpop.f32.mrf.mxu1 }
0x482d   :  { %v3554_v30 = vrot.slane %v3549_v36, 6  ;;  %v3710_v36 = vld [vmem:[%s5722_s7 + $0x10] sm:$0xff] }
0x482e   :  { %v4375_v49 = vpop.f32.mrf.mxu1 }
0x482f   :  { %v3556_v38 = vadd.f32 %v3554_v30, %v5596_v55  ;;  %v3709_v49 = vld [vmem:[%s5722_s7 + $0x8] sm:$0xff] }
0x4831   :  { %v3557_v15 = vmul.f32 %v3556_v38, %v4875_v28 }
0x4833   :  { %4538 = vtanh.f32 %v3557_v15 }
0x4840   :  { %v4539_v39 = vpop.eup %4538 }
0x4841   :  { %v3559_v40 = vmul.f32 0.5, %v4539_v39 }
0x4843   :  { %v3560_v41 = vadd.f32 0.5, %v3559_v40 }
0x4845   :  { %v3561_v1 = vsel %vm4863_vm4, %v4539_v39, %v3560_v41 }
0x4846   :  { %3567 = vrot.lane.b32.xlu0 %v3561_v1, %s4713_s0  ;;  %v3565_v54 = vmul.f32 %v3563_v48, %v3561_v1 }
0x48b8   :  { %v3568_v24 = vpop.permute.xlu0 %3567 }
0x48b9   :  { %v3570_v42 = vmul.f32 %v3568_v24, %v3561_v1 }
0x48bb   :  { %3572 = vrot.lane.b32.xlu1 %v3570_v42, %s4714_s29 }
0x492d   :  { %v3573_v56 = vpop.permute.xlu1 %3572 }
0x492e   :  { %v3575_v7 = vadd.f32 %v3573_v56, %v3565_v54  ;;  %v3862_v54 = vld [vmem:[#allocation11] ss:$0 sm:$0xff] }
0x4930   :  { %4540 = vtanh.f32 %v3575_v7  ;;  %v3665_v0 = vrot.slane %v3575_v7, 2 }
0x4931   :  { %4542 = vtanh.f32 %v2824_v63 }
0x493d   :  { %v4541_v58 = vpop.eup %4540 }
0x493e   :  { %3578 = vrot.lane.b32.xlu0 %v4541_v58, %s4713_s0  ;;  %v4543_v25 = vpop.eup %4542 }
0x493f   :  { %v2826_v6 = vmul.f32 0.5, %v4543_v25 }
0x4941   :  { %v2827_v60 = vadd.f32 0.5, %v2826_v6 }
0x4943   :  { %v2828_v12 = vsel %vm4863_vm4, %v4543_v25, %v2827_v60 }
0x4944   :  { %v2832_v16 = vmul.f32 %v2830_v61, %v2828_v12 }
0x49b0   :  { %v3579_v4 = vpop.permute.xlu0 %3578 }
0x49b1   :  { %v5641_v11 = vmul.f32 %v3579_v4, %v3561_v1 }
0x49b3   :  { %v3583_v9 = vrot.slane %v5641_v11, 2 }
0x49b5   :  { %3584 = vrot.lane.b32.xlu1 %v3583_v9, %s4714_s29 }
0x49b9   :  { %2834 = vrot.lane.b32.xlu1 %v2828_v12, %s4713_s0 }
0x4a27   :  { %v3585_v20 = vpop.permute.xlu1 %3584 }
0x4a28   :  { %4385 = vmatmul.mubr.msk.f32.vlgmr.msra.gmra.mxu0 %vm221_vm5, %v3585_v20 }
0x4a2b   :  { %v2835_v3 = vpop.permute.xlu1 %2834 }
0x4a2c   :  { %v2837_v13 = vmul.f32 %v2835_v3, %v2828_v12 }
0x4a2e   :  { %2839 = vrot.lane.b32.xlu1 %v2837_v13, %s4714_s29 }
0x4aa0   :  { %v2840_v14 = vpop.permute.xlu1 %2839 }
0x4aa1   :  { %v2842_v59 = vadd.f32 %v2840_v14, %v2832_v16 }
0x4aa3   :  { %4544 = vtanh.f32 %v2842_v59 }
0x4ab0   :  { %v4545_v18 = vpop.eup %4544 }
0x4ab1   :  { %2845 = vrot.lane.b32.xlu1 %v4545_v18, %s4713_s0 }
0x4ae8   :  { %v3654_v19 = vpop.f32.mrf.mxu0 }
0x4ae9   :  { %v3658_v43 = vadd.f32 %v3654_v19, %v5596_v55 }
0x4aea   :  { %v4386_v26 = vpop.f32.mrf.mxu0 }
0x4aeb   :  { %v3659_v21 = vmul.f32 %v3658_v43, %v4875_v28  ;;  %v3715_v28 = vld [vmem:[%s5722_s7 + $0x38] sm:$0xff] }
0x4aec   :  { %4387 = vmatprep.subr.mxu1 %v3715_v28 }
0x4aed   :  { %4546 = vtanh.f32 %v3659_v21  ;;  %4388 = vmatpush3.msra.mxu1 %v3715_v28 }
0x4aee   :  { %4389 = vmatprep.subr.mxu1 %v3714_v23 }
0x4aef   :  { %4390 = vmatpush3.msra.mxu1 %v3714_v23 }
0x4af0   :  { %4391 = vmatprep.subr.mxu1 %v3713_v46 }
0x4af1   :  { %4392 = vmatpush3.msra.mxu1 %v3713_v46 }
0x4af2   :  { %4393 = vmatprep.subr.mxu1 %v3712_v33 }
0x4af3   :  { %4394 = vmatpush3.msra.mxu1 %v3712_v33 }
0x4af4   :  { %4395 = vmatprep.subr.mxu1 %v3711_v34 }
0x4af5   :  { %4396 = vmatpush3.msra.mxu1 %v3711_v34 }
0x4af6   :  { %4397 = vmatprep.subr.mxu1 %v3710_v36 }
0x4af7   :  { %4398 = vmatpush3.msra.mxu1 %v3710_v36 }
0x4af8   :  { %4399 = vmatprep.subr.mxu1 %v3709_v49 }
0x4af9   :  { %4400 = vmatpush3.msra.mxu1 %v3709_v49 }
0x4afa   :  { %v4547_v62 = vpop.eup %4546 }
0x4afb   :  { %v3661_v22 = vmul.f32 0.5, %v4547_v62 }
0x4afd   :  { %v3662_v27 = vadd.f32 0.5, %v3661_v22 }
0x4aff   :  { %v3663_v5 = vsel %vm4863_vm4, %v4547_v62, %v3662_v27 }
0x4b00   :  { %3669 = vrot.lane.b32.xlu0 %v3663_v5, %s4713_s0  ;;  %v3667_v53 = vmul.f32 %v3665_v0, %v3663_v5 }
0x4b23   :  { %v2846_v31 = vpop.permute.xlu1 %2845 }
0x4b24   :  { %v2848_v10 = vmul.f32 %v2846_v31, %v2828_v12 }
0x4b26   :  { %v2854_v30 = vsel %vm1052_vm8, %v5498_v32, %v2848_v10  ;;  %v3687_v32 = vsel %vm1048_vm6, %v5580_v44, %v5558_v45 }
0x4b27   :  { %v3688_v1 = vsel %vm1050_vm7, %v3687_v32, %v5536_v2 }
0x4b28   :  { %v3689_v24 = vsel %vm1052_vm8, %v3688_v1, %v5501_v57 }
0x4b72   :  { %v3670_v51 = vpop.permute.xlu0 %3669 }
0x4b73   :  { %v3672_v52 = vmul.f32 %v3670_v51, %v3663_v5 }
0x4b75   :  { %3674 = vrot.lane.b32.xlu0 %v3672_v52, %s4714_s29 }
0x4be7   :  { %v3675_v29 = vpop.permute.xlu0 %3674 }
0x4be8   :  { %v3677_v55 = vadd.f32 %v3675_v29, %v3667_v53 }
0x4bea   :  { %4548 = vtanh.f32 %v3677_v55 }
0x4bf7   :  { %v4549_v35 = vpop.eup %4548 }
0x4bf8   :  { %3680 = vrot.lane.b32.xlu0 %v4549_v35, %s4713_s0 }
0x4bfc   :  { %3692 = vrot.lane.b32.xlu0 %v5383_v17, %s4714_s29  ;;  %v3708_v17 = vld [vmem:[%s5722_s7] sm:$0xff]  ;;  %s4715_s7 = smov [#allocation13]  }
0x4bfd   :  { %4401 = vmatprep.subr.mxu1 %v3708_v17  ;;  %s3811_s5 = sshll.u32 %s4715_s7, 4  ;;  %s3812_s5 = int_to_ptr.vmem [resolvable:$true] %s3811_s5 }
0x4bfe   :  { %4402 = vmatpush3.msra.mxu1 %v3708_v17  ;;  %p4675_p3 = scmp.lt.s32.totalorder %s3812_s5, %s3812_s5 }
0x4c00   :  { %3694 = vrot.lane.b32.xlu0 %v2854_v30, %s4714_s29 }
0x4c6a   :  { %v3681_v38 = vpop.permute.xlu0 %3680 }
0x4c6b   :  { %v3683_v15 = vmul.f32 %v3681_v38, %v3663_v5 }
0x4c6d   :  { %v3684_v39 = vsel %vm1048_vm6, %v3683_v15, %v5641_v11 }
0x4c6e   :  { %v3685_v40 = vsel %vm1050_vm7, %v3684_v39, %v5626_v47  ;;  %v3693_v45 = vpop.permute.xlu0 %3692 }
0x4c6f   :  { %v3686_v41 = vsel %vm1052_vm8, %v3685_v40, %v5605_v50 }
0x4c70   :  { %3700 = vrot.lane.b32.xlu1 %v3686_v41, %s4713_s0 }
0x4c72   :  { %v3695_v47 = vpop.permute.xlu0 %3694 }
0x4c74   :  { %3702 = vrot.lane.b32.xlu1 %v3689_v24, %s4713_s0  ;;  %s4670_s0 = scalar_lea.vmem %s3812_s5, 256 }
0x4c75   :  { %p4671_p2 = scmp.ne.s32.totalorder %s3812_s5, %s4670_s0  ;;  %p4676_p4 = scmp.lt.s32.totalorder %s4670_s0, %s4670_s0 }
0x4c77   :  { %p4677_p5 = por %p4676_p4, %p4675_p3 }
0x4c79   :  { %p4678_p6 = pnand %p4677_p5, %p4671_p2 }
0x4ce2   :  { %v3701_v44 = vpop.permute.xlu1 %3700 }
0x4ce3   :  { %v3706_v42 = vsel %vm221_vm5, %v3693_v45, %v3701_v44 }
0x4ce4   :  { %4403 = vmatprep.mubr.msk.f32.mxu1 %vm1938_vm9, %v3706_v42 }
0x4ce6   :  { %v3703_v48 = vpop.permute.xlu1 %3702 }
0x4ce7   :  { %v3707_v50 = vsel %vm221_vm5, %v3695_v47, %v3703_v48 }
0x4ce8   :  { %4404 = vmatmul.mubr.msk.f32.vlgmr.msra.gmra.mxu1 %vm1938_vm9, %v3707_v50 }
0x4da8   :  { %v4405_v56 = vpop.f32.mrf.mxu1 }
0x4da9   :  { %v3801_v2 = vadd.f32 %v4405_v56, %v3862_v54 }
0x4daa   :  { %v3795_v57 = vpop.f32.mrf.mxu1 }
0x4dab   :  { %3805 = vst.msk [vmem:[#allocation13 + $0x8] sm:$0xff] %vm133_vm1, %v3801_v2  ;;  %v3796_v7 = vadd.f32 %v3862_v54, %v3795_v57 }
0x4dad   :  { %3804 = vst.msk [vmem:[#allocation13] sm:$0xff] %vm133_vm1, %v3796_v7 }
0x4dae   :  { %4681 = shalt.err (!%p4678_p6)
}
0x4daf   :  { %3817 = dma.vmem_to_hbm [thread:$0]  %s3812_s5, 256, %s5724_s9, [#allocation4], %s4702_s17, %s4702_s17, %s4703_s18  }
0x4db0   :  { %4698 = dma.done.wait [#allocation4], 256  }
0x4db1   :  { %4699 = vsyncadd [#allocation4], 4294967040 }
0x4db2   :  { %3821 = vsyncpa [#allocation3], 1 }
0x4db3   :  { %3822 = vsyncpa [#allocation6], 1 }
0x4db4   :  { %3823 = vsyncpa [#allocation9], 1 }
0x4db5   :  { %3824 = vsyncpa [#allocation12], 1 }
0x4db6   :  { %3825 = vsyncpa [#allocation4], 1 }

</bundles_post_ra>
